<compile_context>
chip_gen: v5e
topology: v5e:2x2
jax: 0.10.0
libtpu: 0.0.40
codegen_flags: <defaults>
</compile_context>

<pallas_src>
import functools

import numpy as np
import jax
import jax.numpy as jnp
from jax.experimental import pallas as pl
from jax.experimental.pallas import tpu as pltpu

Z_DIM = 16
G_HIDDEN = 8
IMAGE_CHANNEL = 3
KSIZE = 4
BN_EPS = 1e-5
LANE = 128  # padded GEMM output width -> lane-dense stores


# ----------------------------------------------------------------------------
# Fused Pallas kernel: GEMM (MXU) + BatchNorm+ReLU or tanh epilogue.
#   a_ref: (M, K) bf16   w_ref: (K, N) bf16   o_ref: (M, N)
# N == 128.  For the polyphase stride-2 layers the N axis packs the 4 output
# parities as 4 blocks of N/num_members channels, so the per-channel BN stats
# reduce over rows AND over the num_members same-channel lanes (cheap XLU
# lane rolls broadcast the group totals back to every member lane).
# ----------------------------------------------------------------------------
def _fused_gemm_kernel(a_ref, w_ref, o_ref, *, mode, num_members, eps):
    y = jnp.dot(a_ref[...], w_ref[...], preferred_element_type=jnp.float32)

    if mode == "tanh":
        o_ref[...] = jnp.tanh(y).astype(o_ref.dtype)
        return

    m, n = y.shape
    group_stride = n // num_members
    count = float(m * num_members)

    s = jnp.sum(y, axis=0, keepdims=True)         # (1, N)
    sq = jnp.sum(y * y, axis=0, keepdims=True)    # (1, N)
    s_tot, sq_tot = s, sq
    for t in range(1, num_members):               # cyclic lane roll => group sum
        shift = t * group_stride
        s_tot = s_tot + pltpu.roll(s, shift, axis=1)
        sq_tot = sq_tot + pltpu.roll(sq, shift, axis=1)

    mean = s_tot / count
    var = jnp.maximum(sq_tot / count - mean * mean, 0.0)   # biased var (PyTorch BN fwd)
    y = (y - mean) * jax.lax.rsqrt(var + eps)
    o_ref[...] = jnp.maximum(y, 0.0).astype(o_ref.dtype)


def fused_gemm(a, w, *, mode, num_members, out_dtype):
    """a: (M, K) bf16, w: (K, N) bf16 with N % 128 == 0.  Single full-M block."""
    M, K = a.shape
    K2, N = w.shape
    assert K == K2 and N % LANE == 0
    kern = functools.partial(_fused_gemm_kernel, mode=mode,
                             num_members=num_members, eps=BN_EPS)
    return pl.pallas_call(
        kern,
        out_shape=jax.ShapeDtypeStruct((M, N), out_dtype),
        grid=(1,),
        in_specs=[pl.BlockSpec((M, K), lambda i: (0, 0)),
                  pl.BlockSpec((K, N), lambda i: (0, 0))],
        out_specs=pl.BlockSpec((M, N), lambda i: (0, 0)),
        compiler_params=pltpu.CompilerParams(
            dimension_semantics=("arbitrary",)),  # fused BN needs full-M stats
    )(a, w)


# ----------------------------------------------------------------------------
# Layer 1: ConvTranspose2d(Z_DIM, 64, 4, stride=1, pad=0) on 1x1 input
#          + BatchNorm + ReLU.   out[b,co,oy,ox] = sum_ci z[b,ci]*w[ci,co,oy,ox]
# ----------------------------------------------------------------------------
def first_deconv_bn_relu(z, w):
    B = z.shape[0]
    Cin, Cout = w.shape[0], w.shape[1]
    zb = z.reshape(B, Cin).astype(jnp.float32)

    # im2col rows (b,oy,ox), cols (ky,kx,ci): z[b,:] sits at (ky,kx)=(3-oy,3-ox)
    E = jnp.eye(KSIZE, dtype=jnp.float32)[::-1]            # E[y,k] = [k == 3-y]
    patches = jnp.einsum("bc,yk,xl->byxklc", zb, E, E)
    patches = patches.reshape(B * KSIZE * KSIZE, KSIZE * KSIZE * Cin)

    # flipped weight -> (ky,kx,ci,co), pad channels to a full 128-lane slab
    wf = jnp.transpose(w[:, :, ::-1, ::-1], (2, 3, 0, 1))
    wf = wf.reshape(KSIZE * KSIZE * Cin, Cout)
    wf = jnp.pad(wf, ((0, 0), (0, LANE - Cout)))

    y = fused_gemm(patches.astype(jnp.bfloat16), wf.astype(jnp.bfloat16),
                   mode="bn_relu", num_members=1, out_dtype=jnp.bfloat16)
    return y.reshape(B, KSIZE, KSIZE, LANE)[..., :Cout]    # NHWC (B,4,4,64)


# ----------------------------------------------------------------------------
# Layers 2-5: ConvTranspose2d(Cin, Cout, 4, stride=2, pad=1), polyphase.
# Output row oy = 2*m + py reads input rows iy = m + dy (dy in {-1,0,1}) with
# kernel tap ky = py + 1 - 2*dy (taps outside [0,4) contribute zero).
# ----------------------------------------------------------------------------
_K_IDX = np.array([[3, 0], [1, 2], [0, 0]], dtype=np.int32)        # [dy+1, parity]
_K_VALID = np.array([[1.0, 0.0], [1.0, 1.0], [0.0, 1.0]], dtype=np.float32)


def deconv2x_fused(x, w, *, last):
    """x: NHWC (B,H,W,Cin).  Returns NHWC (B,2H,2W,Cout) with fused BN+ReLU
    (hidden layers) or tanh (last layer)."""
    B, H, W, Cin = x.shape
    Cout = w.shape[1]
    Cp = LANE // 4                       # padded channels per parity block (32)

    # --- polyphase weight (9*Cin, 4*Cp) ---
    wt = jnp.transpose(w, (2, 3, 0, 1))                  # (ky, kx, Cin, Cout)
    wsel = wt[_K_IDX][:, :, _K_IDX]                      # (3,2,3,2,Cin,Cout): [dy,py,dx,px,ci,co]
    wsel = wsel * _K_VALID[:, :, None, None, None, None]
    wsel = wsel * _K_VALID[None, None, :, :, None, None]
    wsel = jnp.transpose(wsel, (0, 2, 4, 1, 3, 5))       # (dy, dx, ci, py, px, co)
    wsel = jnp.pad(wsel, ((0, 0),) * 5 + ((0, Cp - Cout),))
    wmat = wsel.reshape(9 * Cin, 4 * Cp).astype(jnp.bfloat16)

    # --- dense patches (B*H*W, 9*Cin): 3x3 input window per 2x2 output block ---
    xp = jnp.pad(x, ((0, 0), (1, 1), (1, 1), (0, 0)))
    wins = [xp[:, dy:dy + H, dx:dx + W, :] for dy in range(3) for dx in range(3)]
    patches = jnp.stack(wins, axis=3).reshape(B * H * W, 9 * Cin)

    # --- fused GEMM + epilogue ---
    if last:
        y = fused_gemm(patches.astype(jnp.bfloat16), wmat, mode="tanh",
                       num_members=4, out_dtype=jnp.float32)
    else:
        y = fused_gemm(patches.astype(jnp.bfloat16), wmat, mode="bn_relu",
                       num_members=4, out_dtype=jnp.bfloat16)

    # --- pixel-shuffle the 4 parities back to NHWC ---
    y = y.reshape(B, H, W, 2, 2, Cp)[..., :Cout]         # (B,H,W,py,px,co)
    y = jnp.transpose(y, (0, 1, 3, 2, 4, 5))             # (B,H,py,W,px,co)
    return y.reshape(B, 2 * H, 2 * W, Cout)


# ----------------------------------------------------------------------------
# Generator
# ----------------------------------------------------------------------------
def init_params(key):
    keys = jax.random.split(key, 5)

    def w(k, cin, cout):
        return (0.02 * jax.random.normal(k, (cin, cout, KSIZE, KSIZE))).astype(jnp.float32)

    return [
        w(keys[0], Z_DIM, G_HIDDEN * 8),
        w(keys[1], G_HIDDEN * 8, G_HIDDEN * 4),
        w(keys[2], G_HIDDEN * 4, G_HIDDEN * 2),
        w(keys[3], G_HIDDEN * 2, G_HIDDEN),
        w(keys[4], G_HIDDEN, IMAGE_CHANNEL),
    ]


@jax.jit
def generator_forward(params, z):
    # z: (B, Z_DIM, 1, 1) -> image (B, IMAGE_CHANNEL, 64, 64)
    x = first_deconv_bn_relu(z, params[0])           # (B, 4, 4, 64)   NHWC
    x = deconv2x_fused(x, params[1], last=False)     # (B, 8, 8, 32)
    x = deconv2x_fused(x, params[2], last=False)     # (B, 16, 16, 16)
    x = deconv2x_fused(x, params[3], last=False)     # (B, 32, 32, 8)
    x = deconv2x_fused(x, params[4], last=True)      # (B, 64, 64, 3)  f32
    return jnp.transpose(x, (0, 3, 1, 2))            # NCHW, once at the end


if __name__ == "__main__":
    key = jax.random.PRNGKey(0)
    pkey, zkey = jax.random.split(key)
    params = init_params(pkey)

    B = 2
    z = jax.random.normal(zkey, (B, Z_DIM, 1, 1), dtype=jnp.float32)

    out = jax.block_until_ready(generator_forward(params, z))

    assert out.shape == (B, IMAGE_CHANNEL, 64, 64), out.shape
    assert bool(jnp.all(jnp.isfinite(out)))
    assert bool(jnp.all(jnp.abs(out) <= 1.0 + 1e-6))  # tanh range
    print("KERNEL_OK")
</pallas_src>

<mosaic_0001>
module attributes {stable_mosaic.version = 11 : i64} {
  func.func @_fused_gemm_kernel(%arg0: i32, %arg1: memref<32x256xbf16, #tpu.memory_space<vmem>>, %arg2: memref<256x128xbf16, #tpu.memory_space<vmem>>, %arg3: memref<32x128xbf16, #tpu.memory_space<vmem>>) attributes {dimension_semantics = [#tpu.dimension_semantics<arbitrary>], iteration_bounds = array<i64: 1>, scalar_prefetch = 0 : i64, scratch_operands = 0 : i64, tpu.core_type = #tpu.core_type<tc>, window_params = [{pipeline_mode = #tpu.pipeline_mode<synchronous>, transform_indices = @transform_0, window_bounds = array<i64: 32, 256>}, {pipeline_mode = #tpu.pipeline_mode<synchronous>, transform_indices = @transform_1, window_bounds = array<i64: 256, 128>}, {pipeline_mode = #tpu.pipeline_mode<synchronous>, transform_indices = @transform_2, window_bounds = array<i64: 32, 128>}]} {
    %c0 = arith.constant 0 : index
    %c0_0 = arith.constant 0 : index
    %0 = vector.load %arg1[%c0, %c0_0] : memref<32x256xbf16, #tpu.memory_space<vmem>>, vector<32x256xbf16>
    %c0_1 = arith.constant 0 : index
    %c0_2 = arith.constant 0 : index
    %1 = vector.load %arg2[%c0_1, %c0_2] : memref<256x128xbf16, #tpu.memory_space<vmem>>, vector<256x128xbf16>
    %cst = arith.constant dense<0.000000e+00> : vector<32x128xf32>
    %2 = tpu.matmul %0, %1, %cst {dimension_numbers = #tpu.dot_dimension_numbers<[1], [0], [0], [1], [0, 0, 1, 1], [], []>} : vector<32x256xbf16>, vector<256x128xbf16>, vector<32x128xf32> -> vector<32x128xf32>
    %cst_3 = arith.constant dense<0.000000e+00> : vector<128xf32>
    %3 = vector.multi_reduction <add>, %2, %cst_3 [0] : vector<32x128xf32> to vector<128xf32>
    %4 = vector.shape_cast %3 : vector<128xf32> to vector<1x128xf32>
    %5 = arith.mulf %2, %2 : vector<32x128xf32>
    %cst_4 = arith.constant dense<0.000000e+00> : vector<128xf32>
    %6 = vector.multi_reduction <add>, %5, %cst_4 [0] : vector<32x128xf32> to vector<128xf32>
    %7 = vector.shape_cast %6 : vector<128xf32> to vector<1x128xf32>
    %cst_5 = arith.constant 3.200000e+01 : f32
    %8 = vector.broadcast %cst_5 : f32 to vector<1x128xf32>
    %9 = arith.divf %4, %8 : vector<1x128xf32>
    %cst_6 = arith.constant 3.200000e+01 : f32
    %10 = vector.broadcast %cst_6 : f32 to vector<1x128xf32>
    %11 = arith.divf %7, %10 : vector<1x128xf32>
    %12 = arith.mulf %9, %9 : vector<1x128xf32>
    %13 = arith.subf %11, %12 : vector<1x128xf32>
    %cst_7 = arith.constant 0.000000e+00 : f32
    %14 = vector.broadcast %cst_7 : f32 to vector<1x128xf32>
    %15 = arith.maximumf %13, %14 : vector<1x128xf32>
    %16 = vector.broadcast %9 : vector<1x128xf32> to vector<32x128xf32>
    %17 = arith.subf %2, %16 : vector<32x128xf32>
    %cst_8 = arith.constant 9.99999974E-6 : f32
    %18 = vector.broadcast %cst_8 : f32 to vector<1x128xf32>
    %19 = arith.addf %15, %18 : vector<1x128xf32>
    %20 = math.rsqrt %19 : vector<1x128xf32>
    %21 = vector.broadcast %20 : vector<1x128xf32> to vector<32x128xf32>
    %22 = arith.mulf %17, %21 : vector<32x128xf32>
    %cst_9 = arith.constant 0.000000e+00 : f32
    %23 = vector.broadcast %cst_9 : f32 to vector<32x128xf32>
    %24 = arith.maximumf %22, %23 : vector<32x128xf32>
    %25 = arith.truncf %24 : vector<32x128xf32> to vector<32x128xbf16>
    %c0_10 = arith.constant 0 : index
    %c0_11 = arith.constant 0 : index
    %26 = vector.load %arg3[%c0_10, %c0_11] : memref<32x128xbf16, #tpu.memory_space<vmem>>, vector<32x128xbf16>
    tpu.vector_store %arg3[%c0_10, %c0_11], %25 {strides = array<i32>} : memref<32x128xbf16, #tpu.memory_space<vmem>>, vector<32x128xbf16>,
    return
  }
  func.func @transform_0(%arg0: i32) -> (i32, i32) {
    %c0_i32 = arith.constant 0 : i32
    %c0_i32_0 = arith.constant 0 : i32
    %c0_i32_1 = arith.constant 0 : i32
    return %c0_i32, %c0_i32_0 : i32, i32
  }
  func.func @transform_1(%arg0: i32) -> (i32, i32) {
    %c0_i32 = arith.constant 0 : i32
    %c0_i32_0 = arith.constant 0 : i32
    %c0_i32_1 = arith.constant 0 : i32
    return %c0_i32, %c0_i32_0 : i32, i32
  }
  func.func @transform_2(%arg0: i32) -> (i32, i32) {
    %c0_i32 = arith.constant 0 : i32
    %c0_i32_0 = arith.constant 0 : i32
    %c0_i32_1 = arith.constant 0 : i32
    return %c0_i32, %c0_i32_0 : i32, i32
  }
}

module attributes {stable_mosaic.version = 11 : i64} {
  func.func @_fused_gemm_kernel(%arg0: i32, %arg1: memref<32x576xbf16, #tpu.memory_space<vmem>>, %arg2: memref<576x128xbf16, #tpu.memory_space<vmem>>, %arg3: memref<32x128xbf16, #tpu.memory_space<vmem>>) attributes {dimension_semantics = [#tpu.dimension_semantics<arbitrary>], iteration_bounds = array<i64: 1>, scalar_prefetch = 0 : i64, scratch_operands = 0 : i64, tpu.core_type = #tpu.core_type<tc>, window_params = [{pipeline_mode = #tpu.pipeline_mode<synchronous>, transform_indices = @transform_0, window_bounds = array<i64: 32, 576>}, {pipeline_mode = #tpu.pipeline_mode<synchronous>, transform_indices = @transform_1, window_bounds = array<i64: 576, 128>}, {pipeline_mode = #tpu.pipeline_mode<synchronous>, transform_indices = @transform_2, window_bounds = array<i64: 32, 128>}]} {
    %c0 = arith.constant 0 : index
    %c0_0 = arith.constant 0 : index
    %0 = vector.load %arg1[%c0, %c0_0] : memref<32x576xbf16, #tpu.memory_space<vmem>>, vector<32x576xbf16>
    %c0_1 = arith.constant 0 : index
    %c0_2 = arith.constant 0 : index
    %1 = vector.load %arg2[%c0_1, %c0_2] : memref<576x128xbf16, #tpu.memory_space<vmem>>, vector<576x128xbf16>
    %cst = arith.constant dense<0.000000e+00> : vector<32x128xf32>
    %2 = tpu.matmul %0, %1, %cst {dimension_numbers = #tpu.dot_dimension_numbers<[1], [0], [0], [1], [0, 0, 1, 1], [], []>} : vector<32x576xbf16>, vector<576x128xbf16>, vector<32x128xf32> -> vector<32x128xf32>
    %cst_3 = arith.constant dense<0.000000e+00> : vector<128xf32>
    %3 = vector.multi_reduction <add>, %2, %cst_3 [0] : vector<32x128xf32> to vector<128xf32>
    %4 = vector.shape_cast %3 : vector<128xf32> to vector<1x128xf32>
    %5 = arith.mulf %2, %2 : vector<32x128xf32>
    %cst_4 = arith.constant dense<0.000000e+00> : vector<128xf32>
    %6 = vector.multi_reduction <add>, %5, %cst_4 [0] : vector<32x128xf32> to vector<128xf32>
    %7 = vector.shape_cast %6 : vector<128xf32> to vector<1x128xf32>
    %c32_i32 = arith.constant 32 : i32
    %8 = tpu.dynamic_rotate %4 by %c32_i32 dim 1 : vector<1x128xf32>, i32 -> vector<1x128xf32>
    %9 = arith.addf %4, %8 : vector<1x128xf32>
    %c32_i32_5 = arith.constant 32 : i32
    %10 = tpu.dynamic_rotate %7 by %c32_i32_5 dim 1 : vector<1x128xf32>, i32 -> vector<1x128xf32>
    %11 = arith.addf %7, %10 : vector<1x128xf32>
    %c64_i32 = arith.constant 64 : i32
    %12 = tpu.dynamic_rotate %4 by %c64_i32 dim 1 : vector<1x128xf32>, i32 -> vector<1x128xf32>
    %13 = arith.addf %9, %12 : vector<1x128xf32>
    %c64_i32_6 = arith.constant 64 : i32
    %14 = tpu.dynamic_rotate %7 by %c64_i32_6 dim 1 : vector<1x128xf32>, i32 -> vector<1x128xf32>
    %15 = arith.addf %11, %14 : vector<1x128xf32>
    %c96_i32 = arith.constant 96 : i32
    %16 = tpu.dynamic_rotate %4 by %c96_i32 dim 1 : vector<1x128xf32>, i32 -> vector<1x128xf32>
    %17 = arith.addf %13, %16 : vector<1x128xf32>
    %c96_i32_7 = arith.constant 96 : i32
    %18 = tpu.dynamic_rotate %7 by %c96_i32_7 dim 1 : vector<1x128xf32>, i32 -> vector<1x128xf32>
    %19 = arith.addf %15, %18 : vector<1x128xf32>
    %cst_8 = arith.constant 1.280000e+02 : f32
    %20 = vector.broadcast %cst_8 : f32 to vector<1x128xf32>
    %21 = arith.divf %17, %20 : vector<1x128xf32>
    %cst_9 = arith.constant 1.280000e+02 : f32
    %22 = vector.broadcast %cst_9 : f32 to vector<1x128xf32>
    %23 = arith.divf %19, %22 : vector<1x128xf32>
    %24 = arith.mulf %21, %21 : vector<1x128xf32>
    %25 = arith.subf %23, %24 : vector<1x128xf32>
    %cst_10 = arith.constant 0.000000e+00 : f32
    %26 = vector.broadcast %cst_10 : f32 to vector<1x128xf32>
    %27 = arith.maximumf %25, %26 : vector<1x128xf32>
    %28 = vector.broadcast %21 : vector<1x128xf32> to vector<32x128xf32>
    %29 = arith.subf %2, %28 : vector<32x128xf32>
    %cst_11 = arith.constant 9.99999974E-6 : f32
    %30 = vector.broadcast %cst_11 : f32 to vector<1x128xf32>
    %31 = arith.addf %27, %30 : vector<1x128xf32>
    %32 = math.rsqrt %31 : vector<1x128xf32>
    %33 = vector.broadcast %32 : vector<1x128xf32> to vector<32x128xf32>
    %34 = arith.mulf %29, %33 : vector<32x128xf32>
    %cst_12 = arith.constant 0.000000e+00 : f32
    %35 = vector.broadcast %cst_12 : f32 to vector<32x128xf32>
    %36 = arith.maximumf %34, %35 : vector<32x128xf32>
    %37 = arith.truncf %36 : vector<32x128xf32> to vector<32x128xbf16>
    %c0_13 = arith.constant 0 : index
    %c0_14 = arith.constant 0 : index
    %38 = vector.load %arg3[%c0_13, %c0_14] : memref<32x128xbf16, #tpu.memory_space<vmem>>, vector<32x128xbf16>
    tpu.vector_store %arg3[%c0_13, %c0_14], %37 {strides = array<i32>} : memref<32x128xbf16, #tpu.memory_space<vmem>>, vector<32x128xbf16>,
    return
  }
  func.func @transform_0(%arg0: i32) -> (i32, i32) {
    %c0_i32 = arith.constant 0 : i32
    %c0_i32_0 = arith.constant 0 : i32
    %c0_i32_1 = arith.constant 0 : i32
    return %c0_i32, %c0_i32_0 : i32, i32
  }
  func.func @transform_1(%arg0: i32) -> (i32, i32) {
    %c0_i32 = arith.constant 0 : i32
    %c0_i32_0 = arith.constant 0 : i32
    %c0_i32_1 = arith.constant 0 : i32
    return %c0_i32, %c0_i32_0 : i32, i32
  }
  func.func @transform_2(%arg0: i32) -> (i32, i32) {
    %c0_i32 = arith.constant 0 : i32
    %c0_i32_0 = arith.constant 0 : i32
    %c0_i32_1 = arith.constant 0 : i32
    return %c0_i32, %c0_i32_0 : i32, i32
  }
}

module attributes {stable_mosaic.version = 11 : i64} {
  func.func @_fused_gemm_kernel(%arg0: i32, %arg1: memref<128x288xbf16, #tpu.memory_space<vmem>>, %arg2: memref<288x128xbf16, #tpu.memory_space<vmem>>, %arg3: memref<128x128xbf16, #tpu.memory_space<vmem>>) attributes {dimension_semantics = [#tpu.dimension_semantics<arbitrary>], iteration_bounds = array<i64: 1>, scalar_prefetch = 0 : i64, scratch_operands = 0 : i64, tpu.core_type = #tpu.core_type<tc>, window_params = [{pipeline_mode = #tpu.pipeline_mode<synchronous>, transform_indices = @transform_0, window_bounds = array<i64: 128, 288>}, {pipeline_mode = #tpu.pipeline_mode<synchronous>, transform_indices = @transform_1, window_bounds = array<i64: 288, 128>}, {pipeline_mode = #tpu.pipeline_mode<synchronous>, transform_indices = @transform_2, window_bounds = array<i64: 128, 128>}]} {
    %c0 = arith.constant 0 : index
    %c0_0 = arith.constant 0 : index
    %0 = vector.load %arg1[%c0, %c0_0] : memref<128x288xbf16, #tpu.memory_space<vmem>>, vector<128x288xbf16>
    %c0_1 = arith.constant 0 : index
    %c0_2 = arith.constant 0 : index
    %1 = vector.load %arg2[%c0_1, %c0_2] : memref<288x128xbf16, #tpu.memory_space<vmem>>, vector<288x128xbf16>
    %cst = arith.constant dense<0.000000e+00> : vector<128x128xf32>
    %2 = tpu.matmul %0, %1, %cst {dimension_numbers = #tpu.dot_dimension_numbers<[1], [0], [0], [1], [0, 0, 1, 1], [], []>} : vector<128x288xbf16>, vector<288x128xbf16>, vector<128x128xf32> -> vector<128x128xf32>
    %cst_3 = arith.constant dense<0.000000e+00> : vector<128xf32>
    %3 = vector.multi_reduction <add>, %2, %cst_3 [0] : vector<128x128xf32> to vector<128xf32>
    %4 = vector.shape_cast %3 : vector<128xf32> to vector<1x128xf32>
    %5 = arith.mulf %2, %2 : vector<128x128xf32>
    %cst_4 = arith.constant dense<0.000000e+00> : vector<128xf32>
    %6 = vector.multi_reduction <add>, %5, %cst_4 [0] : vector<128x128xf32> to vector<128xf32>
    %7 = vector.shape_cast %6 : vector<128xf32> to vector<1x128xf32>
    %c32_i32 = arith.constant 32 : i32
    %8 = tpu.dynamic_rotate %4 by %c32_i32 dim 1 : vector<1x128xf32>, i32 -> vector<1x128xf32>
    %9 = arith.addf %4, %8 : vector<1x128xf32>
    %c32_i32_5 = arith.constant 32 : i32
    %10 = tpu.dynamic_rotate %7 by %c32_i32_5 dim 1 : vector<1x128xf32>, i32 -> vector<1x128xf32>
    %11 = arith.addf %7, %10 : vector<1x128xf32>
    %c64_i32 = arith.constant 64 : i32
    %12 = tpu.dynamic_rotate %4 by %c64_i32 dim 1 : vector<1x128xf32>, i32 -> vector<1x128xf32>
    %13 = arith.addf %9, %12 : vector<1x128xf32>
    %c64_i32_6 = arith.constant 64 : i32
    %14 = tpu.dynamic_rotate %7 by %c64_i32_6 dim 1 : vector<1x128xf32>, i32 -> vector<1x128xf32>
    %15 = arith.addf %11, %14 : vector<1x128xf32>
    %c96_i32 = arith.constant 96 : i32
    %16 = tpu.dynamic_rotate %4 by %c96_i32 dim 1 : vector<1x128xf32>, i32 -> vector<1x128xf32>
    %17 = arith.addf %13, %16 : vector<1x128xf32>
    %c96_i32_7 = arith.constant 96 : i32
    %18 = tpu.dynamic_rotate %7 by %c96_i32_7 dim 1 : vector<1x128xf32>, i32 -> vector<1x128xf32>
    %19 = arith.addf %15, %18 : vector<1x128xf32>
    %cst_8 = arith.constant 5.120000e+02 : f32
    %20 = vector.broadcast %cst_8 : f32 to vector<1x128xf32>
    %21 = arith.divf %17, %20 : vector<1x128xf32>
    %cst_9 = arith.constant 5.120000e+02 : f32
    %22 = vector.broadcast %cst_9 : f32 to vector<1x128xf32>
    %23 = arith.divf %19, %22 : vector<1x128xf32>
    %24 = arith.mulf %21, %21 : vector<1x128xf32>
    %25 = arith.subf %23, %24 : vector<1x128xf32>
    %cst_10 = arith.constant 0.000000e+00 : f32
    %26 = vector.broadcast %cst_10 : f32 to vector<1x128xf32>
    %27 = arith.maximumf %25, %26 : vector<1x128xf32>
    %28 = vector.broadcast %21 : vector<1x128xf32> to vector<128x128xf32>
    %29 = arith.subf %2, %28 : vector<128x128xf32>
    %cst_11 = arith.constant 9.99999974E-6 : f32
    %30 = vector.broadcast %cst_11 : f32 to vector<1x128xf32>
    %31 = arith.addf %27, %30 : vector<1x128xf32>
    %32 = math.rsqrt %31 : vector<1x128xf32>
    %33 = vector.broadcast %32 : vector<1x128xf32> to vector<128x128xf32>
    %34 = arith.mulf %29, %33 : vector<128x128xf32>
    %cst_12 = arith.constant 0.000000e+00 : f32
    %35 = vector.broadcast %cst_12 : f32 to vector<128x128xf32>
    %36 = arith.maximumf %34, %35 : vector<128x128xf32>
    %37 = arith.truncf %36 : vector<128x128xf32> to vector<128x128xbf16>
    %c0_13 = arith.constant 0 : index
    %c0_14 = arith.constant 0 : index
    %38 = vector.load %arg3[%c0_13, %c0_14] : memref<128x128xbf16, #tpu.memory_space<vmem>>, vector<128x128xbf16>
    tpu.vector_store %arg3[%c0_13, %c0_14], %37 {strides = array<i32>} : memref<128x128xbf16, #tpu.memory_space<vmem>>, vector<128x128xbf16>,
    return
  }
  func.func @transform_0(%arg0: i32) -> (i32, i32) {
    %c0_i32 = arith.constant 0 : i32
    %c0_i32_0 = arith.constant 0 : i32
    %c0_i32_1 = arith.constant 0 : i32
    return %c0_i32, %c0_i32_0 : i32, i32
  }
  func.func @transform_1(%arg0: i32) -> (i32, i32) {
    %c0_i32 = arith.constant 0 : i32
    %c0_i32_0 = arith.constant 0 : i32
    %c0_i32_1 = arith.constant 0 : i32
    return %c0_i32, %c0_i32_0 : i32, i32
  }
  func.func @transform_2(%arg0: i32) -> (i32, i32) {
    %c0_i32 = arith.constant 0 : i32
    %c0_i32_0 = arith.constant 0 : i32
    %c0_i32_1 = arith.constant 0 : i32
    return %c0_i32, %c0_i32_0 : i32, i32
  }
}

module attributes {stable_mosaic.version = 11 : i64} {
  func.func @_fused_gemm_kernel(%arg0: i32, %arg1: memref<512x144xbf16, #tpu.memory_space<vmem>>, %arg2: memref<144x128xbf16, #tpu.memory_space<vmem>>, %arg3: memref<512x128xbf16, #tpu.memory_space<vmem>>) attributes {dimension_semantics = [#tpu.dimension_semantics<arbitrary>], iteration_bounds = array<i64: 1>, scalar_prefetch = 0 : i64, scratch_operands = 0 : i64, tpu.core_type = #tpu.core_type<tc>, window_params = [{pipeline_mode = #tpu.pipeline_mode<synchronous>, transform_indices = @transform_0, window_bounds = array<i64: 512, 144>}, {pipeline_mode = #tpu.pipeline_mode<synchronous>, transform_indices = @transform_1, window_bounds = array<i64: 144, 128>}, {pipeline_mode = #tpu.pipeline_mode<synchronous>, transform_indices = @transform_2, window_bounds = array<i64: 512, 128>}]} {
    %c0 = arith.constant 0 : index
    %c0_0 = arith.constant 0 : index
    %0 = vector.load %arg1[%c0, %c0_0] : memref<512x144xbf16, #tpu.memory_space<vmem>>, vector<512x144xbf16>
    %c0_1 = arith.constant 0 : index
    %c0_2 = arith.constant 0 : index
    %1 = vector.load %arg2[%c0_1, %c0_2] : memref<144x128xbf16, #tpu.memory_space<vmem>>, vector<144x128xbf16>
    %cst = arith.constant dense<0.000000e+00> : vector<512x128xf32>
    %2 = tpu.matmul %0, %1, %cst {dimension_numbers = #tpu.dot_dimension_numbers<[1], [0], [0], [1], [0, 0, 1, 1], [], []>} : vector<512x144xbf16>, vector<144x128xbf16>, vector<512x128xf32> -> vector<512x128xf32>
    %cst_3 = arith.constant dense<0.000000e+00> : vector<128xf32>
    %3 = vector.multi_reduction <add>, %2, %cst_3 [0] : vector<512x128xf32> to vector<128xf32>
    %4 = vector.shape_cast %3 : vector<128xf32> to vector<1x128xf32>
    %5 = arith.mulf %2, %2 : vector<512x128xf32>
    %cst_4 = arith.constant dense<0.000000e+00> : vector<128xf32>
    %6 = vector.multi_reduction <add>, %5, %cst_4 [0] : vector<512x128xf32> to vector<128xf32>
    %7 = vector.shape_cast %6 : vector<128xf32> to vector<1x128xf32>
    %c32_i32 = arith.constant 32 : i32
    %8 = tpu.dynamic_rotate %4 by %c32_i32 dim 1 : vector<1x128xf32>, i32 -> vector<1x128xf32>
    %9 = arith.addf %4, %8 : vector<1x128xf32>
    %c32_i32_5 = arith.constant 32 : i32
    %10 = tpu.dynamic_rotate %7 by %c32_i32_5 dim 1 : vector<1x128xf32>, i32 -> vector<1x128xf32>
    %11 = arith.addf %7, %10 : vector<1x128xf32>
    %c64_i32 = arith.constant 64 : i32
    %12 = tpu.dynamic_rotate %4 by %c64_i32 dim 1 : vector<1x128xf32>, i32 -> vector<1x128xf32>
    %13 = arith.addf %9, %12 : vector<1x128xf32>
    %c64_i32_6 = arith.constant 64 : i32
    %14 = tpu.dynamic_rotate %7 by %c64_i32_6 dim 1 : vector<1x128xf32>, i32 -> vector<1x128xf32>
    %15 = arith.addf %11, %14 : vector<1x128xf32>
    %c96_i32 = arith.constant 96 : i32
    %16 = tpu.dynamic_rotate %4 by %c96_i32 dim 1 : vector<1x128xf32>, i32 -> vector<1x128xf32>
    %17 = arith.addf %13, %16 : vector<1x128xf32>
    %c96_i32_7 = arith.constant 96 : i32
    %18 = tpu.dynamic_rotate %7 by %c96_i32_7 dim 1 : vector<1x128xf32>, i32 -> vector<1x128xf32>
    %19 = arith.addf %15, %18 : vector<1x128xf32>
    %cst_8 = arith.constant 2.048000e+03 : f32
    %20 = vector.broadcast %cst_8 : f32 to vector<1x128xf32>
    %21 = arith.divf %17, %20 : vector<1x128xf32>
    %cst_9 = arith.constant 2.048000e+03 : f32
    %22 = vector.broadcast %cst_9 : f32 to vector<1x128xf32>
    %23 = arith.divf %19, %22 : vector<1x128xf32>
    %24 = arith.mulf %21, %21 : vector<1x128xf32>
    %25 = arith.subf %23, %24 : vector<1x128xf32>
    %cst_10 = arith.constant 0.000000e+00 : f32
    %26 = vector.broadcast %cst_10 : f32 to vector<1x128xf32>
    %27 = arith.maximumf %25, %26 : vector<1x128xf32>
    %28 = vector.broadcast %21 : vector<1x128xf32> to vector<512x128xf32>
    %29 = arith.subf %2, %28 : vector<512x128xf32>
    %cst_11 = arith.constant 9.99999974E-6 : f32
    %30 = vector.broadcast %cst_11 : f32 to vector<1x128xf32>
    %31 = arith.addf %27, %30 : vector<1x128xf32>
    %32 = math.rsqrt %31 : vector<1x128xf32>
    %33 = vector.broadcast %32 : vector<1x128xf32> to vector<512x128xf32>
    %34 = arith.mulf %29, %33 : vector<512x128xf32>
    %cst_12 = arith.constant 0.000000e+00 : f32
    %35 = vector.broadcast %cst_12 : f32 to vector<512x128xf32>
    %36 = arith.maximumf %34, %35 : vector<512x128xf32>
    %37 = arith.truncf %36 : vector<512x128xf32> to vector<512x128xbf16>
    %c0_13 = arith.constant 0 : index
    %c0_14 = arith.constant 0 : index
    %38 = vector.load %arg3[%c0_13, %c0_14] : memref<512x128xbf16, #tpu.memory_space<vmem>>, vector<512x128xbf16>
    tpu.vector_store %arg3[%c0_13, %c0_14], %37 {strides = array<i32>} : memref<512x128xbf16, #tpu.memory_space<vmem>>, vector<512x128xbf16>,
    return
  }
  func.func @transform_0(%arg0: i32) -> (i32, i32) {
    %c0_i32 = arith.constant 0 : i32
    %c0_i32_0 = arith.constant 0 : i32
    %c0_i32_1 = arith.constant 0 : i32
    return %c0_i32, %c0_i32_0 : i32, i32
  }
  func.func @transform_1(%arg0: i32) -> (i32, i32) {
    %c0_i32 = arith.constant 0 : i32
    %c0_i32_0 = arith.constant 0 : i32
    %c0_i32_1 = arith.constant 0 : i32
    return %c0_i32, %c0_i32_0 : i32, i32
  }
  func.func @transform_2(%arg0: i32) -> (i32, i32) {
    %c0_i32 = arith.constant 0 : i32
    %c0_i32_0 = arith.constant 0 : i32
    %c0_i32_1 = arith.constant 0 : i32
    return %c0_i32, %c0_i32_0 : i32, i32
  }
}

module attributes {stable_mosaic.version = 11 : i64} {
  func.func @_fused_gemm_kernel(%arg0: i32, %arg1: memref<2048x72xbf16, #tpu.memory_space<vmem>>, %arg2: memref<72x128xbf16, #tpu.memory_space<vmem>>, %arg3: memref<2048x128xf32, #tpu.memory_space<vmem>>) attributes {dimension_semantics = [#tpu.dimension_semantics<arbitrary>], iteration_bounds = array<i64: 1>, scalar_prefetch = 0 : i64, scratch_operands = 0 : i64, tpu.core_type = #tpu.core_type<tc>, window_params = [{pipeline_mode = #tpu.pipeline_mode<synchronous>, transform_indices = @transform_0, window_bounds = array<i64: 2048, 72>}, {pipeline_mode = #tpu.pipeline_mode<synchronous>, transform_indices = @transform_1, window_bounds = array<i64: 72, 128>}, {pipeline_mode = #tpu.pipeline_mode<synchronous>, transform_indices = @transform_2, window_bounds = array<i64: 2048, 128>}]} {
    %c0 = arith.constant 0 : index
    %c0_0 = arith.constant 0 : index
    %0 = vector.load %arg1[%c0, %c0_0] : memref<2048x72xbf16, #tpu.memory_space<vmem>>, vector<2048x72xbf16>
    %c0_1 = arith.constant 0 : index
    %c0_2 = arith.constant 0 : index
    %1 = vector.load %arg2[%c0_1, %c0_2] : memref<72x128xbf16, #tpu.memory_space<vmem>>, vector<72x128xbf16>
    %cst = arith.constant dense<0.000000e+00> : vector<2048x128xf32>
    %2 = tpu.matmul %0, %1, %cst {dimension_numbers = #tpu.dot_dimension_numbers<[1], [0], [0], [1], [0, 0, 1, 1], [], []>} : vector<2048x72xbf16>, vector<72x128xbf16>, vector<2048x128xf32> -> vector<2048x128xf32>
    %3 = math.tanh %2 : vector<2048x128xf32>
    %c0_3 = arith.constant 0 : index
    %c0_4 = arith.constant 0 : index
    %4 = vector.load %arg3[%c0_3, %c0_4] : memref<2048x128xf32, #tpu.memory_space<vmem>>, vector<2048x128xf32>
    tpu.vector_store %arg3[%c0_3, %c0_4], %3 {strides = array<i32>} : memref<2048x128xf32, #tpu.memory_space<vmem>>, vector<2048x128xf32>,
    return
  }
  func.func @transform_0(%arg0: i32) -> (i32, i32) {
    %c0_i32 = arith.constant 0 : i32
    %c0_i32_0 = arith.constant 0 : i32
    %c0_i32_1 = arith.constant 0 : i32
    return %c0_i32, %c0_i32_0 : i32, i32
  }
  func.func @transform_1(%arg0: i32) -> (i32, i32) {
    %c0_i32 = arith.constant 0 : i32
    %c0_i32_0 = arith.constant 0 : i32
    %c0_i32_1 = arith.constant 0 : i32
    return %c0_i32, %c0_i32_0 : i32, i32
  }
  func.func @transform_2(%arg0: i32) -> (i32, i32) {
    %c0_i32 = arith.constant 0 : i32
    %c0_i32_0 = arith.constant 0 : i32
    %c0_i32_1 = arith.constant 0 : i32
    return %c0_i32, %c0_i32_0 : i32, i32
  }
}

</mosaic_0001>

<bundles_post_ra>
// kernel: generator_forward.5
= control target key start
LH: loop header
LB: loop body
LE: loop exit
PB: predicated region body
PF: predicated region fallthrough
CT: control target
= control target key end

     0   :  { %v402_v30 = vmov 32.0   ;;  %s496_s1 = inlined_call_operand.vmem [shape: bf16[256,128], index: 1, kind: input, shape index: {}]   ;;  %s497_s0 = inlined_call_operand.vmem [shape: bf16[32,256], index: 0, kind: input, shape index: {}]   ;;  %s498_s2 = inlined_call_operand.vmem [shape: bf16[32,128], index: 2, kind: output, shape index: {}]  }
   0x1   :  { %v361_v0 = vld [vmem:[%s496_s1 + $0x38] sm:$0xff]  ;;  %v360_v2 = vld [vmem:[%s496_s1 + $0x30] sm:$0xff]  ;;  %v359_v4 = vld [vmem:[%s496_s1 + $0x28] sm:$0xff]  ;;  %398 = vrcp.f32 %v402_v30 }
   0x2   :  { %v369_v1 = vld [vmem:[%s496_s1 + $0x78] sm:$0xff]  ;;  %163 = vmatpush.bf16.msra.mxu0 %v361_v0  ;;  %381 = vmatpush.bf16.msra.mxu2 %v361_v0  ;;  %v368_v3 = vld [vmem:[%s496_s1 + $0x70] sm:$0xff]  ;;  %v367_v5 = vld [vmem:[%s496_s1 + $0x68] sm:$0xff] }
   0x3   :  { %182 = vmatpush.bf16.msra.mxu1 %v369_v1  ;;  %389 = vmatpush.bf16.msra.mxu3 %v369_v1  ;;  %v358_v6 = vld [vmem:[%s496_s1 + $0x20] sm:$0xff]  ;;  %v357_v8 = vld [vmem:[%s496_s1 + $0x18] sm:$0xff]  ;;  %v356_v10 = vld [vmem:[%s496_s1 + $0x10] sm:$0xff] }
   0x4   :  { %v366_v7 = vld [vmem:[%s496_s1 + $0x60] sm:$0xff]  ;;  %v365_v9 = vld [vmem:[%s496_s1 + $0x58] sm:$0xff]  ;;  %v364_v11 = vld [vmem:[%s496_s1 + $0x50] sm:$0xff] }
   0x5   :  { %v355_v12 = vld [vmem:[%s496_s1 + $0x8] sm:$0xff]  ;;  %v354_v14 = vld [vmem:[%s496_s1] sm:$0xff]  ;;  %v280_v18 = vld [vmem:[%s497_s0 + $0x10] sm:$0xf] }
   0x6   :  { %164 = vmatpush.bf16.msra.mxu0 %v360_v2  ;;  %382 = vmatpush.bf16.msra.mxu2 %v360_v2  ;;  %v363_v13 = vld [vmem:[%s496_s1 + $0x48] sm:$0xff]  ;;  %v362_v15 = vld [vmem:[%s496_s1 + $0x40] sm:$0xff]  ;;  %v353_v19 = vld [vmem:[%s497_s0 + $0x14] sm:$0xf0] }
   0x7   :  { %183 = vmatpush.bf16.msra.mxu1 %v368_v3  ;;  %390 = vmatpush.bf16.msra.mxu3 %v368_v3  ;;  %v272_v16 = vld [vmem:[%s497_s0] sm:$0xf]  ;;  %v351_v17 = vld [vmem:[%s497_s0 + $0x4] sm:$0xf0]  ;;  %v350_v20 = vld [vmem:[%s497_s0 + $0x4] sm:$0xf]  ;;  %v281_v25 = vor.u32 %v353_v19, %v280_v18  ;;  %v399_v36 = vpop.eup %398 }
   0x8   :  { %v274_v21 = vld [vmem:[%s497_s0 + $0x8] sm:$0xf0]  ;;  %v352_v22 = vld [vmem:[%s497_s0 + $0x14] sm:$0xf]  ;;  %v282_v23 = vld [vmem:[%s497_s0 + $0x18] sm:$0xf0]  ;;  %v273_v24 = vor.u32 %v351_v17, %v272_v16  ;;  %vm228_vm0 = vweird.f32 %v399_v36 }
   0x9   :  { %v277_v26 = vor.u32 %v350_v20, %v274_v21  ;;  %v285_v27 = vor.u32 %v352_v22, %v282_v23  ;;  %v224_v42 = vmul.f32 32.0, %v399_v36 }
   0xa   :  { %165 = vmatpush.bf16.msra.mxu0 %v359_v4  ;;  %383 = vmatpush.bf16.msra.mxu2 %v359_v4 }
   0xb   :  { %184 = vmatpush.bf16.msra.mxu1 %v367_v5  ;;  %391 = vmatpush.bf16.msra.mxu3 %v367_v5  ;;  %v225_v49 = vsub.f32 1.0, %v224_v42 }
   0xd   :  { %v226_v55 = vmul.f32 %v399_v36, %v225_v49 }
   0xe   :  { %166 = vmatpush.bf16.msra.mxu0 %v358_v6  ;;  %384 = vmatpush.bf16.msra.mxu2 %v358_v6 }
   0xf   :  { %185 = vmatpush.bf16.msra.mxu1 %v366_v7  ;;  %392 = vmatpush.bf16.msra.mxu3 %v366_v7  ;;  %v227_v60 = vadd.f32 %v399_v36, %v226_v55 }
  0x11   :  { %v229_v1 = vsel %vm228_vm0, %v399_v36, %v227_v60 }
  0x12   :  { %167 = vmatpush.bf16.msra.mxu0 %v357_v8  ;;  %385 = vmatpush.bf16.msra.mxu2 %v357_v8 }
  0x13   :  { %186 = vmatpush.bf16.msra.mxu1 %v365_v9  ;;  %393 = vmatpush.bf16.msra.mxu3 %v365_v9 }
  0x16   :  { %168 = vmatpush.bf16.msra.mxu0 %v356_v10  ;;  %386 = vmatpush.bf16.msra.mxu2 %v356_v10 }
  0x17   :  { %187 = vmatpush.bf16.msra.mxu1 %v364_v11  ;;  %394 = vmatpush.bf16.msra.mxu3 %v364_v11 }
  0x1a   :  { %169 = vmatpush.bf16.msra.mxu0 %v355_v12  ;;  %387 = vmatpush.bf16.msra.mxu2 %v355_v12 }
  0x1b   :  { %188 = vmatpush.bf16.msra.mxu1 %v363_v13  ;;  %395 = vmatpush.bf16.msra.mxu3 %v363_v13 }
  0x1e   :  { %170 = vmatpush.bf16.msra.mxu0 %v354_v14  ;;  %388 = vmatpush.bf16.msra.mxu2 %v354_v14 }
  0x1f   :  { %189 = vmatpush.bf16.msra.mxu1 %v362_v15  ;;  %396 = vmatpush.bf16.msra.mxu3 %v362_v15 }
  0x21   :  { %171 = vmatmul.bf16.vlgmr.msra.gmra.mxu0 %v273_v24  ;;  %176 = vmatmul.bf16.vlgmr.msra.gmra.mxu2 %v281_v25 }
  0x22   :  { %190 = vmatmul.bf16.vlgmr.msra.gmra.mxu1 %v277_v26  ;;  %195 = vmatmul.bf16.vlgmr.msra.gmra.mxu3 %v285_v27 }
  0x9e   :  { %v172_v28 = vpop.f32.mrf.mxu0 }
  0x9f   :  { %v191_v29 = vpop.f32.mrf.mxu1 }
  0xa0   :  { %v192_v33 = vadd.f32 %v191_v29, %v172_v28 }
  0xa2   :  { %v210_v38 = vmul.f32 %v192_v33, %v192_v33 }
  0xa4   :  { %v177_v31 = vpop.f32.mrf.mxu2 }
  0xa5   :  { %v196_v32 = vpop.f32.mrf.mxu3 }
  0xa6   :  { %v174_v34 = vpop.f32.mrf.mxu0  ;;  %v197_v39 = vadd.f32 %v196_v32, %v177_v31 }
  0xa7   :  { %v193_v35 = vpop.f32.mrf.mxu1 }
  0xa8   :  { %v194_v37 = vadd.f32 %v193_v35, %v174_v34  ;;  %v212_v46 = vmul.f32 %v197_v39, %v197_v39 }
  0xaa   :  { %v201_v40 = vadd.f32 %v194_v37, %v192_v33  ;;  %v211_v41 = vmul.f32 %v194_v37, %v194_v37 }
  0xac   :  { %v214_v43 = vadd.f32 %v211_v41, %v210_v38  ;;  %v179_v44 = vpop.f32.mrf.mxu2  ;;  %v202_v48 = vadd.f32 %v201_v40, %v197_v39 }
  0xad   :  { %v198_v45 = vpop.f32.mrf.mxu3 }
  0xae   :  { %v199_v47 = vadd.f32 %v198_v45, %v179_v44  ;;  %v215_v52 = vadd.f32 %v214_v43, %v212_v46 }
  0xb0   :  { %v203_v50 = vadd.f32 %v202_v48, %v199_v47  ;;  %v213_v51 = vmul.f32 %v199_v47, %v199_v47 }
  0xb2   :  { %v204_v53 = vrot.slane %v203_v50, 4  ;;  %v216_v54 = vadd.f32 %v215_v52, %v213_v51 }
  0xb4   :  { %v205_v56 = vadd.f32 %v204_v53, %v203_v50  ;;  %v217_v57 = vrot.slane %v216_v54, 4 }
  0xb6   :  { %v206_v58 = vrot.slane %v205_v56, 2  ;;  %v218_v59 = vadd.f32 %v217_v57, %v216_v54 }
  0xb8   :  { %v207_v61 = vadd.f32 %v206_v58, %v205_v56  ;;  %v219_v62 = vrot.slane %v218_v59, 2 }
  0xba   :  { %v208_v63 = vrot.slane %v207_v61, 1  ;;  %v220_v0 = vadd.f32 %v219_v62, %v218_v59 }
  0xbc   :  { %v209_v2 = vadd.f32 %v208_v63, %v207_v61  ;;  %v221_v3 = vrot.slane %v220_v0, 1 }
  0xbe   :  { %v222_v4 = vadd.f32 %v221_v3, %v220_v0  ;;  %v230_v5 = vmul.f32 %v229_v1, %v209_v2 }
  0xc0   :  { %v231_v6 = vmul.f32 %v229_v1, %v222_v4  ;;  %v232_v7 = vmul.f32 %v230_v5, %v230_v5  ;;  %v235_v17 = vsub.f32 %v192_v33, %v230_v5  ;;  %v236_v18 = vsub.f32 %v194_v37, %v230_v5 }
  0xc1   :  { %v237_v19 = vsub.f32 %v197_v39, %v230_v5  ;;  %v238_v20 = vsub.f32 %v199_v47, %v230_v5 }
  0xc2   :  { %v233_v8 = vsub.f32 %v231_v6, %v232_v7 }
  0xc4   :  { %v234_v9 = vmax.f32 %v233_v8, 0.0 }
  0xc6   :  { %v239_v10 = vadd.f32 1e-05, %v234_v9 }
  0xc8   :  { %400 = vrsqrt.f32 %v239_v10  ;;  %vm246_vm2 = vweird.f32 %v239_v10 }
  0xce   :  { %v401_v11 = vpop.eup %400 }
  0xcf   :  { %v241_v12 = vmul.f32 %v401_v11, %v239_v10  ;;  %vm247_vm1 = vweird.f32 %v401_v11 }
  0xd0   :  { %vm248_vm3 = vmor %vm246_vm2, %vm247_vm1 }
  0xd1   :  { %v242_v13 = vmul.f32 %v401_v11, %v241_v12 }
  0xd3   :  { %v243_v14 = vmul.f32 0.5, %v242_v13 }
  0xd5   :  { %v244_v15 = vsub.f32 1.5, %v243_v14 }
  0xd7   :  { %v245_v16 = vmul.f32 %v401_v11, %v244_v15 }
  0xd9   :  { %v249_v21 = vsel %vm248_vm3, %v401_v11, %v245_v16 }
  0xda   :  { %v250_v22 = vmul.f32 %v249_v21, %v235_v17  ;;  %v251_v23 = vmul.f32 %v249_v21, %v236_v18  ;;  %v252_v24 = vmul.f32 %v249_v21, %v237_v19  ;;  %v253_v25 = vmul.f32 %v249_v21, %v238_v20 }
  0xdc   :  { %v254_v26 = vmax.f32 %v250_v22, 0.0  ;;  %v255_v27 = vmax.f32 %v251_v23, 0.0  ;;  %v256_v28 = vmax.f32 %v252_v24, 0.0  ;;  %v257_v29 = vmax.f32 %v253_v25, 0.0 }
  0xde   :  { %v373_v30 = vpack.c.bf16 %v255_v27, %v254_v26  ;;  %v378_v31 = vpack.c.bf16 %v257_v29, %v256_v28 }
  0xe0   :  { %374 = vst [vmem:[%s498_s2] sm:$0xff] %v373_v30  }
  0xe1   :  { %380 = vst [vmem:[%s498_s2 + $0x8] sm:$0xff] %v378_v31  }

// kernel: generator_forward.6
= control target key start
LH: loop header
LB: loop body
LE: loop exit
PB: predicated region body
PF: predicated region fallthrough
CT: control target
= control target key end

     0   :  { %vm362_vm0 = vcmask 523264   ;;  %s809_s8 = smov 64   ;;  %s810_s9 = smov 32   ;;  %s1025_s1 = inlined_call_operand.vmem [shape: bf16[576,128], index: 1, kind: input, shape index: {}]   ;;  %s1026_s0 = inlined_call_operand.vmem [shape: bf16[32,576], index: 0, kind: input, shape index: {}]   ;;  %s1027_s2 = inlined_call_operand.vmem [shape: bf16[32,128], index: 2, kind: output, shape index: {}]  }
   0x1   :  { %v756_v0 = vld [vmem:[%s1025_s1 + $0x38] sm:$0xff]  ;;  %v755_v4 = vld [vmem:[%s1025_s1 + $0x30] sm:$0xff]  ;;  %v754_v8 = vld [vmem:[%s1025_s1 + $0x28] sm:$0xff] }
   0x2   :  { %v764_v1 = vld [vmem:[%s1025_s1 + $0x78] sm:$0xff]  ;;  %369 = vmatpush.bf16.msra.mxu0 %v756_v0  ;;  %v763_v5 = vld [vmem:[%s1025_s1 + $0x70] sm:$0xff]  ;;  %v762_v9 = vld [vmem:[%s1025_s1 + $0x68] sm:$0xff] }
   0x3   :  { %v772_v2 = vld [vmem:[%s1025_s1 + $0xb8] sm:$0xff]  ;;  %388 = vmatpush.bf16.msra.mxu1 %v764_v1  ;;  %v771_v6 = vld [vmem:[%s1025_s1 + $0xb0] sm:$0xff]  ;;  %v770_v10 = vld [vmem:[%s1025_s1 + $0xa8] sm:$0xff] }
   0x4   :  { %v780_v3 = vld [vmem:[%s1025_s1 + $0xf8] sm:$0xff]  ;;  %407 = vmatpush.bf16.msra.mxu2 %v772_v2  ;;  %v779_v7 = vld [vmem:[%s1025_s1 + $0xf0] sm:$0xff]  ;;  %v778_v11 = vld [vmem:[%s1025_s1 + $0xe8] sm:$0xff] }
   0x5   :  { %426 = vmatpush.bf16.msra.mxu3 %v780_v3  ;;  %v753_v12 = vld [vmem:[%s1025_s1 + $0x20] sm:$0xff]  ;;  %v752_v16 = vld [vmem:[%s1025_s1 + $0x18] sm:$0xff]  ;;  %v751_v20 = vld [vmem:[%s1025_s1 + $0x10] sm:$0xff] }
   0x6   :  { %370 = vmatpush.bf16.msra.mxu0 %v755_v4  ;;  %v761_v13 = vld [vmem:[%s1025_s1 + $0x60] sm:$0xff]  ;;  %v760_v17 = vld [vmem:[%s1025_s1 + $0x58] sm:$0xff]  ;;  %v759_v21 = vld [vmem:[%s1025_s1 + $0x50] sm:$0xff] }
   0x7   :  { %389 = vmatpush.bf16.msra.mxu1 %v763_v5  ;;  %v769_v14 = vld [vmem:[%s1025_s1 + $0xa0] sm:$0xff]  ;;  %v768_v18 = vld [vmem:[%s1025_s1 + $0x98] sm:$0xff]  ;;  %v767_v22 = vld [vmem:[%s1025_s1 + $0x90] sm:$0xff] }
   0x8   :  { %408 = vmatpush.bf16.msra.mxu2 %v771_v6  ;;  %v777_v15 = vld [vmem:[%s1025_s1 + $0xe0] sm:$0xff]  ;;  %v776_v19 = vld [vmem:[%s1025_s1 + $0xd8] sm:$0xff]  ;;  %v775_v23 = vld [vmem:[%s1025_s1 + $0xd0] sm:$0xff] }
   0x9   :  { %427 = vmatpush.bf16.msra.mxu3 %v779_v7  ;;  %v750_v24 = vld [vmem:[%s1025_s1 + $0x8] sm:$0xff]  ;;  %v749_v28 = vld [vmem:[%s1025_s1] sm:$0xff]  ;;  %v741_v33 = vld [vmem:[%s1026_s0 + $0x10] sm:$0xf0] }
   0xa   :  { %371 = vmatpush.bf16.msra.mxu0 %v754_v8  ;;  %v758_v25 = vld [vmem:[%s1025_s1 + $0x48] sm:$0xff]  ;;  %v757_v29 = vld [vmem:[%s1025_s1 + $0x40] sm:$0xff]  ;;  %v557_v35 = vld [vmem:[%s1026_s0 + $0x14] sm:$0xf0] }
   0xb   :  { %390 = vmatpush.bf16.msra.mxu1 %v762_v9  ;;  %v766_v26 = vld [vmem:[%s1025_s1 + $0x88] sm:$0xff]  ;;  %v765_v30 = vld [vmem:[%s1025_s1 + $0x80] sm:$0xff]  ;;  %v742_v37 = vld [vmem:[%s1026_s0 + $0x18] sm:$0xf0] }
   0xc   :  { %409 = vmatpush.bf16.msra.mxu2 %v770_v10  ;;  %v774_v27 = vld [vmem:[%s1025_s1 + $0xc8] sm:$0xff]  ;;  %v773_v31 = vld [vmem:[%s1025_s1 + $0xc0] sm:$0xff]  ;;  %v784_v40 = vld [vmem:[%s1025_s1 + $0x118] sm:$0xff] }
   0xd   :  { %428 = vmatpush.bf16.msra.mxu3 %v778_v11  ;;  %v555_v32 = vld [vmem:[%s1026_s0] sm:$0xf]  ;;  %v739_v34 = vld [vmem:[%s1026_s0 + $0x4] sm:$0xf]  ;;  %v563_v36 = vld [vmem:[%s1026_s0 + $0x8] sm:$0xf] }
   0xe   :  { %372 = vmatpush.bf16.msra.mxu0 %v753_v12  ;;  %v740_v38 = vld [vmem:[%s1026_s0 + $0xc] sm:$0xf]  ;;  %v565_v39 = vld [vmem:[%s1026_s0 + $0x1c] sm:$0xf0]  ;;  %v556_v41 = vor.u32 %v741_v33, %v555_v32  ;;  %v560_v42 = vor.u32 %v739_v34, %v557_v35  ;;  %v564_v43 = vor.u32 %v742_v37, %v563_v36  ;;  %v783_v45 = vld [vmem:[%s1025_s1 + $0x110] sm:$0xff] }
   0xf   :  { %391 = vmatpush.bf16.msra.mxu1 %v761_v13  ;;  %v568_v44 = vor.u32 %v740_v38, %v565_v39  ;;  %v782_v46 = vld [vmem:[%s1025_s1 + $0x108] sm:$0xff]  ;;  %v781_v47 = vld [vmem:[%s1025_s1 + $0x100] sm:$0xff]  ;;  %v746_v49 = vld [vmem:[%s1026_s0 + $0x38] sm:$0xf0] }
  0x10   :  { %410 = vmatpush.bf16.msra.mxu2 %v769_v14  ;;  %v575_v48 = vld [vmem:[%s1026_s0 + $0x28] sm:$0xf]  ;;  %v744_v50 = vld [vmem:[%s1026_s0 + $0x2c] sm:$0xf]  ;;  %v577_v51 = vld [vmem:[%s1026_s0 + $0x3c] sm:$0xf0] }
  0x11   :  { %429 = vmatpush.bf16.msra.mxu3 %v777_v15  ;;  %v583_v52 = vld [vmem:[%s1026_s0 + $0x30] sm:$0xf]  ;;  %v747_v53 = vld [vmem:[%s1026_s0 + $0x40] sm:$0xf0]  ;;  %v745_v54 = vld [vmem:[%s1026_s0 + $0x34] sm:$0xf]  ;;  %v576_v56 = vor.u32 %v746_v49, %v575_v48  ;;  %v580_v57 = vor.u32 %v744_v50, %v577_v51 }
  0x12   :  { %373 = vmatpush.bf16.msra.mxu0 %v752_v16  ;;  %v585_v55 = vld [vmem:[%s1026_s0 + $0x44] sm:$0xf0]  ;;  %v584_v58 = vor.u32 %v747_v53, %v583_v52  ;;  %v571_v60 = vld [vmem:[%s1026_s0 + $0x10] sm:$0xf]  ;;  %v743_v61 = vld [vmem:[%s1026_s0 + $0x20] sm:$0xf0] }
  0x13   :  { %392 = vmatpush.bf16.msra.mxu1 %v760_v17  ;;  %v588_v59 = vor.u32 %v745_v54, %v585_v55  ;;  %v591_v62 = vld [vmem:[%s1026_s0 + $0x38] sm:$0xf]  ;;  %v748_v63 = vld [vmem:[%s1026_s0 + $0x48] sm:$0xf0]  ;;  %v572_v0 = vor.u32 %v743_v61, %v571_v60  ;;  %s808_s0 = smov 96   ;;  %v811_v60 = vmov 128.0  }
  0x14   :  { %411 = vmatpush.bf16.msra.mxu2 %v768_v18  ;;  %v592_v1 = vor.u32 %v748_v63, %v591_v62  ;;  %804 = vrcp.f32 %v811_v60 }
  0x15   :  { %430 = vmatpush.bf16.msra.mxu3 %v776_v19 }
  0x16   :  { %374 = vmatpush.bf16.msra.mxu0 %v751_v20 }
  0x17   :  { %393 = vmatpush.bf16.msra.mxu1 %v759_v21 }
  0x18   :  { %412 = vmatpush.bf16.msra.mxu2 %v767_v22 }
  0x19   :  { %431 = vmatpush.bf16.msra.mxu3 %v775_v23 }
  0x1a   :  { %375 = vmatpush.bf16.msra.mxu0 %v750_v24  ;;  %v805_v61 = vpop.eup %804 }
  0x1b   :  { %394 = vmatpush.bf16.msra.mxu1 %v758_v25  ;;  %v505_v62 = vmul.f32 128.0, %v805_v61  ;;  %vm509_vm1 = vweird.f32 %v805_v61 }
  0x1c   :  { %413 = vmatpush.bf16.msra.mxu2 %v766_v26 }
  0x1d   :  { %432 = vmatpush.bf16.msra.mxu3 %v774_v27  ;;  %v506_v63 = vsub.f32 1.0, %v505_v62 }
  0x1e   :  { %376 = vmatpush.bf16.msra.mxu0 %v749_v28 }
  0x1f   :  { %395 = vmatpush.bf16.msra.mxu1 %v757_v29 }
  0x20   :  { %414 = vmatpush.bf16.msra.mxu2 %v765_v30 }
  0x21   :  { %433 = vmatpush.bf16.msra.mxu3 %v773_v31  ;;  %377 = vmatmul.bf16.vlgmr.msra.gmra.mxu0 %v556_v41 }
  0x22   :  { %449 = vmatpush.bf16.msrb.mxu0 %v784_v40  ;;  %396 = vmatmul.bf16.vlgmr.msra.gmra.mxu1 %v560_v42 }
  0x23   :  { %796 = vmatpush.bf16.msrb.mxu1 %v784_v40  ;;  %415 = vmatmul.bf16.vlgmr.msra.gmra.mxu2 %v564_v43 }
  0x24   :  { %434 = vmatmul.bf16.vlgmr.msra.gmra.mxu3 %v568_v44 }
  0x26   :  { %450 = vmatpush.bf16.msrb.mxu0 %v783_v45 }
  0x27   :  { %797 = vmatpush.bf16.msrb.mxu1 %v783_v45 }
  0x2a   :  { %451 = vmatpush.bf16.msrb.mxu0 %v782_v46 }
  0x2b   :  { %798 = vmatpush.bf16.msrb.mxu1 %v782_v46 }
  0x2e   :  { %452 = vmatpush.bf16.msrb.mxu0 %v781_v47 }
  0x2f   :  { %799 = vmatpush.bf16.msrb.mxu1 %v781_v47 }
  0x31   :  { %382 = vmatmul.bf16.gmra.mxu0 %v576_v56 }
  0x32   :  { %401 = vmatmul.bf16.gmra.mxu1 %v580_v57 }
  0x33   :  { %420 = vmatmul.bf16.gmra.mxu2 %v584_v58 }
  0x34   :  { %439 = vmatmul.bf16.gmra.mxu3 %v588_v59 }
  0x41   :  { %737 = vmatmul.msk.bf16.vlgmr.msrb.gmra.mxu0 %vm362_vm0, %v572_v0 }
  0x42   :  { %738 = vmatmul.msk.bf16.vlgmr.msrb.gmra.mxu1 %vm362_vm0, %v592_v1 }
  0x9e   :  { %v378_v2 = vpop.f32.mrf.mxu0 }
  0x9f   :  { %v397_v3 = vpop.f32.mrf.mxu1 }
  0xa0   :  { %v398_v16 = vadd.f32 %v397_v3, %v378_v2  ;;  %v507_v2 = vmul.f32 %v805_v61, %v506_v63 }
  0xa6   :  { %v416_v4 = vpop.f32.mrf.mxu2  ;;  %v380_v6 = vpop.f32.mrf.mxu0 }
  0xa7   :  { %v435_v5 = vpop.f32.mrf.mxu3  ;;  %v399_v7 = vpop.f32.mrf.mxu1  ;;  %v417_v19 = vadd.f32 %v416_v4, %v398_v16 }
  0xa8   :  { %v400_v20 = vadd.f32 %v399_v7, %v380_v6  ;;  %v508_v6 = vadd.f32 %v805_v61, %v507_v2 }
  0xa9   :  { %v436_v26 = vadd.f32 %v435_v5, %v417_v19 }
  0xae   :  { %v418_v8 = vpop.f32.mrf.mxu2  ;;  %v383_v9 = vpop.f32.mrf.mxu0 }
  0xaf   :  { %v402_v10 = vpop.f32.mrf.mxu1  ;;  %v437_v11 = vpop.f32.mrf.mxu3  ;;  %v419_v23 = vadd.f32 %v418_v8, %v400_v20 }
  0xb0   :  { %v403_v21 = vadd.f32 %v402_v10, %v383_v9  ;;  %v510_v9 = vsel %vm509_vm1, %v805_v61, %v508_v6 }
  0xb1   :  { %v438_v29 = vadd.f32 %v437_v11, %v419_v23 }
  0xb6   :  { %v421_v12 = vpop.f32.mrf.mxu2  ;;  %v385_v13 = vpop.f32.mrf.mxu0 }
  0xb7   :  { %v404_v14 = vpop.f32.mrf.mxu1  ;;  %v440_v15 = vpop.f32.mrf.mxu3  ;;  %v422_v24 = vadd.f32 %v421_v12, %v403_v21 }
  0xb8   :  { %v405_v25 = vadd.f32 %v404_v14, %v385_v13 }
  0xb9   :  { %v441_v30 = vadd.f32 %v440_v15, %v422_v24 }
  0xbe   :  { %v454_v17 = vpop.f32.mrf.mxu0  ;;  %v423_v22 = vpop.f32.mrf.mxu2 }
  0xbf   :  { %v459_v18 = vpop.f32.mrf.mxu1  ;;  %v424_v27 = vadd.f32 %v423_v22, %v405_v25  ;;  %v442_v28 = vpop.f32.mrf.mxu3  ;;  %v995_v31 = vadd.f32 %v454_v17, %v436_v26 }
  0xc0   :  { %v997_v35 = vadd.f32 %v459_v18, %v441_v30 }
  0xc1   :  { %v443_v34 = vadd.f32 %v442_v28, %v424_v27  ;;  %v473_v37 = vmul.f32 %v995_v31, %v995_v31 }
  0xc2   :  { %v475_v41 = vmul.f32 %v997_v35, %v997_v35 }
  0xc6   :  { %v456_v32 = vpop.f32.mrf.mxu0 }
  0xc7   :  { %v461_v33 = vpop.f32.mrf.mxu1  ;;  %v999_v36 = vadd.f32 %v456_v32, %v438_v29 }
  0xc8   :  { %v1007_v40 = vadd.f32 %v461_v33, %v443_v34 }
  0xc9   :  { %v464_v38 = vadd.f32 %v999_v36, %v995_v31  ;;  %v474_v39 = vmul.f32 %v999_v36, %v999_v36 }
  0xca   :  { %v476_v45 = vmul.f32 %v1007_v40, %v1007_v40 }
  0xcb   :  { %v477_v42 = vadd.f32 %v474_v39, %v473_v37  ;;  %v465_v43 = vadd.f32 %v464_v38, %v997_v35 }
  0xcd   :  { %v466_v44 = vadd.f32 %v465_v43, %v1007_v40  ;;  %v478_v46 = vadd.f32 %v477_v42, %v475_v41 }
  0xcf   :  { %v467_v47 = vrot.slane %v466_v44, 4  ;;  %v479_v48 = vadd.f32 %v478_v46, %v476_v45 }
  0xd1   :  { %v468_v49 = vadd.f32 %v467_v47, %v466_v44  ;;  %v480_v50 = vrot.slane %v479_v48, 4 }
  0xd3   :  { %v469_v51 = vrot.slane %v468_v49, 2  ;;  %v481_v52 = vadd.f32 %v480_v50, %v479_v48 }
  0xd5   :  { %v470_v53 = vadd.f32 %v469_v51, %v468_v49  ;;  %v482_v54 = vrot.slane %v481_v52, 2 }
  0xd7   :  { %v471_v55 = vrot.slane %v470_v53, 1  ;;  %v483_v57 = vadd.f32 %v482_v54, %v481_v52 }
  0xd9   :  { %v472_v56 = vadd.f32 %v471_v55, %v470_v53  ;;  %v484_v58 = vrot.slane %v483_v57, 1 }
  0xdb   :  { %498 = vrot.lane.b32.xlu2 %v472_v56, %s808_s0  ;;  %492 = vrot.lane.b32.xlu1 %v472_v56, %s809_s8  ;;  %v485_v59 = vadd.f32 %v484_v58, %v483_v57 }
  0xdc   :  { %486 = vrot.lane.b32.xlu0 %v472_v56, %s810_s9 }
  0xe3   :  { %501 = vrot.lane.b32.xlu2 %v485_v59, %s808_s0  ;;  %495 = vrot.lane.b32.xlu1 %v485_v59, %s809_s8 }
  0xe4   :  { %489 = vrot.lane.b32.xlu0 %v485_v59, %s810_s9 }
 0x135   :  { %v499_v4 = vpop.permute.xlu2 %498 }
 0x13d   :  { %v502_v14 = vpop.permute.xlu2 %501 }
 0x14d   :  { %v493_v1 = vpop.permute.xlu1 %492 }
 0x14e   :  { %v487_v0 = vpop.permute.xlu0 %486 }
 0x14f   :  { %v488_v3 = vadd.f32 %v487_v0, %v472_v56 }
 0x151   :  { %v494_v5 = vadd.f32 %v493_v1, %v488_v3 }
 0x153   :  { %v500_v7 = vadd.f32 %v499_v4, %v494_v5 }
 0x155   :  { %v496_v11 = vpop.permute.xlu1 %495  ;;  %v511_v12 = vmul.f32 %v510_v9, %v500_v7 }
 0x156   :  { %v490_v8 = vpop.permute.xlu0 %489 }
 0x157   :  { %v491_v10 = vadd.f32 %v490_v8, %v485_v59  ;;  %v513_v16 = vmul.f32 %v511_v12, %v511_v12  ;;  %v516_v25 = vperm.slane %v511_v12, 0 }
 0x159   :  { %v497_v13 = vadd.f32 %v496_v11, %v491_v10  ;;  %v517_v28 = vsub.f32 %v995_v31, %v516_v25  ;;  %v518_v30 = vsub.f32 %v999_v36, %v516_v25  ;;  %v519_v32 = vsub.f32 %v997_v35, %v516_v25 }
 0x15a   :  { %v520_v33 = vsub.f32 %v1007_v40, %v516_v25 }
 0x15b   :  { %v503_v15 = vadd.f32 %v502_v14, %v497_v13 }
 0x15d   :  { %v512_v17 = vmul.f32 %v510_v9, %v503_v15 }
 0x15f   :  { %v514_v18 = vsub.f32 %v512_v17, %v513_v16 }
 0x161   :  { %v515_v19 = vmax.f32 %v514_v18, 0.0 }
 0x163   :  { %v521_v20 = vadd.f32 1e-05, %v515_v19 }
 0x165   :  { %806 = vrsqrt.f32 %v521_v20  ;;  %vm528_vm3 = vweird.f32 %v521_v20 }
 0x16b   :  { %v807_v21 = vpop.eup %806 }
 0x16c   :  { %v523_v22 = vmul.f32 %v807_v21, %v521_v20  ;;  %vm529_vm2 = vweird.f32 %v807_v21 }
 0x16d   :  { %vm530_vm4 = vmor %vm528_vm3, %vm529_vm2 }
 0x16e   :  { %v524_v23 = vmul.f32 %v807_v21, %v523_v22 }
 0x170   :  { %v525_v24 = vmul.f32 0.5, %v524_v23 }
 0x172   :  { %v526_v26 = vsub.f32 1.5, %v525_v24 }
 0x174   :  { %v527_v27 = vmul.f32 %v807_v21, %v526_v26 }
 0x176   :  { %v531_v29 = vsel %vm530_vm4, %v807_v21, %v527_v27 }
 0x177   :  { %v532_v34 = vperm.slane %v531_v29, 0 }
 0x179   :  { %v533_v37 = vmul.f32 %v532_v34, %v517_v28  ;;  %v534_v38 = vmul.f32 %v532_v34, %v518_v30  ;;  %v535_v39 = vmul.f32 %v532_v34, %v519_v32  ;;  %v536_v41 = vmul.f32 %v532_v34, %v520_v33 }
 0x17b   :  { %v537_v42 = vmax.f32 %v533_v37, 0.0  ;;  %v538_v43 = vmax.f32 %v534_v38, 0.0  ;;  %v539_v44 = vmax.f32 %v535_v39, 0.0  ;;  %v540_v45 = vmax.f32 %v536_v41, 0.0 }
 0x17d   :  { %v788_v46 = vpack.c.bf16 %v538_v43, %v537_v42  ;;  %v793_v47 = vpack.c.bf16 %v540_v45, %v539_v44 }
 0x17f   :  { %789 = vst [vmem:[%s1027_s2] sm:$0xff] %v788_v46  }
 0x180   :  { %795 = vst [vmem:[%s1027_s2 + $0x8] sm:$0xff] %v793_v47  }

// kernel: generator_forward.7
= control target key start
LH: loop header
LB: loop body
LE: loop exit
PB: predicated region body
PF: predicated region fallthrough
CT: control target
= control target key end

     0   :  { %vm308_vm0 = vcmask 261120   ;;  %s955_s26 = smov 64   ;;  %s956_s27 = smov 32   ;;  %s1311_s1 = inlined_call_operand.vmem [shape: bf16[288,128], index: 1, kind: input, shape index: {}]   ;;  %s1312_s0 = inlined_call_operand.vmem [shape: bf16[128,288], index: 0, kind: input, shape index: {}]   ;;  %s1313_s2 = inlined_call_operand.vmem [shape: bf16[128,128], index: 2, kind: output, shape index: {}]  }
   0x1   :  { %v872_v0 = vld [vmem:[%s1311_s1 + $0x38] sm:$0xff]  ;;  %v882_v2 = vld [vmem:[%s1311_s1 + $0x88] sm:$0xff]  ;;  %v871_v3 = vld [vmem:[%s1311_s1 + $0x30] sm:$0xff] }
   0x2   :  { %v880_v1 = vld [vmem:[%s1311_s1 + $0x78] sm:$0xff]  ;;  %333 = vmatpush.bf16.msra.mxu0 %v872_v0  ;;  %930 = vmatpush.bf16.msra.mxu3 %v872_v0  ;;  %v879_v4 = vld [vmem:[%s1311_s1 + $0x70] sm:$0xff]  ;;  %v881_v5 = vld [vmem:[%s1311_s1 + $0x80] sm:$0xff] }
   0x3   :  { %382 = vmatpush.bf16.msra.mxu1 %v880_v1  ;;  %437 = vmatpush.bf16.msra.mxu2 %v882_v2  ;;  %v675_v6 = vld [vmem:[%s1312_s0 + $0x8] sm:$0xf]  ;;  %v843_v7 = vld [vmem:[%s1312_s0 + $0x10] sm:$0xf0]  ;;  %v869_v11 = vld [vmem:[%s1311_s1 + $0x20] sm:$0xff] }
   0x4   :  { %v676_v8 = vor.u32 %v843_v7, %v675_v6  ;;  %v870_v9 = vld [vmem:[%s1311_s1 + $0x28] sm:$0xff]  ;;  %v877_v12 = vld [vmem:[%s1311_s1 + $0x60] sm:$0xff]  ;;  %v868_v13 = vld [vmem:[%s1311_s1 + $0x18] sm:$0xff] }
   0x5   :  { %v878_v10 = vld [vmem:[%s1311_s1 + $0x68] sm:$0xff]  ;;  %v876_v14 = vld [vmem:[%s1311_s1 + $0x58] sm:$0xff]  ;;  %v867_v15 = vld [vmem:[%s1311_s1 + $0x10] sm:$0xff] }
   0x6   :  { %334 = vmatpush.bf16.msra.mxu0 %v871_v3  ;;  %931 = vmatpush.bf16.msra.mxu3 %v871_v3  ;;  %v875_v16 = vld [vmem:[%s1311_s1 + $0x50] sm:$0xff]  ;;  %v687_v17 = vld [vmem:[%s1312_s0 + $0x20] sm:$0xf]  ;;  %v846_v18 = vld [vmem:[%s1312_s0 + $0x28] sm:$0xf0] }
   0x7   :  { %383 = vmatpush.bf16.msra.mxu1 %v879_v4  ;;  %438 = vmatpush.bf16.msra.mxu2 %v881_v5  ;;  %v688_v19 = vor.u32 %v846_v18, %v687_v17  ;;  %v866_v20 = vld [vmem:[%s1311_s1 + $0x8] sm:$0xff]  ;;  %v865_v22 = vld [vmem:[%s1311_s1] sm:$0xff]  ;;  %v739_v26 = vld [vmem:[%s1312_s0 + $0x90] sm:$0xf] }
   0x8   :  { %v874_v21 = vld [vmem:[%s1311_s1 + $0x48] sm:$0xff]  ;;  %v873_v23 = vld [vmem:[%s1311_s1 + $0x40] sm:$0xff]  ;;  %v860_v27 = vld [vmem:[%s1312_s0 + $0x98] sm:$0xf0] }
   0x9   :  { %v667_v24 = vld [vmem:[%s1312_s0] sm:$0xf]  ;;  %v842_v25 = vld [vmem:[%s1312_s0 + $0x8] sm:$0xf0]  ;;  %v841_v28 = vld [vmem:[%s1312_s0 + $0x4] sm:$0xf]  ;;  %v740_v31 = vor.u32 %v860_v27, %v739_v26 }
   0xa   :  { %833 = vmatmul.msk.bf16.vlgmr.msra.gmra.mxu2 %vm308_vm0, %v676_v8  ;;  %335 = vmatpush.bf16.msra.mxu0 %v870_v9  ;;  %v669_v29 = vld [vmem:[%s1312_s0 + $0xc] sm:$0xf0]  ;;  %v668_v30 = vor.u32 %v842_v25, %v667_v24  ;;  %v699_v33 = vld [vmem:[%s1312_s0 + $0x38] sm:$0xf]  ;;  %v849_v34 = vld [vmem:[%s1312_s0 + $0x40] sm:$0xf0] }
   0xb   :  { %932 = vmatpush.bf16.msra.mxu3 %v870_v9  ;;  %384 = vmatpush.bf16.msra.mxu1 %v878_v10  ;;  %v672_v32 = vor.u32 %v841_v28, %v669_v29  ;;  %v700_v35 = vor.u32 %v849_v34, %v699_v33  ;;  %v679_v36 = vld [vmem:[%s1312_s0 + $0x18] sm:$0xf]  ;;  %v845_v37 = vld [vmem:[%s1312_s0 + $0x20] sm:$0xf0]  ;;  %v751_v38 = vld [vmem:[%s1312_s0 + $0xa8] sm:$0xf] }
   0xc   :  { %v863_v39 = vld [vmem:[%s1312_s0 + $0xb0] sm:$0xf0]  ;;  %v844_v40 = vld [vmem:[%s1312_s0 + $0x1c] sm:$0xf]  ;;  %v681_v41 = vld [vmem:[%s1312_s0 + $0x24] sm:$0xf0]  ;;  %v680_v42 = vor.u32 %v845_v37, %v679_v36 }
   0xd   :  { %v752_v43 = vor.u32 %v863_v39, %v751_v38  ;;  %v684_v44 = vor.u32 %v844_v40, %v681_v41  ;;  %v711_v45 = vld [vmem:[%s1312_s0 + $0x50] sm:$0xf]  ;;  %v852_v46 = vld [vmem:[%s1312_s0 + $0x58] sm:$0xf0]  ;;  %v847_v50 = vld [vmem:[%s1312_s0 + $0x34] sm:$0xf] }
   0xe   :  { %336 = vmatpush.bf16.msra.mxu0 %v869_v11  ;;  %v712_v47 = vor.u32 %v852_v46, %v711_v45  ;;  %v691_v48 = vld [vmem:[%s1312_s0 + $0x30] sm:$0xf]  ;;  %v848_v49 = vld [vmem:[%s1312_s0 + $0x38] sm:$0xf0]  ;;  %v693_v51 = vld [vmem:[%s1312_s0 + $0x3c] sm:$0xf0] }
   0xf   :  { %933 = vmatpush.bf16.msra.mxu3 %v869_v11  ;;  %385 = vmatpush.bf16.msra.mxu1 %v877_v12  ;;  %v859_v52 = vld [vmem:[%s1312_s0 + $0x94] sm:$0xf]  ;;  %v741_v53 = vld [vmem:[%s1312_s0 + $0x9c] sm:$0xf0]  ;;  %v692_v54 = vor.u32 %v848_v49, %v691_v48  ;;  %v696_v55 = vor.u32 %v847_v50, %v693_v51  ;;  %v723_v57 = vld [vmem:[%s1312_s0 + $0x68] sm:$0xf] }
  0x10   :  { %v744_v56 = vor.u32 %v859_v52, %v741_v53  ;;  %v855_v58 = vld [vmem:[%s1312_s0 + $0x70] sm:$0xf0]  ;;  %v703_v60 = vld [vmem:[%s1312_s0 + $0x48] sm:$0xf]  ;;  %v850_v62 = vld [vmem:[%s1312_s0 + $0x4c] sm:$0xf] }
  0x11   :  { %v724_v59 = vor.u32 %v855_v58, %v723_v57  ;;  %v851_v61 = vld [vmem:[%s1312_s0 + $0x50] sm:$0xf0]  ;;  %v705_v63 = vld [vmem:[%s1312_s0 + $0x54] sm:$0xf0]  ;;  %v862_v0 = vld [vmem:[%s1312_s0 + $0xac] sm:$0xf] }
  0x12   :  { %337 = vmatpush.bf16.msra.mxu0 %v868_v13  ;;  %v704_v2 = vor.u32 %v851_v61, %v703_v60  ;;  %v708_v3 = vor.u32 %v850_v62, %v705_v63  ;;  %v735_v5 = vld [vmem:[%s1312_s0 + $0x80] sm:$0xf]  ;;  %v858_v6 = vld [vmem:[%s1312_s0 + $0x88] sm:$0xf0]  ;;  %v717_v11 = vld [vmem:[%s1312_s0 + $0x6c] sm:$0xf0] }
  0x13   :  { %934 = vmatpush.bf16.msra.mxu3 %v868_v13  ;;  %386 = vmatpush.bf16.msra.mxu1 %v876_v14  ;;  %v736_v7 = vor.u32 %v858_v6, %v735_v5  ;;  %v715_v8 = vld [vmem:[%s1312_s0 + $0x60] sm:$0xf]  ;;  %v854_v9 = vld [vmem:[%s1312_s0 + $0x68] sm:$0xf0]  ;;  %v727_v17 = vld [vmem:[%s1312_s0 + $0x78] sm:$0xf] }
  0x14   :  { %v857_v18 = vld [vmem:[%s1312_s0 + $0x80] sm:$0xf0]  ;;  %v864_v24 = vld [vmem:[%s1312_s0 + $0xb8] sm:$0xf0] }
  0x16   :  { %338 = vmatpush.bf16.msra.mxu0 %v867_v15 }
  0x17   :  { %935 = vmatpush.bf16.msra.mxu3 %v867_v15  ;;  %387 = vmatpush.bf16.msra.mxu1 %v875_v16  ;;  %v861_v15 = vld [vmem:[%s1312_s0 + $0xa0] sm:$0xf0] }
  0x1a   :  { %834 = vmatmul.msk.bf16.gmra.mxu2 %vm308_vm0, %v688_v19  ;;  %339 = vmatpush.bf16.msra.mxu0 %v866_v20  ;;  %v856_v19 = vld [vmem:[%s1312_s0 + $0x7c] sm:$0xf] }
  0x1b   :  { %936 = vmatpush.bf16.msra.mxu3 %v866_v20  ;;  %388 = vmatpush.bf16.msra.mxu1 %v874_v21  ;;  %v729_v20 = vld [vmem:[%s1312_s0 + $0x84] sm:$0xf0] }
  0x1e   :  { %340 = vmatpush.bf16.msra.mxu0 %v865_v22 }
  0x1f   :  { %937 = vmatpush.bf16.msra.mxu3 %v865_v22  ;;  %389 = vmatpush.bf16.msra.mxu1 %v873_v23  ;;  %v732_v22 = vor.u32 %v856_v19, %v729_v20 }
  0x21   :  { %341 = vmatmul.bf16.vlgmr.msra.gmra.mxu0 %v668_v30 }
  0x22   :  { %371 = vmatmul.bf16.vlgmr.msra.gmra.mxu3 %v740_v31  ;;  %390 = vmatmul.bf16.vlgmr.msra.gmra.mxu1 %v672_v32 }
  0x23   :  { %938 = vmatpush.bf16.msrb.mxu3 %v880_v1  ;;  %v753_v1 = vld [vmem:[%s1312_s0 + $0xb4] sm:$0xf0] }
  0x27   :  { %939 = vmatpush.bf16.msrb.mxu3 %v879_v4  ;;  %v756_v4 = vor.u32 %v862_v0, %v753_v1 }
  0x2a   :  { %835 = vmatmul.msk.bf16.gmra.mxu2 %vm308_vm0, %v700_v35 }
  0x2b   :  { %940 = vmatpush.bf16.msrb.mxu3 %v878_v10  ;;  %v853_v10 = vld [vmem:[%s1312_s0 + $0x64] sm:$0xf] }
  0x2c   :  { %v720_v13 = vor.u32 %v853_v10, %v717_v11 }
  0x2f   :  { %941 = vmatpush.bf16.msrb.mxu3 %v877_v12  ;;  %v716_v12 = vor.u32 %v854_v9, %v715_v8 }
  0x31   :  { %346 = vmatmul.bf16.gmra.mxu0 %v680_v42 }
  0x32   :  { %376 = vmatmul.bf16.gmra.mxu3 %v752_v43  ;;  %395 = vmatmul.bf16.gmra.mxu1 %v684_v44 }
  0x33   :  { %942 = vmatpush.bf16.msrb.mxu3 %v876_v14  ;;  %v747_v14 = vld [vmem:[%s1312_s0 + $0x98] sm:$0xf] }
  0x37   :  { %943 = vmatpush.bf16.msrb.mxu3 %v875_v16  ;;  %v748_v16 = vor.u32 %v861_v15, %v747_v14 }
  0x3a   :  { %836 = vmatmul.msk.bf16.gmra.mxu2 %vm308_vm0, %v712_v47 }
  0x3b   :  { %944 = vmatpush.bf16.msrb.mxu3 %v874_v21  ;;  %v728_v21 = vor.u32 %v857_v18, %v727_v17 }
  0x3f   :  { %945 = vmatpush.bf16.msrb.mxu3 %v873_v23  ;;  %v759_v23 = vld [vmem:[%s1312_s0 + $0xb0] sm:$0xf]  ;;  %s954_s0 = smov 96  }
  0x40   :  { %v760_v25 = vor.u32 %v864_v24, %v759_v23 }
  0x41   :  { %351 = vmatmul.bf16.gmra.mxu0 %v692_v54 }
  0x42   :  { %400 = vmatmul.bf16.gmra.mxu1 %v696_v55  ;;  %420 = vmatmul.bf16.vlgmr.msrb.gmra.mxu3 %v744_v56 }
  0x4a   :  { %837 = vmatmul.msk.bf16.gmra.mxu2 %vm308_vm0, %v724_v59 }
  0x51   :  { %356 = vmatmul.bf16.gmra.mxu0 %v704_v2 }
  0x52   :  { %405 = vmatmul.bf16.gmra.mxu1 %v708_v3  ;;  %425 = vmatmul.bf16.gmra.mxu3 %v756_v4 }
  0x5a   :  { %838 = vmatmul.msk.bf16.gmra.mxu2 %vm308_vm0, %v736_v7 }
  0x61   :  { %361 = vmatmul.bf16.gmra.mxu0 %v716_v12 }
  0x62   :  { %410 = vmatmul.bf16.gmra.mxu1 %v720_v13 }
  0x6a   :  { %839 = vmatmul.msk.bf16.gmra.mxu2 %vm308_vm0, %v748_v16 }
  0x71   :  { %366 = vmatmul.bf16.gmra.mxu0 %v728_v21 }
  0x72   :  { %415 = vmatmul.bf16.gmra.mxu1 %v732_v22 }
  0x7a   :  { %840 = vmatmul.msk.bf16.gmra.mxu2 %vm308_vm0, %v760_v25 }
  0x8d   :  { %v440_v26 = vpop.f32.mrf.mxu2 }
  0x95   :  { %v442_v27 = vpop.f32.mrf.mxu2 }
  0x9d   :  { %v445_v28 = vpop.f32.mrf.mxu2 }
  0x9e   :  { %v342_v29 = vpop.f32.mrf.mxu0 }
  0x9f   :  { %v391_v30 = vpop.f32.mrf.mxu1 }
  0xa0   :  { %v392_v31 = vadd.f32 %v391_v30, %v342_v29 }
  0xa2   :  { %v1179_v32 = vadd.f32 %v440_v26, %v392_v31 }
  0xa4   :  { %v501_v9 = vmul.f32 %v1179_v32, %v1179_v32 }
  0xa5   :  { %v447_v33 = vpop.f32.mrf.mxu2  ;;  %v1181_v42 = vpop.f32.mrf.mxu3 }
  0xa6   :  { %v344_v34 = vpop.f32.mrf.mxu0 }
  0xa7   :  { %v393_v35 = vpop.f32.mrf.mxu1 }
  0xa8   :  { %v394_v58 = vadd.f32 %v393_v35, %v344_v34 }
  0xaa   :  { %v1189_v63 = vadd.f32 %v442_v27, %v394_v58 }
  0xac   :  { %v502_v4 = vmul.f32 %v1189_v63, %v1189_v63  ;;  %v480_v13 = vadd.f32 %v1189_v63, %v1179_v32 }
  0xad   :  { %v450_v36 = vpop.f32.mrf.mxu2  ;;  %v1183_v46 = vpop.f32.mrf.mxu3 }
  0xae   :  { %v347_v37 = vpop.f32.mrf.mxu0  ;;  %v517_v15 = vadd.f32 %v502_v4, %v501_v9 }
  0xaf   :  { %v396_v38 = vpop.f32.mrf.mxu1 }
  0xb0   :  { %v397_v61 = vadd.f32 %v396_v38, %v347_v37 }
  0xb2   :  { %v1191_v1 = vadd.f32 %v445_v28, %v397_v61 }
  0xb4   :  { %v503_v10 = vmul.f32 %v1191_v1, %v1191_v1  ;;  %v481_v17 = vadd.f32 %v480_v13, %v1191_v1 }
  0xb5   :  { %v452_v39 = vpop.f32.mrf.mxu2  ;;  %v1185_v52 = vpop.f32.mrf.mxu3 }
  0xb6   :  { %v349_v40 = vpop.f32.mrf.mxu0  ;;  %v518_v20 = vadd.f32 %v517_v15, %v503_v10 }
  0xb7   :  { %v398_v41 = vpop.f32.mrf.mxu1 }
  0xb8   :  { %v399_v0 = vadd.f32 %v398_v41, %v349_v40 }
  0xba   :  { %v1195_v5 = vadd.f32 %v447_v33, %v399_v0 }
  0xbc   :  { %v504_v16 = vmul.f32 %v1195_v5, %v1195_v5  ;;  %v482_v22 = vadd.f32 %v481_v17, %v1195_v5 }
  0xbd   :  { %v455_v43 = vpop.f32.mrf.mxu2  ;;  %v1187_v57 = vpop.f32.mrf.mxu3 }
  0xbe   :  { %v352_v44 = vpop.f32.mrf.mxu0  ;;  %v519_v25 = vadd.f32 %v518_v20, %v504_v16 }
  0xbf   :  { %v401_v45 = vpop.f32.mrf.mxu1 }
  0xc0   :  { %v402_v2 = vadd.f32 %v401_v45, %v352_v44 }
  0xc2   :  { %v1201_v11 = vadd.f32 %v450_v36, %v402_v2 }
  0xc4   :  { %v505_v21 = vmul.f32 %v1201_v11, %v1201_v11  ;;  %v483_v28 = vadd.f32 %v482_v22, %v1201_v11 }
  0xc5   :  { %v457_v47 = vpop.f32.mrf.mxu2  ;;  %v421_v3 = vpop.f32.mrf.mxu3 }
  0xc6   :  { %v354_v48 = vpop.f32.mrf.mxu0  ;;  %v520_v34 = vadd.f32 %v519_v25, %v505_v21  ;;  %v422_v58 = vadd.f32 %v421_v3, %v1181_v42 }
  0xc7   :  { %v403_v49 = vpop.f32.mrf.mxu1 }
  0xc8   :  { %v404_v7 = vadd.f32 %v403_v49, %v354_v48 }
  0xca   :  { %v1208_v18 = vadd.f32 %v452_v39, %v404_v7 }
  0xcc   :  { %v506_v29 = vmul.f32 %v1208_v18, %v1208_v18  ;;  %v484_v36 = vadd.f32 %v483_v28, %v1208_v18 }
  0xcd   :  { %v460_v50 = vpop.f32.mrf.mxu2  ;;  %v423_v26 = vpop.f32.mrf.mxu3 }
  0xce   :  { %v357_v51 = vpop.f32.mrf.mxu0  ;;  %v521_v40 = vadd.f32 %v520_v34, %v506_v29  ;;  %v424_v9 = vadd.f32 %v423_v26, %v1183_v46 }
  0xcf   :  { %v406_v53 = vpop.f32.mrf.mxu1 }
  0xd0   :  { %v407_v14 = vadd.f32 %v406_v53, %v357_v51 }
  0xd2   :  { %v1213_v23 = vadd.f32 %v455_v43, %v407_v14 }
  0xd4   :  { %v507_v37 = vmul.f32 %v1213_v23, %v1213_v23  ;;  %v485_v41 = vadd.f32 %v484_v36, %v1213_v23 }
  0xd5   :  { %v462_v54 = vpop.f32.mrf.mxu2 }
  0xd6   :  { %v359_v55 = vpop.f32.mrf.mxu0  ;;  %v522_v45 = vadd.f32 %v521_v40, %v507_v37 }
  0xd7   :  { %v408_v56 = vpop.f32.mrf.mxu1 }
  0xd8   :  { %v409_v19 = vadd.f32 %v408_v56, %v359_v55 }
  0xda   :  { %v1218_v30 = vadd.f32 %v457_v47, %v409_v19 }
  0xdc   :  { %v508_v43 = vmul.f32 %v1218_v30, %v1218_v30  ;;  %v486_v47 = vadd.f32 %v485_v41, %v1218_v30 }
  0xdd   :  { %v465_v59 = vpop.f32.mrf.mxu2 }
  0xde   :  { %v362_v60 = vpop.f32.mrf.mxu0 }
  0xdf   :  { %v411_v62 = vpop.f32.mrf.mxu1 }
  0xe0   :  { %v412_v24 = vadd.f32 %v411_v62, %v362_v60 }
  0xe2   :  { %v1223_v38 = vadd.f32 %v460_v50, %v412_v24  ;;  %v523_v50 = vadd.f32 %v522_v45, %v508_v43 }
  0xe4   :  { %v509_v48 = vmul.f32 %v1223_v38, %v1223_v38  ;;  %v487_v53 = vadd.f32 %v486_v47, %v1223_v38 }
  0xe5   :  { %v467_v6 = vpop.f32.mrf.mxu2 }
  0xe6   :  { %v364_v8 = vpop.f32.mrf.mxu0  ;;  %v524_v61 = vadd.f32 %v523_v50, %v509_v48 }
  0xe7   :  { %v413_v12 = vpop.f32.mrf.mxu1 }
  0xe8   :  { %v414_v31 = vadd.f32 %v413_v12, %v364_v8 }
  0xea   :  { %v1228_v44 = vadd.f32 %v462_v54, %v414_v31  ;;  %v426_v54 = vpop.f32.mrf.mxu3 }
  0xec   :  { %v510_v55 = vmul.f32 %v1228_v44, %v1228_v44  ;;  %v488_v62 = vadd.f32 %v487_v53, %v1228_v44 }
  0xed   :  { %v470_v27 = vpop.f32.mrf.mxu2 }
  0xee   :  { %v367_v33 = vpop.f32.mrf.mxu0  ;;  %v525_v2 = vadd.f32 %v524_v61, %v510_v55  ;;  %v1242_v4 = vadd.f32 %v470_v27, %v422_v58 }
  0xef   :  { %v416_v35 = vpop.f32.mrf.mxu1 }
  0xf0   :  { %v417_v39 = vadd.f32 %v416_v35, %v367_v33  ;;  %v513_v13 = vmul.f32 %v1242_v4, %v1242_v4 }
  0xf2   :  { %v1233_v49 = vadd.f32 %v465_v59, %v417_v39  ;;  %v428_v19 = vpop.f32.mrf.mxu3 }
  0xf3   :  { %v429_v22 = vadd.f32 %v428_v19, %v1187_v57 }
  0xf4   :  { %v511_v0 = vmul.f32 %v1233_v49, %v1233_v49  ;;  %v489_v7 = vadd.f32 %v488_v62, %v1233_v49 }
  0xf5   :  { %v472_v51 = vpop.f32.mrf.mxu2 }
  0xf6   :  { %v369_v56 = vpop.f32.mrf.mxu0  ;;  %v526_v10 = vadd.f32 %v525_v2, %v511_v0  ;;  %v1253_v14 = vadd.f32 %v472_v51, %v424_v9  ;;  %v957_v51 = vmov 512.0  }
  0xf7   :  { %v418_v60 = vpop.f32.mrf.mxu1  ;;  %950 = vrcp.f32 %v957_v51 }
  0xf8   :  { %v419_v59 = vadd.f32 %v418_v60, %v369_v56  ;;  %v514_v46 = vmul.f32 %v1253_v14, %v1253_v14 }
  0xfa   :  { %v1245_v8 = vadd.f32 %v467_v6, %v419_v59  ;;  %v427_v6 = vadd.f32 %v426_v54, %v1185_v52 }
  0xfc   :  { %v490_v42 = vadd.f32 %v489_v7, %v1245_v8  ;;  %v512_v3 = vmul.f32 %v1245_v8, %v1245_v8 }
  0xfd   :  { %v475_v12 = vpop.f32.mrf.mxu2  ;;  %v951_v50 = vpop.eup %950 }
  0xfe   :  { %v527_v15 = vadd.f32 %v526_v10, %v512_v3  ;;  %v491_v16 = vadd.f32 %v490_v42, %v1242_v4  ;;  %v1259_v20 = vadd.f32 %v475_v12, %v427_v6  ;;  %v557_v53 = vmul.f32 512.0, %v951_v50 }
  0xff   :  { %vm561_vm1 = vweird.f32 %v951_v50 }
 0x100   :  { %v528_v17 = vadd.f32 %v527_v15, %v513_v13  ;;  %v492_v21 = vadd.f32 %v491_v16, %v1253_v14  ;;  %v515_v27 = vmul.f32 %v1259_v20, %v1259_v20  ;;  %v558_v55 = vsub.f32 1.0, %v557_v53 }
 0x102   :  { %v529_v24 = vadd.f32 %v528_v17, %v514_v46  ;;  %v493_v26 = vadd.f32 %v492_v21, %v1259_v20  ;;  %v559_v60 = vmul.f32 %v951_v50, %v558_v55 }
 0x104   :  { %v530_v52 = vadd.f32 %v529_v24, %v515_v27  ;;  %v560_v0 = vadd.f32 %v951_v50, %v559_v60 }
 0x105   :  { %v477_v25 = vpop.f32.mrf.mxu2 }
 0x106   :  { %v1266_v28 = vadd.f32 %v477_v25, %v429_v22  ;;  %v562_v9 = vsel %vm561_vm1, %v951_v50, %v560_v0 }
 0x108   :  { %v494_v29 = vadd.f32 %v493_v26, %v1266_v28  ;;  %v516_v31 = vmul.f32 %v1266_v28, %v1266_v28 }
 0x10a   :  { %v495_v33 = vrot.slane %v494_v29, 4  ;;  %v531_v34 = vadd.f32 %v530_v52, %v516_v31 }
 0x10c   :  { %v496_v35 = vadd.f32 %v495_v33, %v494_v29  ;;  %v532_v36 = vrot.slane %v531_v34, 4 }
 0x10e   :  { %v497_v57 = vrot.slane %v496_v35, 2  ;;  %v533_v37 = vadd.f32 %v532_v36, %v531_v34 }
 0x110   :  { %v498_v39 = vadd.f32 %v497_v57, %v496_v35  ;;  %v534_v40 = vrot.slane %v533_v37, 2 }
 0x112   :  { %v499_v41 = vrot.slane %v498_v39, 1  ;;  %v535_v45 = vadd.f32 %v534_v40, %v533_v37 }
 0x114   :  { %v500_v43 = vadd.f32 %v499_v41, %v498_v39  ;;  %v536_v47 = vrot.slane %v535_v45, 1 }
 0x116   :  { %550 = vrot.lane.b32.xlu2 %v500_v43, %s954_s0  ;;  %544 = vrot.lane.b32.xlu1 %v500_v43, %s955_s26  ;;  %v537_v48 = vadd.f32 %v536_v47, %v535_v45 }
 0x117   :  { %538 = vrot.lane.b32.xlu0 %v500_v43, %s956_s27 }
 0x11e   :  { %553 = vrot.lane.b32.xlu2 %v537_v48, %s954_s0  ;;  %547 = vrot.lane.b32.xlu1 %v537_v48, %s955_s26 }
 0x11f   :  { %541 = vrot.lane.b32.xlu0 %v537_v48, %s956_s27 }
 0x170   :  { %v551_v61 = vpop.permute.xlu2 %550 }
 0x178   :  { %v554_v12 = vpop.permute.xlu2 %553 }
 0x188   :  { %v545_v54 = vpop.permute.xlu1 %544 }
 0x189   :  { %v539_v56 = vpop.permute.xlu0 %538 }
 0x18a   :  { %v540_v58 = vadd.f32 %v539_v56, %v500_v43 }
 0x18c   :  { %v546_v62 = vadd.f32 %v545_v54, %v540_v58 }
 0x18e   :  { %v552_v2 = vadd.f32 %v551_v61, %v546_v62 }
 0x190   :  { %v548_v10 = vpop.permute.xlu1 %547  ;;  %v563_v42 = vmul.f32 %v562_v9, %v552_v2 }
 0x191   :  { %v542_v59 = vpop.permute.xlu0 %541 }
 0x192   :  { %v543_v7 = vadd.f32 %v542_v59, %v537_v48  ;;  %v565_v15 = vmul.f32 %v563_v42, %v563_v42  ;;  %v568_v24 = vperm.slane %v563_v42, 0 }
 0x194   :  { %v549_v3 = vadd.f32 %v548_v10, %v543_v7  ;;  %v569_v27 = vsub.f32 %v1179_v32, %v568_v24  ;;  %v570_v52 = vsub.f32 %v1189_v63, %v568_v24  ;;  %v571_v31 = vsub.f32 %v1191_v1, %v568_v24 }
 0x195   :  { %v572_v33 = vsub.f32 %v1195_v5, %v568_v24  ;;  %v573_v34 = vsub.f32 %v1201_v11, %v568_v24  ;;  %v574_v35 = vsub.f32 %v1208_v18, %v568_v24  ;;  %v575_v36 = vsub.f32 %v1213_v23, %v568_v24 }
 0x196   :  { %v555_v13 = vadd.f32 %v554_v12, %v549_v3  ;;  %v576_v57 = vsub.f32 %v1218_v30, %v568_v24  ;;  %v577_v37 = vsub.f32 %v1223_v38, %v568_v24  ;;  %v578_v63 = vsub.f32 %v1228_v44, %v568_v24 }
 0x197   :  { %v579_v39 = vsub.f32 %v1233_v49, %v568_v24  ;;  %v580_v1 = vsub.f32 %v1245_v8, %v568_v24  ;;  %v581_v5 = vsub.f32 %v1242_v4, %v568_v24  ;;  %v582_v11 = vsub.f32 %v1253_v14, %v568_v24 }
 0x198   :  { %v564_v16 = vmul.f32 %v562_v9, %v555_v13  ;;  %v583_v18 = vsub.f32 %v1259_v20, %v568_v24  ;;  %v584_v23 = vsub.f32 %v1266_v28, %v568_v24 }
 0x19a   :  { %v566_v6 = vsub.f32 %v564_v16, %v565_v15 }
 0x19c   :  { %v567_v17 = vmax.f32 %v566_v6, 0.0 }
 0x19e   :  { %v585_v19 = vadd.f32 1e-05, %v567_v17 }
 0x1a0   :  { %952 = vrsqrt.f32 %v585_v19  ;;  %vm592_vm3 = vweird.f32 %v585_v19 }
 0x1a6   :  { %v953_v46 = vpop.eup %952 }
 0x1a7   :  { %v587_v21 = vmul.f32 %v953_v46, %v585_v19  ;;  %vm593_vm2 = vweird.f32 %v953_v46 }
 0x1a8   :  { %vm594_vm4 = vmor %vm592_vm3, %vm593_vm2 }
 0x1a9   :  { %v588_v22 = vmul.f32 %v953_v46, %v587_v21 }
 0x1ab   :  { %v589_v25 = vmul.f32 0.5, %v588_v22 }
 0x1ad   :  { %v590_v26 = vsub.f32 1.5, %v589_v25 }
 0x1af   :  { %v591_v29 = vmul.f32 %v953_v46, %v590_v26 }
 0x1b1   :  { %v595_v32 = vsel %vm594_vm4, %v953_v46, %v591_v29 }
 0x1b2   :  { %v596_v40 = vperm.slane %v595_v32, 0 }
 0x1b4   :  { %v597_v41 = vmul.f32 %v596_v40, %v569_v27  ;;  %v598_v30 = vmul.f32 %v596_v40, %v570_v52  ;;  %v599_v43 = vmul.f32 %v596_v40, %v571_v31  ;;  %v600_v38 = vmul.f32 %v596_v40, %v572_v33 }
 0x1b5   :  { %v601_v45 = vmul.f32 %v596_v40, %v573_v34  ;;  %v602_v47 = vmul.f32 %v596_v40, %v574_v35  ;;  %v603_v44 = vmul.f32 %v596_v40, %v575_v36  ;;  %v604_v48 = vmul.f32 %v596_v40, %v576_v57 }
 0x1b6   :  { %v605_v49 = vmul.f32 %v596_v40, %v577_v37  ;;  %v606_v51 = vmul.f32 %v596_v40, %v578_v63  ;;  %v607_v8 = vmul.f32 %v596_v40, %v579_v39  ;;  %v608_v50 = vmul.f32 %v596_v40, %v580_v1 }
 0x1b7   :  { %v609_v53 = vmul.f32 %v596_v40, %v581_v5  ;;  %v610_v4 = vmul.f32 %v596_v40, %v582_v11  ;;  %v611_v55 = vmul.f32 %v596_v40, %v583_v18  ;;  %v612_v14 = vmul.f32 %v596_v40, %v584_v23 }
 0x1b8   :  { %v613_v56 = vmax.f32 %v597_v41, 0.0  ;;  %v614_v20 = vmax.f32 %v598_v30, 0.0  ;;  %v615_v58 = vmax.f32 %v599_v43, 0.0  ;;  %v616_v28 = vmax.f32 %v600_v38, 0.0 }
 0x1b9   :  { %v617_v54 = vmax.f32 %v601_v45, 0.0  ;;  %v618_v60 = vmax.f32 %v602_v47, 0.0  ;;  %v619_v61 = vmax.f32 %v603_v44, 0.0  ;;  %v620_v62 = vmax.f32 %v604_v48, 0.0 }
 0x1ba   :  { %v621_v0 = vmax.f32 %v605_v49, 0.0  ;;  %v622_v59 = vmax.f32 %v606_v51, 0.0  ;;  %v623_v2 = vmax.f32 %v607_v8, 0.0  ;;  %v624_v7 = vmax.f32 %v608_v50, 0.0 }
 0x1bb   :  { %v625_v9 = vmax.f32 %v609_v53, 0.0  ;;  %v626_v10 = vmax.f32 %v610_v4, 0.0  ;;  %v886_v42 = vpack.c.bf16 %v614_v20, %v613_v56  ;;  %v891_v3 = vpack.c.bf16 %v616_v28, %v615_v58 }
 0x1bc   :  { %v896_v12 = vpack.c.bf16 %v618_v60, %v617_v54  ;;  %v627_v13 = vmax.f32 %v611_v55, 0.0  ;;  %v628_v15 = vmax.f32 %v612_v14, 0.0  ;;  %v901_v16 = vpack.c.bf16 %v620_v62, %v619_v61 }
 0x1bd   :  { %887 = vst [vmem:[%s1313_s2] sm:$0xff] %v886_v42   ;;  %v906_v6 = vpack.c.bf16 %v622_v59, %v621_v0  ;;  %v911_v17 = vpack.c.bf16 %v624_v7, %v623_v2  ;;  %v916_v19 = vpack.c.bf16 %v626_v10, %v625_v9 }
 0x1be   :  { %923 = vst [vmem:[%s1313_s2 + $0x8] sm:$0xff] %v891_v3   ;;  %v921_v46 = vpack.c.bf16 %v628_v15, %v627_v13 }
 0x1bf   :  { %924 = vst [vmem:[%s1313_s2 + $0x10] sm:$0xff] %v896_v12  }
 0x1c0   :  { %925 = vst [vmem:[%s1313_s2 + $0x18] sm:$0xff] %v901_v16  }
 0x1c1   :  { %926 = vst [vmem:[%s1313_s2 + $0x20] sm:$0xff] %v906_v6  }
 0x1c2   :  { %927 = vst [vmem:[%s1313_s2 + $0x28] sm:$0xff] %v911_v17  }
 0x1c3   :  { %928 = vst [vmem:[%s1313_s2 + $0x30] sm:$0xff] %v916_v19  }
 0x1c4   :  { %929 = vst [vmem:[%s1313_s2 + $0x38] sm:$0xff] %v921_v46  }

// kernel: generator_forward.8
= control target key start
LH: loop header
LB: loop body
LE: loop exit
PB: predicated region body
PF: predicated region fallthrough
CT: control target
= control target key end

     0   :  { %vm436_vm0 = vcmask 130048   ;;  %s2046_s22 = smov 64   ;;  %s2047_s23 = smov 32   ;;  %s3549_s1 = inlined_call_operand.vmem [shape: bf16[144,128], index: 1, kind: input, shape index: {}]   ;;  %s3550_s0 = inlined_call_operand.vmem [shape: bf16[512,144], index: 0, kind: input, shape index: {}]   ;;  %s3551_s2 = inlined_call_operand.vmem [shape: bf16[512,128], index: 2, kind: output, shape index: {}]  }
   0x1   :  { %v1835_v0 = vld [vmem:[%s3549_s1 + $0x38] sm:$0xff]  ;;  %v1836_v1 = vld [vmem:[%s3549_s1 + $0x40] sm:$0xff]  ;;  %v1444_v3 = vld [vmem:[%s3550_s0 + $0x8] sm:$0xf0] }
   0x2   :  { %v1764_v2 = vld [vmem:[%s3550_s0 + $0x4] sm:$0xf]  ;;  %533 = vmatpush.bf16.msra.mxu0 %v1835_v0  ;;  %709 = vmatpush.bf16.msra.mxu1 %v1836_v1  ;;  %v1834_v5 = vld [vmem:[%s3549_s1 + $0x30] sm:$0xff]  ;;  %v1833_v6 = vld [vmem:[%s3549_s1 + $0x28] sm:$0xff] }
   0x3   :  { %v1447_v4 = vor.u32 %v1764_v2, %v1444_v3  ;;  %2028 = vmatpush.bf16.msra.mxu2 %v1835_v0  ;;  %2036 = vmatpush.bf16.msra.mxu3 %v1836_v1  ;;  %v1832_v7 = vld [vmem:[%s3549_s1 + $0x20] sm:$0xff]  ;;  %v1831_v8 = vld [vmem:[%s3549_s1 + $0x18] sm:$0xff]  ;;  %v1766_v9 = vld [vmem:[%s3550_s0 + $0x14] sm:$0xf] }
   0x4   :  { %v1452_v10 = vld [vmem:[%s3550_s0 + $0x18] sm:$0xf0]  ;;  %v1830_v12 = vld [vmem:[%s3549_s1 + $0x10] sm:$0xff]  ;;  %v1829_v13 = vld [vmem:[%s3549_s1 + $0x8] sm:$0xff] }
   0x5   :  { %1732 = vmatmul.msk.bf16.vlgmr.msra.gmra.mxu1 %vm436_vm0, %v1447_v4  ;;  %v1455_v11 = vor.u32 %v1766_v9, %v1452_v10  ;;  %v1828_v14 = vld [vmem:[%s3549_s1] sm:$0xff]  ;;  %v1765_v16 = vld [vmem:[%s3550_s0 + $0x4] sm:$0xf0]  ;;  %v1460_v19 = vld [vmem:[%s3550_s0 + $0x28] sm:$0xf0] }
   0x6   :  { %534 = vmatpush.bf16.msra.mxu0 %v1834_v5  ;;  %v1442_v15 = vld [vmem:[%s3550_s0] sm:$0xf]  ;;  %v1768_v18 = vld [vmem:[%s3550_s0 + $0x24] sm:$0xf]  ;;  %v1450_v21 = vld [vmem:[%s3550_s0 + $0x10] sm:$0xf] }
   0x7   :  { %2029 = vmatpush.bf16.msra.mxu2 %v1834_v5  ;;  %v1443_v17 = vor.u32 %v1765_v16, %v1442_v15  ;;  %v1463_v20 = vor.u32 %v1768_v18, %v1460_v19  ;;  %v1767_v22 = vld [vmem:[%s3550_s0 + $0x14] sm:$0xf0]  ;;  %v1770_v24 = vld [vmem:[%s3550_s0 + $0x34] sm:$0xf]  ;;  %v1468_v25 = vld [vmem:[%s3550_s0 + $0x38] sm:$0xf0] }
   0x8   :  { %v1451_v23 = vor.u32 %v1767_v22, %v1450_v21  ;;  %v1570_v26 = vld [vmem:[%s3550_s0 + $0x100] sm:$0xf]  ;;  %v1797_v27 = vld [vmem:[%s3550_s0 + $0x104] sm:$0xf0]  ;;  %v1471_v28 = vor.u32 %v1770_v24, %v1468_v25  ;;  %v1772_v33 = vld [vmem:[%s3550_s0 + $0x44] sm:$0xf] }
   0x9   :  { %v1571_v29 = vor.u32 %v1797_v27, %v1570_v26  ;;  %v1458_v30 = vld [vmem:[%s3550_s0 + $0x20] sm:$0xf]  ;;  %v1769_v31 = vld [vmem:[%s3550_s0 + $0x24] sm:$0xf0]  ;;  %v1476_v34 = vld [vmem:[%s3550_s0 + $0x48] sm:$0xf0] }
   0xa   :  { %535 = vmatpush.bf16.msra.mxu0 %v1833_v6  ;;  %v1459_v32 = vor.u32 %v1769_v31, %v1458_v30  ;;  %v1578_v35 = vld [vmem:[%s3550_s0 + $0x110] sm:$0xf]  ;;  %v1799_v36 = vld [vmem:[%s3550_s0 + $0x114] sm:$0xf0]  ;;  %v1798_v37 = vld [vmem:[%s3550_s0 + $0x114] sm:$0xf]  ;;  %v1479_v38 = vor.u32 %v1772_v33, %v1476_v34 }
   0xb   :  { %2030 = vmatpush.bf16.msra.mxu2 %v1833_v6  ;;  %v1579_v39 = vor.u32 %v1799_v36, %v1578_v35  ;;  %v1580_v40 = vld [vmem:[%s3550_s0 + $0x118] sm:$0xf0]  ;;  %v1466_v42 = vld [vmem:[%s3550_s0 + $0x30] sm:$0xf]  ;;  %v1771_v43 = vld [vmem:[%s3550_s0 + $0x34] sm:$0xf0] }
   0xc   :  { %v1583_v41 = vor.u32 %v1798_v37, %v1580_v40  ;;  %v1467_v44 = vor.u32 %v1771_v43, %v1466_v42  ;;  %v1774_v45 = vld [vmem:[%s3550_s0 + $0x54] sm:$0xf]  ;;  %v1484_v46 = vld [vmem:[%s3550_s0 + $0x58] sm:$0xf0]  ;;  %v1586_v47 = vld [vmem:[%s3550_s0 + $0x120] sm:$0xf] }
   0xd   :  { %v1801_v48 = vld [vmem:[%s3550_s0 + $0x124] sm:$0xf0]  ;;  %v1800_v49 = vld [vmem:[%s3550_s0 + $0x124] sm:$0xf]  ;;  %v1487_v50 = vor.u32 %v1774_v45, %v1484_v46  ;;  %v1588_v52 = vld [vmem:[%s3550_s0 + $0x128] sm:$0xf0] }
   0xe   :  { %536 = vmatpush.bf16.msra.mxu0 %v1832_v7  ;;  %1749 = vmatmul.msk.bf16.vlgmr.msra.gmra.mxu3 %vm436_vm0, %v1583_v41  ;;  %v1587_v51 = vor.u32 %v1801_v48, %v1586_v47  ;;  %v1591_v53 = vor.u32 %v1800_v49, %v1588_v52  ;;  %v1474_v54 = vld [vmem:[%s3550_s0 + $0x40] sm:$0xf]  ;;  %v1773_v55 = vld [vmem:[%s3550_s0 + $0x44] sm:$0xf0]  ;;  %v1776_v57 = vld [vmem:[%s3550_s0 + $0x64] sm:$0xf] }
   0xf   :  { %2031 = vmatpush.bf16.msra.mxu2 %v1832_v7  ;;  %v1475_v56 = vor.u32 %v1773_v55, %v1474_v54  ;;  %v1492_v58 = vld [vmem:[%s3550_s0 + $0x68] sm:$0xf0]  ;;  %v1594_v59 = vld [vmem:[%s3550_s0 + $0x130] sm:$0xf]  ;;  %v1803_v60 = vld [vmem:[%s3550_s0 + $0x134] sm:$0xf0] }
  0x10   :  { %v1802_v61 = vld [vmem:[%s3550_s0 + $0x134] sm:$0xf]  ;;  %v1495_v62 = vor.u32 %v1776_v57, %v1492_v58  ;;  %v1595_v63 = vor.u32 %v1803_v60, %v1594_v59  ;;  %v1596_v0 = vld [vmem:[%s3550_s0 + $0x138] sm:$0xf0]  ;;  %v1482_v2 = vld [vmem:[%s3550_s0 + $0x50] sm:$0xf] }
  0x11   :  { %v1599_v1 = vor.u32 %v1802_v61, %v1596_v0  ;;  %v1775_v3 = vld [vmem:[%s3550_s0 + $0x54] sm:$0xf0]  ;;  %v1778_v5 = vld [vmem:[%s3550_s0 + $0x74] sm:$0xf]  ;;  %v1500_v6 = vld [vmem:[%s3550_s0 + $0x78] sm:$0xf0] }
  0x12   :  { %537 = vmatpush.bf16.msra.mxu0 %v1831_v8  ;;  %v1483_v4 = vor.u32 %v1775_v3, %v1482_v2  ;;  %v1602_v7 = vld [vmem:[%s3550_s0 + $0x140] sm:$0xf]  ;;  %v1804_v9 = vld [vmem:[%s3550_s0 + $0x144] sm:$0xf]  ;;  %v1503_v10 = vor.u32 %v1778_v5, %v1500_v6  ;;  %v1777_v15 = vld [vmem:[%s3550_s0 + $0x64] sm:$0xf0] }
  0x13   :  { %2032 = vmatpush.bf16.msra.mxu2 %v1831_v8  ;;  %v1805_v8 = vld [vmem:[%s3550_s0 + $0x144] sm:$0xf0]  ;;  %v1508_v18 = vld [vmem:[%s3550_s0 + $0x88] sm:$0xf0]  ;;  %v1610_v19 = vld [vmem:[%s3550_s0 + $0x150] sm:$0xf] }
  0x14   :  { %v1806_v21 = vld [vmem:[%s3550_s0 + $0x154] sm:$0xf]  ;;  %v1612_v24 = vld [vmem:[%s3550_s0 + $0x158] sm:$0xf0]  ;;  %v1618_v33 = vld [vmem:[%s3550_s0 + $0x160] sm:$0xf] }
  0x15   :  { %1733 = vmatmul.msk.bf16.gmra.mxu1 %vm436_vm0, %v1455_v11  ;;  %v1603_v11 = vor.u32 %v1805_v8, %v1602_v7  ;;  %v1615_v26 = vor.u32 %v1806_v21, %v1612_v24  ;;  %v1782_v31 = vld [vmem:[%s3550_s0 + $0x94] sm:$0xf]  ;;  %v1809_v34 = vld [vmem:[%s3550_s0 + $0x164] sm:$0xf0]  ;;  %v1808_v35 = vld [vmem:[%s3550_s0 + $0x164] sm:$0xf] }
  0x16   :  { %538 = vmatpush.bf16.msra.mxu0 %v1830_v12  ;;  %v1619_v37 = vor.u32 %v1809_v34, %v1618_v33  ;;  %v1506_v42 = vld [vmem:[%s3550_s0 + $0x80] sm:$0xf]  ;;  %v1781_v43 = vld [vmem:[%s3550_s0 + $0x84] sm:$0xf0]  ;;  %v1784_v46 = vld [vmem:[%s3550_s0 + $0xa4] sm:$0xf] }
  0x17   :  { %2033 = vmatpush.bf16.msra.mxu2 %v1830_v12  ;;  %v1604_v12 = vld [vmem:[%s3550_s0 + $0x148] sm:$0xf0]  ;;  %v1626_v49 = vld [vmem:[%s3550_s0 + $0x170] sm:$0xf]  ;;  %v1628_v54 = vld [vmem:[%s3550_s0 + $0x178] sm:$0xf0] }
  0x18   :  { %v1524_v47 = vld [vmem:[%s3550_s0 + $0xa8] sm:$0xf0]  ;;  %v1514_v60 = vld [vmem:[%s3550_s0 + $0x90] sm:$0xf]  ;;  %v1783_v61 = vld [vmem:[%s3550_s0 + $0x94] sm:$0xf0] }
  0x19   :  { %v1527_v52 = vor.u32 %v1784_v46, %v1524_v47  ;;  %v1786_v0 = vld [vmem:[%s3550_s0 + $0xb4] sm:$0xf]  ;;  %v1634_v3 = vld [vmem:[%s3550_s0 + $0x180] sm:$0xf]  ;;  %v1812_v5 = vld [vmem:[%s3550_s0 + $0x184] sm:$0xf] }
  0x1a   :  { %539 = vmatpush.bf16.msra.mxu0 %v1829_v13  ;;  %v1636_v8 = vld [vmem:[%s3550_s0 + $0x188] sm:$0xf0]  ;;  %v1815_v24 = vld [vmem:[%s3550_s0 + $0x194] sm:$0xf0]  ;;  %v1650_v47 = vld [vmem:[%s3550_s0 + $0x1a0] sm:$0xf] }
  0x1b   :  { %2034 = vmatpush.bf16.msra.mxu2 %v1829_v13  ;;  %v1607_v13 = vor.u32 %v1804_v9, %v1604_v12 }
  0x1e   :  { %540 = vmatpush.bf16.msra.mxu0 %v1828_v14  ;;  %1750 = vmatmul.msk.bf16.gmra.mxu3 %vm436_vm0, %v1591_v53 }
  0x1f   :  { %2035 = vmatpush.bf16.msra.mxu2 %v1828_v14  ;;  %v1490_v14 = vld [vmem:[%s3550_s0 + $0x60] sm:$0xf] }
  0x20   :  { %v1491_v16 = vor.u32 %v1777_v15, %v1490_v14  ;;  %v1522_v15 = vld [vmem:[%s3550_s0 + $0xa0] sm:$0xf] }
  0x21   :  { %541 = vmatmul.bf16.vlgmr.msra.gmra.mxu0 %v1443_v17  ;;  %v1780_v17 = vld [vmem:[%s3550_s0 + $0x84] sm:$0xf] }
  0x22   :  { %621 = vmatmul.bf16.vlgmr.msra.gmra.mxu2 %v1571_v29  ;;  %v1511_v22 = vor.u32 %v1780_v17, %v1508_v18  ;;  %v1779_v29 = vld [vmem:[%s3550_s0 + $0x74] sm:$0xf0] }
  0x25   :  { %1734 = vmatmul.msk.bf16.gmra.mxu1 %vm436_vm0, %v1463_v20  ;;  %v1807_v20 = vld [vmem:[%s3550_s0 + $0x154] sm:$0xf0] }
  0x2e   :  { %1751 = vmatmul.msk.bf16.gmra.mxu3 %vm436_vm0, %v1599_v1  ;;  %v1532_v1 = vld [vmem:[%s3550_s0 + $0xb8] sm:$0xf0] }
  0x2f   :  { %v1535_v6 = vor.u32 %v1786_v0, %v1532_v1 }
  0x31   :  { %546 = vmatmul.bf16.gmra.mxu0 %v1451_v23  ;;  %v1611_v23 = vor.u32 %v1807_v20, %v1610_v19  ;;  %v1788_v19 = vld [vmem:[%s3550_s0 + $0xc4] sm:$0xf]  ;;  %v1540_v20 = vld [vmem:[%s3550_s0 + $0xc8] sm:$0xf0] }
  0x32   :  { %626 = vmatmul.bf16.gmra.mxu2 %v1579_v39 }
  0x35   :  { %1735 = vmatmul.msk.bf16.gmra.mxu1 %vm436_vm0, %v1471_v28  ;;  %v1498_v28 = vld [vmem:[%s3550_s0 + $0x70] sm:$0xf] }
  0x36   :  { %v1499_v30 = vor.u32 %v1779_v29, %v1498_v28  ;;  %v1644_v28 = vld [vmem:[%s3550_s0 + $0x198] sm:$0xf0] }
  0x3e   :  { %1752 = vmatmul.msk.bf16.gmra.mxu3 %vm436_vm0, %v1607_v13 }
  0x41   :  { %551 = vmatmul.bf16.gmra.mxu0 %v1459_v32  ;;  %v1516_v32 = vld [vmem:[%s3550_s0 + $0x98] sm:$0xf0] }
  0x42   :  { %631 = vmatmul.bf16.gmra.mxu2 %v1587_v51  ;;  %v1519_v36 = vor.u32 %v1782_v31, %v1516_v32  ;;  %v1810_v51 = vld [vmem:[%s3550_s0 + $0x174] sm:$0xf] }
  0x45   :  { %1736 = vmatmul.msk.bf16.gmra.mxu1 %vm436_vm0, %v1479_v38  ;;  %v1620_v38 = vld [vmem:[%s3550_s0 + $0x168] sm:$0xf0] }
  0x46   :  { %v1623_v40 = vor.u32 %v1808_v35, %v1620_v38 }
  0x4e   :  { %1753 = vmatmul.msk.bf16.gmra.mxu3 %vm436_vm0, %v1615_v26  ;;  %v1543_v26 = vor.u32 %v1788_v19, %v1540_v20 }
  0x51   :  { %556 = vmatmul.bf16.gmra.mxu0 %v1467_v44  ;;  %v1507_v44 = vor.u32 %v1781_v43, %v1506_v42  ;;  %v1548_v42 = vld [vmem:[%s3550_s0 + $0xd8] sm:$0xf0] }
  0x52   :  { %636 = vmatmul.bf16.gmra.mxu2 %v1595_v63 }
  0x55   :  { %1737 = vmatmul.msk.bf16.gmra.mxu1 %vm436_vm0, %v1487_v50  ;;  %v1811_v50 = vld [vmem:[%s3550_s0 + $0x174] sm:$0xf0] }
  0x56   :  { %v1627_v53 = vor.u32 %v1811_v50, %v1626_v49  ;;  %v1817_v49 = vld [vmem:[%s3550_s0 + $0x1a4] sm:$0xf0]  ;;  %v1816_v50 = vld [vmem:[%s3550_s0 + $0x1a4] sm:$0xf] }
  0x5e   :  { %1754 = vmatmul.msk.bf16.gmra.mxu3 %vm436_vm0, %v1623_v40 }
  0x61   :  { %561 = vmatmul.bf16.gmra.mxu0 %v1475_v56  ;;  %v1631_v56 = vor.u32 %v1810_v51, %v1628_v54 }
  0x62   :  { %641 = vmatmul.bf16.gmra.mxu2 %v1603_v11 }
  0x65   :  { %1738 = vmatmul.msk.bf16.gmra.mxu1 %vm436_vm0, %v1495_v62  ;;  %v1515_v62 = vor.u32 %v1783_v61, %v1514_v60 }
  0x6e   :  { %1755 = vmatmul.msk.bf16.gmra.mxu3 %vm436_vm0, %v1631_v56 }
  0x71   :  { %566 = vmatmul.bf16.gmra.mxu0 %v1483_v4  ;;  %v1813_v4 = vld [vmem:[%s3550_s0 + $0x184] sm:$0xf0] }
  0x72   :  { %646 = vmatmul.bf16.gmra.mxu2 %v1611_v23  ;;  %v1635_v7 = vor.u32 %v1813_v4, %v1634_v3  ;;  %v1642_v23 = vld [vmem:[%s3550_s0 + $0x190] sm:$0xf]  ;;  %v1792_v4 = vld [vmem:[%s3550_s0 + $0xe4] sm:$0xf] }
  0x75   :  { %1739 = vmatmul.msk.bf16.gmra.mxu1 %vm436_vm0, %v1503_v10  ;;  %v1639_v10 = vor.u32 %v1812_v5, %v1636_v8  ;;  %v1556_v5 = vld [vmem:[%s3550_s0 + $0xe8] sm:$0xf0] }
  0x7e   :  { %1756 = vmatmul.msk.bf16.gmra.mxu3 %vm436_vm0, %v1639_v10  ;;  %v1658_v10 = vld [vmem:[%s3550_s0 + $0x1b0] sm:$0xf] }
  0x81   :  { %571 = vmatmul.bf16.gmra.mxu0 %v1491_v16  ;;  %v1785_v16 = vld [vmem:[%s3550_s0 + $0xa4] sm:$0xf0] }
  0x82   :  { %v711_v25 = vpop.f32.mrf.mxu1  ;;  %651 = vmatmul.bf16.gmra.mxu2 %v1619_v37  ;;  %v1523_v17 = vor.u32 %v1785_v16, %v1522_v15  ;;  %v1787_v37 = vld [vmem:[%s3550_s0 + $0xb4] sm:$0xf0]  ;;  %v1559_v15 = vor.u32 %v1792_v4, %v1556_v5 }
  0x85   :  { %1740 = vmatmul.msk.bf16.gmra.mxu1 %vm436_vm0, %v1511_v22 }
  0x8a   :  { %v713_v27 = vpop.f32.mrf.mxu1 }
  0x91   :  { %576 = vmatmul.bf16.gmra.mxu0 %v1499_v30  ;;  %v796_v34 = vpop.f32.mrf.mxu3 }
  0x92   :  { %v716_v39 = vpop.f32.mrf.mxu1  ;;  %656 = vmatmul.bf16.gmra.mxu2 %v1627_v53  ;;  %v1652_v53 = vld [vmem:[%s3550_s0 + $0x1a8] sm:$0xf0] }
  0x95   :  { %1741 = vmatmul.msk.bf16.gmra.mxu1 %vm436_vm0, %v1519_v36  ;;  %v1530_v36 = vld [vmem:[%s3550_s0 + $0xb0] sm:$0xf] }
  0x9a   :  { %v718_v41 = vpop.f32.mrf.mxu1 }
  0x9e   :  { %v542_v45 = vpop.f32.mrf.mxu0 }
  0x9f   :  { %v2305_v48 = vadd.f32 %v711_v25, %v542_v45  ;;  %v1814_v25 = vld [vmem:[%s3550_s0 + $0x194] sm:$0xf]  ;;  %v798_v45 = vpop.f32.mrf.mxu3 }
  0xa0   :  { %v1647_v30 = vor.u32 %v1814_v25, %v1644_v28  ;;  %v1791_v28 = vld [vmem:[%s3550_s0 + $0xd4] sm:$0xf0] }
  0xa1   :  { %3611 = vst [vmem:[#allocation2_spill] sm:$0xff] %v2305_v48  ;;  %581 = vmatmul.bf16.gmra.mxu0 %v1507_v44 }
  0xa2   :  { %v721_v55 = vpop.f32.mrf.mxu1  ;;  %661 = vmatmul.bf16.gmra.mxu2 %v1635_v7  ;;  %1757 = vmatmul.msk.bf16.gmra.mxu3 %vm436_vm0, %v1647_v30 }
  0xa5   :  { %1742 = vmatmul.msk.bf16.gmra.mxu1 %vm436_vm0, %v1527_v52  ;;  %v2351_v12 = vpop.f32.mrf.mxu2  ;;  %v1651_v52 = vor.u32 %v1817_v49, %v1650_v47  ;;  %v1668_v47 = vld [vmem:[%s3550_s0 + $0x1c8] sm:$0xf0] }
  0xa6   :  { %v544_v57 = vpop.f32.mrf.mxu0 }
  0xa7   :  { %v2321_v58 = vadd.f32 %v713_v27, %v544_v57  ;;  %v1643_v27 = vor.u32 %v1815_v24, %v1642_v23  ;;  %v801_v60 = vpop.f32.mrf.mxu3 }
  0xa9   :  { %3612 = vst [vmem:[#allocation3_spill] sm:$0xff] %v2321_v58 }
  0xaa   :  { %v723_v59 = vpop.f32.mrf.mxu1 }
  0xad   :  { %v2367_v21 = vpop.f32.mrf.mxu2 }
  0xae   :  { %v547_v63 = vpop.f32.mrf.mxu0 }
  0xaf   :  { %v2335_v2 = vadd.f32 %v716_v39, %v547_v63  ;;  %v1531_v39 = vor.u32 %v1787_v37, %v1530_v36  ;;  %v1789_v63 = vld [vmem:[%s3550_s0 + $0xc4] sm:$0xf0]  ;;  %v803_v8 = vpop.f32.mrf.mxu3 }
  0xb1   :  { %586 = vmatmul.bf16.gmra.mxu0 %v1515_v62  ;;  %v1538_v62 = vld [vmem:[%s3550_s0 + $0xc0] sm:$0xf] }
  0xb2   :  { %v726_v9 = vpop.f32.mrf.mxu1  ;;  %666 = vmatmul.bf16.gmra.mxu2 %v1643_v27  ;;  %v1539_v1 = vor.u32 %v1789_v63, %v1538_v62  ;;  %v1546_v27 = vld [vmem:[%s3550_s0 + $0xd0] sm:$0xf] }
  0xb3   :  { %v1547_v30 = vor.u32 %v1791_v28, %v1546_v27  ;;  %v1562_v28 = vld [vmem:[%s3550_s0 + $0xf0] sm:$0xf] }
  0xb5   :  { %1743 = vmatmul.msk.bf16.gmra.mxu1 %vm436_vm0, %v1535_v6  ;;  %v627_v32 = vpop.f32.mrf.mxu2 }
  0xb6   :  { %v549_v11 = vpop.f32.mrf.mxu0  ;;  %v2393_v38 = vadd.f32 %v796_v34, %v627_v32  ;;  %v1794_v32 = vld [vmem:[%s3550_s0 + $0xf4] sm:$0xf]  ;;  %v1564_v34 = vld [vmem:[%s3550_s0 + $0xf8] sm:$0xf0] }
  0xb7   :  { %v2353_v13 = vadd.f32 %v718_v41, %v549_v11  ;;  %v1790_v41 = vld [vmem:[%s3550_s0 + $0xd4] sm:$0xf]  ;;  %v1819_v11 = vld [vmem:[%s3550_s0 + $0x1b4] sm:$0xf0]  ;;  %v806_v25 = vpop.f32.mrf.mxu3 }
  0xb8   :  { %3615 = vst [vmem:[#allocation6_spill] sm:$0xff] %v2393_v38  ;;  %v1551_v51 = vor.u32 %v1790_v41, %v1548_v42  ;;  %v1659_v16 = vor.u32 %v1819_v11, %v1658_v10  ;;  %v1821_v41 = vld [vmem:[%s3550_s0 + $0x1c4] sm:$0xf0]  ;;  %v1820_v42 = vld [vmem:[%s3550_s0 + $0x1c4] sm:$0xf] }
  0xb9   :  { %v1823_v10 = vld [vmem:[%s3550_s0 + $0x1d4] sm:$0xf0]  ;;  %v1822_v11 = vld [vmem:[%s3550_s0 + $0x1d4] sm:$0xf] }
  0xba   :  { %v728_v14 = vpop.f32.mrf.mxu1 }
  0xbd   :  { %v629_v43 = vpop.f32.mrf.mxu2 }
  0xbe   :  { %v552_v18 = vpop.f32.mrf.mxu0  ;;  %v2403_v46 = vadd.f32 %v798_v45, %v629_v43  ;;  %v1567_v43 = vor.u32 %v1794_v32, %v1564_v34 }
  0xbf   :  { %v2369_v22 = vadd.f32 %v721_v55, %v552_v18  ;;  %v1655_v55 = vor.u32 %v1816_v50, %v1652_v53  ;;  %v808_v37 = vpop.f32.mrf.mxu3  ;;  %v1671_v50 = vor.u32 %v1820_v42, %v1668_v47  ;;  %v1825_v42 = vld [vmem:[%s3550_s0 + $0x1e4] sm:$0xf0]  ;;  %v1684_v47 = vld [vmem:[%s3550_s0 + $0x1e8] sm:$0xf0] }
  0xc1   :  { %3613 = vst [vmem:[#allocation4_spill] sm:$0xff] %v2369_v22  ;;  %591 = vmatmul.bf16.gmra.mxu0 %v1523_v17  ;;  %1758 = vmatmul.msk.bf16.gmra.mxu3 %vm436_vm0, %v1655_v55  ;;  %v1660_v17 = vld [vmem:[%s3550_s0 + $0x1b8] sm:$0xf0] }
  0xc2   :  { %v731_v29 = vpop.f32.mrf.mxu1  ;;  %671 = vmatmul.bf16.gmra.mxu2 %v1651_v52 }
  0xc5   :  { %1744 = vmatmul.msk.bf16.gmra.mxu1 %vm436_vm0, %v1543_v26  ;;  %v632_v57 = vpop.f32.mrf.mxu2 }
  0xc6   :  { %v554_v31 = vpop.f32.mrf.mxu0  ;;  %v2427_v0 = vadd.f32 %v801_v60, %v632_v57  ;;  %v1793_v57 = vld [vmem:[%s3550_s0 + $0xe4] sm:$0xf0] }
  0xc7   :  { %v2385_v33 = vadd.f32 %v723_v59, %v554_v31 }
  0xc8   :  { %3618 = vst [vmem:[#allocation9_spill] sm:$0xff] %v2427_v0 }
  0xc9   :  { %3614 = vst [vmem:[#allocation5_spill] sm:$0xff] %v2385_v33 }
  0xca   :  { %v733_v35 = vpop.f32.mrf.mxu1 }
  0xcd   :  { %v634_v6 = vpop.f32.mrf.mxu2 }
  0xce   :  { %v557_v40 = vpop.f32.mrf.mxu0 }
  0xcf   :  { %v2401_v44 = vadd.f32 %v726_v9, %v557_v40  ;;  %v2437_v9 = vadd.f32 %v803_v8, %v634_v6  ;;  %v1666_v40 = vld [vmem:[%s3550_s0 + $0x1c0] sm:$0xf]  ;;  %v1674_v8 = vld [vmem:[%s3550_s0 + $0x1d0] sm:$0xf] }
  0xd0   :  { %v1667_v45 = vor.u32 %v1821_v41, %v1666_v40  ;;  %v1682_v41 = vld [vmem:[%s3550_s0 + $0x1e0] sm:$0xf] }
  0xd1   :  { %3616 = vst [vmem:[#allocation7_spill] sm:$0xff] %v2401_v44  ;;  %596 = vmatmul.bf16.gmra.mxu0 %v1531_v39 }
  0xd2   :  { %v736_v54 = vpop.f32.mrf.mxu1  ;;  %3620 = vst [vmem:[#allocation11_spill] sm:$0xff] %v2437_v9  ;;  %676 = vmatmul.bf16.gmra.mxu2 %v1659_v16  ;;  %v1676_v16 = vld [vmem:[%s3550_s0 + $0x1d8] sm:$0xf0] }
  0xd5   :  { %1745 = vmatmul.msk.bf16.gmra.mxu1 %vm436_vm0, %v1551_v51  ;;  %v637_v23 = vpop.f32.mrf.mxu2 }
  0xd6   :  { %v559_v56 = vpop.f32.mrf.mxu0 }
  0xd7   :  { %v2419_v59 = vadd.f32 %v728_v14, %v559_v56  ;;  %v1818_v14 = vld [vmem:[%s3550_s0 + $0x1b4] sm:$0xf]  ;;  %v1554_v56 = vld [vmem:[%s3550_s0 + $0xe0] sm:$0xf] }
  0xd8   :  { %v1663_v19 = vor.u32 %v1818_v14, %v1660_v17  ;;  %v1555_v62 = vor.u32 %v1793_v57, %v1554_v56 }
  0xd9   :  { %3617 = vst [vmem:[#allocation8_spill] sm:$0xff] %v2419_v59 }
  0xda   :  { %v738_v61 = vpop.f32.mrf.mxu1  ;;  %1759 = vmatmul.msk.bf16.gmra.mxu3 %vm436_vm0, %v1663_v19 }
  0xde   :  { %v562_v3 = vpop.f32.mrf.mxu0 }
  0xdf   :  { %v2435_v7 = vadd.f32 %v731_v29, %v562_v3  ;;  %v2461_v29 = vadd.f32 %v806_v25, %v637_v23 }
  0xe1   :  { %3619 = vst [vmem:[#allocation10_spill] sm:$0xff] %v2435_v7  ;;  %601 = vmatmul.bf16.gmra.mxu0 %v1539_v1  ;;  %v1796_v1 = vld [vmem:[%s3550_s0 + $0x104] sm:$0xf] }
  0xe2   :  { %v741_v18 = vpop.f32.mrf.mxu1  ;;  %3622 = vst [vmem:[#allocation13_spill] sm:$0xff] %v2461_v29  ;;  %681 = vmatmul.bf16.gmra.mxu2 %v1667_v45  ;;  %v1683_v45 = vor.u32 %v1825_v42, %v1682_v41 }
  0xe5   :  { %1746 = vmatmul.msk.bf16.gmra.mxu1 %vm436_vm0, %v1559_v15  ;;  %v1675_v15 = vor.u32 %v1823_v10, %v1674_v8  ;;  %v1690_v8 = vld [vmem:[%s3550_s0 + $0x1f0] sm:$0xf]  ;;  %v1826_v10 = vld [vmem:[%s3550_s0 + $0x1f4] sm:$0xf] }
  0xe6   :  { %v564_v20 = vpop.f32.mrf.mxu0 }
  0xe7   :  { %v2453_v24 = vadd.f32 %v733_v35, %v564_v20  ;;  %v639_v35 = vpop.f32.mrf.mxu2 }
  0xe8   :  { %v2471_v39 = vadd.f32 %v808_v37, %v639_v35 }
  0xe9   :  { %3621 = vst [vmem:[#allocation12_spill] sm:$0xff] %v2453_v24 }
  0xea   :  { %v743_v26 = vpop.f32.mrf.mxu1  ;;  %3624 = vst [vmem:[#allocation15_spill] sm:$0xff] %v2471_v39  ;;  %1760 = vmatmul.msk.bf16.gmra.mxu3 %vm436_vm0, %v1671_v50 }
  0xee   :  { %v567_v31 = vpop.f32.mrf.mxu0 }
  0xef   :  { %v2469_v36 = vadd.f32 %v736_v54, %v567_v31  ;;  %v642_v52 = vpop.f32.mrf.mxu2  ;;  %v811_v54 = vpop.f32.mrf.mxu3 }
  0xf0   :  { %v2495_v60 = vadd.f32 %v811_v54, %v642_v52 }
  0xf1   :  { %3623 = vst [vmem:[#allocation14_spill] sm:$0xff] %v2469_v36  ;;  %606 = vmatmul.bf16.gmra.mxu0 %v1547_v30  ;;  %v1795_v30 = vld [vmem:[%s3550_s0 + $0xf4] sm:$0xf0] }
  0xf2   :  { %v746_v49 = vpop.f32.mrf.mxu1  ;;  %686 = vmatmul.bf16.gmra.mxu2 %v1675_v15  ;;  %v1563_v32 = vor.u32 %v1795_v30, %v1562_v28 }
  0xf5   :  { %1747 = vmatmul.msk.bf16.gmra.mxu1 %vm436_vm0, %v1567_v43  ;;  %v1824_v43 = vld [vmem:[%s3550_s0 + $0x1e4] sm:$0xf] }
  0xf6   :  { %v569_v51 = vpop.f32.mrf.mxu0  ;;  %v1687_v50 = vor.u32 %v1824_v43, %v1684_v47 }
  0xf7   :  { %v2487_v53 = vadd.f32 %v738_v61, %v569_v51  ;;  %v1572_v61 = vld [vmem:[%s3550_s0 + $0x108] sm:$0xf0]  ;;  %v644_v3 = vpop.f32.mrf.mxu2  ;;  %v813_v5 = vpop.f32.mrf.mxu3 }
  0xf8   :  { %v2505_v6 = vadd.f32 %v813_v5, %v644_v3  ;;  %v1575_v14 = vor.u32 %v1796_v1, %v1572_v61 }
  0xf9   :  { %3625 = vst [vmem:[#allocation16_spill] sm:$0xff] %v2487_v53 }
  0xfa   :  { %v748_v55 = vpop.f32.mrf.mxu1 }
  0xfe   :  { %v572_v63 = vpop.f32.mrf.mxu0 }
  0xff   :  { %v2503_v4 = vadd.f32 %v741_v18, %v572_v63  ;;  %v1679_v18 = vor.u32 %v1822_v11, %v1676_v16  ;;  %v647_v20 = vpop.f32.mrf.mxu2  ;;  %v816_v25 = vpop.f32.mrf.mxu3 }
 0x100   :  { %v2529_v31 = vadd.f32 %v816_v25, %v647_v20 }
 0x101   :  { %3626 = vst [vmem:[#allocation17_spill] sm:$0xff] %v2503_v4  ;;  %611 = vmatmul.bf16.gmra.mxu0 %v1555_v62  ;;  %1761 = vmatmul.msk.bf16.gmra.mxu3 %vm436_vm0, %v1679_v18 }
 0x102   :  { %v751_v17 = vpop.f32.mrf.mxu1  ;;  %691 = vmatmul.bf16.gmra.mxu2 %v1683_v45 }
 0x105   :  { %1748 = vmatmul.msk.bf16.gmra.mxu1 %vm436_vm0, %v1575_v14  ;;  %v1692_v14 = vld [vmem:[%s3550_s0 + $0x1f8] sm:$0xf0] }
 0x106   :  { %v574_v19 = vpop.f32.mrf.mxu0  ;;  %v1695_v16 = vor.u32 %v1826_v10, %v1692_v14 }
 0x107   :  { %v2521_v23 = vadd.f32 %v743_v26, %v574_v19  ;;  %v649_v35 = vpop.f32.mrf.mxu2  ;;  %v818_v40 = vpop.f32.mrf.mxu3 }
 0x108   :  { %v2533_v26 = vadd.f32 %v818_v40, %v649_v35 }
 0x109   :  { %3627 = vst [vmem:[#allocation18_spill] sm:$0xff] %v2521_v23 }
 0x10a   :  { %v753_v27 = vpop.f32.mrf.mxu1  ;;  %3629 = vst [vmem:[#allocation20_spill] sm:$0xff] %v2533_v26 }
 0x10e   :  { %v577_v34 = vpop.f32.mrf.mxu0 }
 0x10f   :  { %v2531_v37 = vadd.f32 %v746_v49, %v577_v34  ;;  %v652_v52 = vpop.f32.mrf.mxu2  ;;  %v821_v56 = vpop.f32.mrf.mxu3 }
 0x110   :  { %v2550_v62 = vadd.f32 %v821_v56, %v652_v52 }
 0x111   :  { %3628 = vst [vmem:[#allocation19_spill] sm:$0xff] %v2531_v37  ;;  %616 = vmatmul.bf16.gmra.mxu0 %v1563_v32  ;;  %1762 = vmatmul.msk.bf16.gmra.mxu3 %vm436_vm0, %v1687_v50 }
 0x112   :  { %v756_v49 = vpop.f32.mrf.mxu1  ;;  %3630 = vst [vmem:[#allocation21_spill] sm:$0xff] %v2550_v62 }
 0x116   :  { %v579_v51 = vpop.f32.mrf.mxu0 }
 0x117   :  { %v2548_v54 = vadd.f32 %v748_v55, %v579_v51  ;;  %v654_v1 = vpop.f32.mrf.mxu2  ;;  %v823_v3 = vpop.f32.mrf.mxu3  ;;  %v1827_v55 = vld [vmem:[%s3550_s0 + $0x1f4] sm:$0xf0]  ;;  %s2045_s0 = smov 96  }
 0x118   :  { %v2554_v5 = vadd.f32 %v823_v3, %v654_v1  ;;  %v1691_v11 = vor.u32 %v1827_v55, %v1690_v8 }
 0x11a   :  { %v758_v57 = vpop.f32.mrf.mxu1  ;;  %696 = vmatmul.bf16.gmra.mxu2 %v1691_v11 }
 0x11e   :  { %v582_v63 = vpop.f32.mrf.mxu0 }
 0x11f   :  { %v2552_v61 = vadd.f32 %v751_v17, %v582_v63  ;;  %v657_v18 = vpop.f32.mrf.mxu2  ;;  %v826_v20 = vpop.f32.mrf.mxu3 }
 0x120   :  { %v2573_v28 = vadd.f32 %v826_v20, %v657_v18 }
 0x121   :  { %1763 = vmatmul.msk.bf16.gmra.mxu3 %vm436_vm0, %v1695_v16 }
 0x122   :  { %v761_v15 = vpop.f32.mrf.mxu1 }
 0x126   :  { %v584_v17 = vpop.f32.mrf.mxu0 }
 0x127   :  { %v2569_v19 = vadd.f32 %v753_v27, %v584_v17  ;;  %v659_v32 = vpop.f32.mrf.mxu2  ;;  %v828_v35 = vpop.f32.mrf.mxu3 }
 0x128   :  { %v2577_v40 = vadd.f32 %v828_v35, %v659_v32  ;;  %v941_v35 = vmul.f32 %v2321_v58, %v2321_v58 }
 0x12a   :  { %v2571_v25 = vpop.f32.mrf.mxu1 }
 0x12e   :  { %v587_v30 = vpop.f32.mrf.mxu0 }
 0x12f   :  { %v2575_v34 = vadd.f32 %v756_v49, %v587_v30  ;;  %v662_v43 = vpop.f32.mrf.mxu2  ;;  %v831_v27 = vpop.f32.mrf.mxu3 }
 0x130   :  { %v2585_v50 = vadd.f32 %v831_v27, %v662_v43  ;;  %v940_v43 = vmul.f32 %v2305_v48, %v2305_v48  ;;  %v871_v27 = vadd.f32 %v2321_v58, %v2305_v48  ;;  %v945_v48 = vmul.f32 %v2385_v33, %v2385_v33 }
 0x132   :  { %v2579_v41 = vpop.f32.mrf.mxu1 }
 0x136   :  { %v589_v42 = vpop.f32.mrf.mxu0 }
 0x137   :  { %v2581_v45 = vadd.f32 %v758_v57, %v589_v42  ;;  %v664_v52 = vpop.f32.mrf.mxu2  ;;  %v833_v49 = vpop.f32.mrf.mxu3 }
 0x138   :  { %v2589_v63 = vadd.f32 %v833_v49, %v664_v52  ;;  %v1004_v49 = vadd.f32 %v941_v35, %v940_v43 }
 0x13a   :  { %v2583_v47 = vpop.f32.mrf.mxu1 }
 0x13e   :  { %v592_v51 = vpop.f32.mrf.mxu0 }
 0x13f   :  { %v2587_v56 = vadd.f32 %v761_v15, %v592_v51  ;;  %v667_v8 = vpop.f32.mrf.mxu2  ;;  %v836_v55 = vpop.f32.mrf.mxu3  ;;  %v942_v51 = vmul.f32 %v2335_v2, %v2335_v2 }
 0x140   :  { %v2597_v10 = vadd.f32 %v836_v55, %v667_v8  ;;  %v872_v8 = vadd.f32 %v871_v27, %v2335_v2  ;;  %v943_v55 = vmul.f32 %v2353_v13, %v2353_v13  ;;  %v946_v27 = vmul.f32 %v2401_v44, %v2401_v44 }
 0x142   :  { %v2591_v1 = vpop.f32.mrf.mxu1 }
 0x146   :  { %v2593_v3 = vpop.f32.mrf.mxu0 }
 0x147   :  { %v669_v14 = vpop.f32.mrf.mxu2  ;;  %v838_v16 = vpop.f32.mrf.mxu3 }
 0x148   :  { %v2601_v17 = vadd.f32 %v838_v16, %v669_v14  ;;  %v1005_v14 = vadd.f32 %v1004_v49, %v942_v51  ;;  %v873_v16 = vadd.f32 %v872_v8, %v2353_v13 }
 0x14a   :  { %v2595_v57 = vpop.f32.mrf.mxu1  ;;  %v874_v58 = vadd.f32 %v873_v16, %v2369_v22 }
 0x14c   :  { %v875_v43 = vadd.f32 %v874_v58, %v2385_v33 }
 0x14e   :  { %v2599_v11 = vpop.f32.mrf.mxu0  ;;  %v876_v8 = vadd.f32 %v875_v43, %v2401_v44 }
 0x14f   :  { %v672_v20 = vpop.f32.mrf.mxu2  ;;  %v841_v32 = vpop.f32.mrf.mxu3 }
 0x150   :  { %v2611_v42 = vadd.f32 %v841_v32, %v672_v20  ;;  %v944_v20 = vmul.f32 %v2369_v22, %v2369_v22  ;;  %v1006_v32 = vadd.f32 %v1005_v14, %v943_v55  ;;  %v947_v55 = vmul.f32 %v2419_v59, %v2419_v59 }
 0x151   :  { %v877_v16 = vadd.f32 %v876_v8, %v2419_v59  ;;  %v948_v22 = vmul.f32 %v2435_v7, %v2435_v7 }
 0x152   :  { %v2603_v15 = vpop.f32.mrf.mxu1  ;;  %3631 = vst [vmem:[#allocation22_spill] sm:$0xff] %v2611_v42  ;;  %v1007_v35 = vadd.f32 %v1006_v32, %v944_v20  ;;  %v949_v32 = vmul.f32 %v2453_v24, %v2453_v24 }
 0x153   :  { %v878_v58 = vadd.f32 %v877_v16, %v2435_v7  ;;  %v953_v7 = vmul.f32 %v2521_v23, %v2521_v23 }
 0x154   :  { %v1008_v49 = vadd.f32 %v1007_v35, %v945_v48  ;;  %v950_v35 = vmul.f32 %v2469_v36, %v2469_v36 }
 0x155   :  { %v879_v48 = vadd.f32 %v878_v58, %v2453_v24 }
 0x156   :  { %v2605_v18 = vpop.f32.mrf.mxu0  ;;  %v1009_v14 = vadd.f32 %v1008_v49, %v946_v27 }
 0x157   :  { %v2649_v43 = vpop.f32.mrf.mxu2  ;;  %v2651_v27 = vpop.f32.mrf.mxu3 }
 0x158   :  { %v1010_v20 = vadd.f32 %v1009_v14, %v947_v55  ;;  %v880_v55 = vadd.f32 %v879_v48, %v2469_v36  ;;  %v951_v14 = vmul.f32 %v2487_v53, %v2487_v53 }
 0x15a   :  { %v2607_v30 = vpop.f32.mrf.mxu1  ;;  %v1011_v33 = vadd.f32 %v1010_v20, %v948_v22  ;;  %v881_v22 = vadd.f32 %v880_v55, %v2487_v53  ;;  %v952_v20 = vmul.f32 %v2503_v4, %v2503_v4 }
 0x15c   :  { %v1012_v59 = vadd.f32 %v1011_v33, %v949_v32  ;;  %v882_v24 = vadd.f32 %v881_v22, %v2503_v4  ;;  %v954_v32 = vmul.f32 %v2531_v37, %v2531_v37 }
 0x15e   :  { %v2619_v52 = vpop.f32.mrf.mxu0  ;;  %v1013_v16 = vadd.f32 %v1012_v59, %v950_v35  ;;  %v883_v33 = vadd.f32 %v882_v24, %v2521_v23  ;;  %v955_v35 = vmul.f32 %v2548_v54, %v2548_v54  ;;  %v956_v24 = vmul.f32 %v2552_v61, %v2552_v61 }
 0x15f   :  { %v2670_v55 = vpop.f32.mrf.mxu2 }
 0x160   :  { %v1014_v58 = vadd.f32 %v1013_v16, %v951_v14  ;;  %v884_v59 = vadd.f32 %v883_v33, %v2531_v37  ;;  %v2672_v14 = vpop.f32.mrf.mxu3  ;;  %v958_v37 = vmul.f32 %v2575_v34, %v2575_v34 }
 0x162   :  { %v2630_v42 = vpop.f32.mrf.mxu1  ;;  %v1015_v44 = vadd.f32 %v1014_v58, %v952_v20  ;;  %v885_v20 = vadd.f32 %v884_v59, %v2548_v54  ;;  %v2688_v59 = vadd.f32 %v2571_v25, %v2593_v3 }
 0x164   :  { %v1016_v36 = vadd.f32 %v1015_v44, %v953_v7  ;;  %v886_v23 = vadd.f32 %v885_v20, %v2552_v61  ;;  %v957_v44 = vmul.f32 %v2569_v19, %v2569_v19  ;;  %v2695_v20 = vadd.f32 %v2579_v41, %v2599_v11 }
 0x165   :  { %v2713_v11 = vadd.f32 %v2591_v1, %v2619_v52 }
 0x166   :  { %v2635_v51 = vpop.f32.mrf.mxu0  ;;  %v1017_v22 = vadd.f32 %v1016_v36, %v954_v32  ;;  %v887_v33 = vadd.f32 %v886_v23, %v2569_v19  ;;  %v959_v32 = vmul.f32 %v2581_v45, %v2581_v45  ;;  %v960_v23 = vmul.f32 %v2587_v56, %v2587_v56 }
 0x167   :  { %v962_v41 = vmul.f32 %v2695_v20, %v2695_v20 }
 0x168   :  { %v1018_v58 = vadd.f32 %v1017_v22, %v955_v35  ;;  %v888_v36 = vadd.f32 %v887_v33, %v2575_v34 }
 0x16a   :  { %v2653_v49 = vpop.f32.mrf.mxu1  ;;  %v1019_v7 = vadd.f32 %v1018_v58, %v956_v24  ;;  %v889_v22 = vadd.f32 %v888_v36, %v2581_v45  ;;  %v2697_v24 = vpop.f32.mrf.mxu2 }
 0x16b   :  { %v2699_v58 = vpop.f32.mrf.mxu3 }
 0x16c   :  { %v1020_v53 = vadd.f32 %v1019_v7, %v957_v44  ;;  %v890_v33 = vadd.f32 %v889_v22, %v2587_v56 }
 0x16e   :  { %v607_v8 = vpop.f32.mrf.mxu0  ;;  %v1021_v35 = vadd.f32 %v1020_v53, %v958_v37  ;;  %v961_v53 = vmul.f32 %v2688_v59, %v2688_v59  ;;  %v2706_v37 = vadd.f32 %v2583_v47, %v2605_v18  ;;  %v891_v3 = vadd.f32 %v890_v33, %v2688_v59 }
 0x16f   :  { %v2720_v47 = vadd.f32 %v2595_v57, %v2635_v51  ;;  %v2726_v1 = vadd.f32 %v2603_v15, %v607_v8 }
 0x170   :  { %v1022_v7 = vadd.f32 %v1021_v35, %v959_v32  ;;  %v892_v35 = vadd.f32 %v891_v3, %v2695_v20  ;;  %v963_v22 = vmul.f32 %v2706_v37, %v2706_v37 }
 0x171   :  { %v966_v15 = vmul.f32 %v2726_v1, %v2726_v1 }
 0x172   :  { %v786_v16 = vpop.f32.mrf.mxu1  ;;  %v1023_v25 = vadd.f32 %v1022_v7, %v960_v23  ;;  %v893_v23 = vadd.f32 %v892_v35, %v2706_v37  ;;  %v964_v7 = vmul.f32 %v2713_v11, %v2713_v11  ;;  %v2734_v57 = vpop.f32.mrf.mxu2 }
 0x173   :  { %v2736_v51 = vpop.f32.mrf.mxu3 }
 0x174   :  { %v1024_v32 = vadd.f32 %v1023_v25, %v961_v53  ;;  %v894_v33 = vadd.f32 %v893_v23, %v2713_v11  ;;  %v965_v53 = vmul.f32 %v2720_v47, %v2720_v47 }
 0x176   :  { %v609_v48 = vpop.f32.mrf.mxu0  ;;  %v1025_v18 = vadd.f32 %v1024_v32, %v962_v41  ;;  %v895_v32 = vadd.f32 %v894_v33, %v2720_v47 }
 0x177   :  { %v2732_v25 = vadd.f32 %v2607_v30, %v609_v48 }
 0x178   :  { %v1026_v52 = vadd.f32 %v1025_v18, %v963_v22  ;;  %v896_v18 = vadd.f32 %v895_v32, %v2726_v1 }
 0x179   :  { %3632 = vst [vmem:[#allocation23_spill] sm:$0xff] %v2732_v25  ;;  %v967_v30 = vmul.f32 %v2732_v25, %v2732_v25 }
 0x17a   :  { %v788_v44 = vpop.f32.mrf.mxu1  ;;  %v1027_v41 = vadd.f32 %v1026_v52, %v964_v7  ;;  %v897_v7 = vadd.f32 %v896_v18, %v2732_v25 }
 0x17c   :  { %v1028_v22 = vadd.f32 %v1027_v41, %v965_v53 }
 0x17e   :  { %v612_v4 = vpop.f32.mrf.mxu0  ;;  %v1029_v23 = vadd.f32 %v1028_v22, %v966_v15  ;;  %v2763_v15 = vpop.f32.mrf.mxu3 }
 0x17f   :  { %v2742_v8 = vadd.f32 %v2630_v42, %v612_v4 }
 0x180   :  { %v1030_v4 = vadd.f32 %v1029_v23, %v967_v30 }
 0x181   :  { %v968_v52 = vmul.f32 %v2742_v8, %v2742_v8  ;;  %v898_v42 = vadd.f32 %v897_v7, %v2742_v8 }
 0x182   :  { %v791_v3 = vpop.f32.mrf.mxu1 }
 0x183   :  { %v1031_v41 = vadd.f32 %v1030_v4, %v968_v52 }
 0x186   :  { %v614_v36 = vpop.f32.mrf.mxu0 }
 0x187   :  { %v2748_v48 = vadd.f32 %v2653_v49, %v614_v36  ;;  %v2761_v36 = vpop.f32.mrf.mxu2 }
 0x189   :  { %3633 = vst [vmem:[#allocation24_spill] sm:$0xff] %v2748_v48  ;;  %v969_v53 = vmul.f32 %v2748_v48, %v2748_v48  ;;  %v899_v32 = vadd.f32 %v898_v42, %v2748_v48 }
 0x18a   :  { %v793_v22 = vpop.f32.mrf.mxu1 }
 0x18b   :  { %v2772_v7 = vadd.f32 %v793_v22, %v2367_v21  ;;  %v974_v21 = vmul.f32 %v2393_v38, %v2393_v38 }
 0x18d   :  { %3634 = vst [vmem:[#allocation25_spill] sm:$0xff] %v2772_v7 }
 0x18e   :  { %v617_v35 = vpop.f32.mrf.mxu0 }
 0x18f   :  { %v2753_v33 = vadd.f32 %v786_v16, %v617_v35  ;;  %v2766_v16 = vadd.f32 %v791_v3, %v2351_v12  ;;  %v1032_v35 = vadd.f32 %v1031_v41, %v969_v53  ;;  %v973_v53 = vmul.f32 %v2772_v7, %v2772_v7  ;;  %v2786_v22 = vpop.f32.mrf.mxu2 }
 0x191   :  { %v970_v49 = vmul.f32 %v2753_v33, %v2753_v33  ;;  %v900_v30 = vadd.f32 %v899_v32, %v2753_v33  ;;  %v972_v48 = vmul.f32 %v2766_v16, %v2766_v16 }
 0x193   :  { %v1033_v52 = vadd.f32 %v1032_v35, %v970_v49  ;;  %v975_v35 = vmul.f32 %v2403_v46, %v2403_v46 }
 0x196   :  { %v619_v18 = vpop.f32.mrf.mxu0 }
 0x197   :  { %v2769_v23 = vadd.f32 %v788_v44, %v619_v18  ;;  %v2788_v18 = vpop.f32.mrf.mxu3 }
 0x199   :  { %v901_v4 = vadd.f32 %v900_v30, %v2769_v23  ;;  %v971_v42 = vmul.f32 %v2769_v23, %v2769_v23 }
 0x19b   :  { %v902_v12 = vadd.f32 %v901_v4, %v2766_v16  ;;  %v1034_v3 = vadd.f32 %v1033_v52, %v971_v42  ;;  %v976_v4 = vmul.f32 %v2427_v0, %v2427_v0 }
 0x19d   :  { %v903_v44 = vadd.f32 %v902_v12, %v2772_v7  ;;  %v1035_v41 = vadd.f32 %v1034_v3, %v972_v48  ;;  %v977_v12 = vmul.f32 %v2437_v9, %v2437_v9 }
 0x19f   :  { %v904_v32 = vadd.f32 %v903_v44, %v2393_v38  ;;  %v1036_v49 = vadd.f32 %v1035_v41, %v973_v53  ;;  %v978_v44 = vmul.f32 %v2461_v29, %v2461_v29 }
 0x1a1   :  { %v905_v30 = vadd.f32 %v904_v32, %v2403_v46  ;;  %v1037_v52 = vadd.f32 %v1036_v49, %v974_v21  ;;  %v979_v21 = vmul.f32 %v2471_v39, %v2471_v39 }
 0x1a3   :  { %v906_v48 = vadd.f32 %v905_v30, %v2427_v0  ;;  %v1038_v42 = vadd.f32 %v1037_v52, %v975_v35  ;;  %v2805_v30 = vpop.f32.mrf.mxu2  ;;  %v2807_v35 = vpop.f32.mrf.mxu3  ;;  %v980_v52 = vmul.f32 %v2495_v60, %v2495_v60  ;;  %v3680_v0 = vld [vmem:[#allocation8_spill] sm:$0xff] }
 0x1a5   :  { %v907_v3 = vadd.f32 %v906_v48, %v2437_v9  ;;  %v1039_v53 = vadd.f32 %v1038_v42, %v976_v4  ;;  %v981_v42 = vmul.f32 %v2505_v6, %v2505_v6  ;;  %v3666_v9 = vld [vmem:[#allocation20_spill] sm:$0xff] }
 0x1a7   :  { %v908_v41 = vadd.f32 %v907_v3, %v2461_v29  ;;  %v1040_v38 = vadd.f32 %v1039_v53, %v977_v12  ;;  %v982_v53 = vmul.f32 %v2529_v31, %v2529_v31 }
 0x1a9   :  { %v909_v32 = vadd.f32 %v908_v41, %v2471_v39  ;;  %v1041_v49 = vadd.f32 %v1040_v38, %v978_v44  ;;  %v983_v41 = vmul.f32 %v2533_v26, %v2533_v26 }
 0x1ab   :  { %v910_v4 = vadd.f32 %v909_v32, %v2495_v60  ;;  %v1042_v48 = vadd.f32 %v1041_v49, %v979_v21  ;;  %v984_v21 = vmul.f32 %v2550_v62, %v2550_v62 }
 0x1ad   :  { %v911_v12 = vadd.f32 %v910_v4, %v2505_v6  ;;  %v1043_v3 = vadd.f32 %v1042_v48, %v980_v52  ;;  %v692_v4 = vpop.f32.mrf.mxu2  ;;  %v861_v52 = vpop.f32.mrf.mxu3  ;;  %v985_v48 = vmul.f32 %v2554_v5, %v2554_v5 }
 0x1af   :  { %v912_v38 = vadd.f32 %v911_v12, %v2529_v31  ;;  %v1044_v44 = vadd.f32 %v1043_v3, %v981_v42  ;;  %v986_v3 = vmul.f32 %v2573_v28, %v2573_v28 }
 0x1b1   :  { %v913_v39 = vadd.f32 %v912_v38, %v2533_v26  ;;  %v1045_v29 = vadd.f32 %v1044_v44, %v982_v53  ;;  %v987_v44 = vmul.f32 %v2577_v40, %v2577_v40 }
 0x1b3   :  { %v1046_v32 = vadd.f32 %v1045_v29, %v983_v41  ;;  %v914_v49 = vadd.f32 %v913_v39, %v2550_v62  ;;  %v988_v41 = vmul.f32 %v2585_v50, %v2585_v50 }
 0x1b5   :  { %v915_v12 = vadd.f32 %v914_v49, %v2554_v5  ;;  %v1047_v42 = vadd.f32 %v1046_v32, %v984_v21  ;;  %v989_v21 = vmul.f32 %v2589_v63, %v2589_v63 }
 0x1b7   :  { %v916_v38 = vadd.f32 %v915_v12, %v2573_v28  ;;  %v1048_v53 = vadd.f32 %v1047_v42, %v985_v48  ;;  %v694_v12 = vpop.f32.mrf.mxu2  ;;  %v863_v48 = vpop.f32.mrf.mxu3  ;;  %v990_v42 = vmul.f32 %v2597_v10, %v2597_v10 }
 0x1b9   :  { %v917_v29 = vadd.f32 %v916_v38, %v2577_v40  ;;  %v1049_v39 = vadd.f32 %v1048_v53, %v986_v3  ;;  %v991_v53 = vmul.f32 %v2601_v17, %v2601_v17 }
 0x1bb   :  { %v918_v62 = vadd.f32 %v917_v29, %v2585_v50  ;;  %v1050_v26 = vadd.f32 %v1049_v39, %v987_v44  ;;  %v2846_v44 = vadd.f32 %v2651_v27, %v2649_v43  ;;  %v2860_v43 = vadd.f32 %v2699_v58, %v2697_v24 }
 0x1bd   :  { %v919_v32 = vadd.f32 %v918_v62, %v2589_v63  ;;  %v1051_v49 = vadd.f32 %v1050_v26, %v988_v41  ;;  %3635 = vst [vmem:[#allocation26_spill] sm:$0xff] %v2846_v44  ;;  %v3636_v62 = vld [vmem:[#allocation22_spill] sm:$0xff]  ;;  %v2853_v41 = vadd.f32 %v2672_v14, %v2670_v55  ;;  %v2867_v55 = vadd.f32 %v2736_v51, %v2734_v57 }
 0x1be   :  { %v992_v26 = vmul.f32 %v3636_v62, %v3636_v62  ;;  %3638 = vst [vmem:[#allocation27_spill] sm:$0xff] %v2860_v43 }
 0x1bf   :  { %v920_v38 = vadd.f32 %v919_v32, %v2597_v10  ;;  %v1052_v3 = vadd.f32 %v1051_v49, %v989_v21  ;;  %3637 = vst [vmem:[#allocation22_spill] sm:$0xff] %v2853_v41  ;;  %v993_v49 = vmul.f32 %v2846_v44, %v2846_v44  ;;  %v996_v57 = vmul.f32 %v2867_v55, %v2867_v55 }
 0x1c0   :  { %3639 = vst [vmem:[#allocation28_spill] sm:$0xff] %v2867_v55 }
 0x1c1   :  { %v921_v29 = vadd.f32 %v920_v38, %v2601_v17  ;;  %v1053_v39 = vadd.f32 %v1052_v3, %v990_v42  ;;  %v994_v38 = vmul.f32 %v2853_v41, %v2853_v41 }
 0x1c3   :  { %v922_v32 = vadd.f32 %v921_v29, %v3636_v62  ;;  %v1054_v21 = vadd.f32 %v1053_v39, %v991_v53  ;;  %v697_v53 = vpop.f32.mrf.mxu2  ;;  %v866_v29 = vpop.f32.mrf.mxu3  ;;  %v995_v39 = vmul.f32 %v2860_v43, %v2860_v43 }
 0x1c5   :  { %v923_v27 = vadd.f32 %v922_v32, %v2846_v44  ;;  %v1055_v42 = vadd.f32 %v1054_v21, %v992_v26  ;;  %v2875_v26 = vadd.f32 %v2763_v15, %v2761_v36  ;;  %v2882_v21 = vadd.f32 %v2788_v18, %v2786_v22 }
 0x1c6   :  { %v2889_v36 = vadd.f32 %v2807_v35, %v2805_v30 }
 0x1c7   :  { %v924_v14 = vadd.f32 %v923_v27, %v2853_v41  ;;  %v1056_v3 = vadd.f32 %v1055_v42, %v993_v49  ;;  %3640 = vst [vmem:[#allocation29_spill] sm:$0xff] %v2875_v26  ;;  %v997_v42 = vmul.f32 %v2875_v26, %v2875_v26 }
 0x1c8   :  { %3641 = vst [vmem:[#allocation30_spill] sm:$0xff] %v2882_v21 }
 0x1c9   :  { %v925_v24 = vadd.f32 %v924_v14, %v2860_v43  ;;  %v1057_v58 = vadd.f32 %v1056_v3, %v994_v38  ;;  %3642 = vst [vmem:[#allocation31_spill] sm:$0xff] %v2889_v36  ;;  %v998_v14 = vmul.f32 %v2882_v21, %v2882_v21  ;;  %v2894_v3 = vadd.f32 %v861_v52, %v692_v4 }
 0x1cb   :  { %v926_v32 = vadd.f32 %v925_v24, %v2867_v55  ;;  %v1058_v51 = vadd.f32 %v1057_v58, %v995_v39  ;;  %3643 = vst [vmem:[#allocation32_spill] sm:$0xff] %v2894_v3  ;;  %v999_v39 = vmul.f32 %v2889_v36, %v2889_v36  ;;  %v2899_v24 = vadd.f32 %v863_v48, %v694_v12  ;;  %v699_v58 = vpop.f32.mrf.mxu2 }
 0x1cd   :  { %v1059_v49 = vadd.f32 %v1058_v51, %v996_v57  ;;  %v927_v27 = vadd.f32 %v926_v32, %v2875_v26  ;;  %3644 = vst [vmem:[#allocation33_spill] sm:$0xff] %v2899_v24  ;;  %v868_v32 = vpop.f32.mrf.mxu3  ;;  %v1000_v57 = vmul.f32 %v2894_v3, %v2894_v3  ;;  %v2904_v51 = vadd.f32 %v866_v29, %v697_v53 }
 0x1cf   :  { %v1060_v15 = vadd.f32 %v1059_v49, %v997_v42  ;;  %v928_v38 = vadd.f32 %v927_v27, %v2882_v21  ;;  %3645 = vst [vmem:[#allocation34_spill] sm:$0xff] %v2904_v51  ;;  %v1001_v49 = vmul.f32 %v2899_v24, %v2899_v24  ;;  %v2909_v27 = vadd.f32 %v868_v32, %v699_v58 }
 0x1d0   :  { %v1002_v42 = vmul.f32 %v2904_v51, %v2904_v51 }
 0x1d1   :  { %v1061_v22 = vadd.f32 %v1060_v15, %v998_v14  ;;  %v929_v18 = vadd.f32 %v928_v38, %v2889_v36  ;;  %3646 = vst [vmem:[#allocation35_spill] sm:$0xff] %v2909_v27  ;;  %v1003_v53 = vmul.f32 %v2909_v27, %v2909_v27 }
 0x1d3   :  { %v1062_v30 = vadd.f32 %v1061_v22, %v999_v39  ;;  %v930_v35 = vadd.f32 %v929_v18, %v2894_v3 }
 0x1d5   :  { %v1063_v4 = vadd.f32 %v1062_v30, %v1000_v57  ;;  %v931_v52 = vadd.f32 %v930_v35, %v2899_v24 }
 0x1d7   :  { %v1064_v12 = vadd.f32 %v1063_v4, %v1001_v49  ;;  %v932_v48 = vadd.f32 %v931_v52, %v2904_v51 }
 0x1d9   :  { %v1065_v15 = vadd.f32 %v1064_v12, %v1002_v42  ;;  %v933_v38 = vadd.f32 %v932_v48, %v2909_v27  ;;  %v2048_v12 = vmov 2048.0  }
 0x1da   :  { %2041 = vrcp.f32 %v2048_v12 }
 0x1db   :  { %v934_v29 = vrot.slane %v933_v38, 4  ;;  %v1066_v14 = vadd.f32 %v1065_v15, %v1003_v53 }
 0x1dd   :  { %v935_v22 = vadd.f32 %v934_v29, %v933_v38  ;;  %v1067_v18 = vrot.slane %v1066_v14, 4 }
 0x1df   :  { %v936_v39 = vrot.slane %v935_v22, 2  ;;  %v1068_v30 = vadd.f32 %v1067_v18, %v1066_v14 }
 0x1e0   :  { %v2042_v48 = vpop.eup %2041 }
 0x1e1   :  { %v937_v58 = vadd.f32 %v936_v39, %v935_v22  ;;  %v1069_v32 = vrot.slane %v1068_v30, 2  ;;  %v1092_v42 = vmul.f32 2048.0, %v2042_v48  ;;  %vm1096_vm1 = vweird.f32 %v2042_v48 }
 0x1e3   :  { %v938_v35 = vrot.slane %v937_v58, 1  ;;  %v1070_v4 = vadd.f32 %v1069_v32, %v1068_v30  ;;  %v1093_v38 = vsub.f32 1.0, %v1092_v42 }
 0x1e5   :  { %v939_v57 = vadd.f32 %v938_v35, %v937_v58  ;;  %v1071_v52 = vrot.slane %v1070_v4, 1  ;;  %v1094_v14 = vmul.f32 %v2042_v48, %v1093_v38 }
 0x1e7   :  { %1085 = vrot.lane.b32.xlu2 %v939_v57, %s2045_s0  ;;  %1079 = vrot.lane.b32.xlu1 %v939_v57, %s2046_s22  ;;  %v1072_v49 = vadd.f32 %v1071_v52, %v1070_v4  ;;  %v1095_v39 = vadd.f32 %v2042_v48, %v1094_v14 }
 0x1e8   :  { %1073 = vrot.lane.b32.xlu0 %v939_v57, %s2047_s23 }
 0x1e9   :  { %v1097_v35 = vsel %vm1096_vm1, %v2042_v48, %v1095_v39  ;;  %v3647_v48 = vld [vmem:[#allocation2_spill] sm:$0xff]  ;;  %v3657_v39 = vld [vmem:[#allocation17_spill] sm:$0xff] }
 0x1ef   :  { %1088 = vrot.lane.b32.xlu2 %v1072_v49, %s2045_s0  ;;  %1082 = vrot.lane.b32.xlu1 %v1072_v49, %s2046_s22 }
 0x1f0   :  { %1076 = vrot.lane.b32.xlu0 %v1072_v49, %s2047_s23 }
 0x241   :  { %v1086_v22 = vpop.permute.xlu2 %1085 }
 0x249   :  { %v1089_v51 = vpop.permute.xlu2 %1088 }
 0x259   :  { %v1080_v29 = vpop.permute.xlu1 %1079 }
 0x25a   :  { %v1074_v15 = vpop.permute.xlu0 %1073 }
 0x25b   :  { %v1075_v53 = vadd.f32 %v1074_v15, %v939_v57 }
 0x25d   :  { %v1081_v18 = vadd.f32 %v1080_v29, %v1075_v53 }
 0x25f   :  { %v1087_v58 = vadd.f32 %v1086_v22, %v1081_v18  ;;  %v3650_v18 = vld [vmem:[#allocation5_spill] sm:$0xff]  ;;  %v3656_v22 = vld [vmem:[#allocation16_spill] sm:$0xff] }
 0x261   :  { %v1083_v4 = vpop.permute.xlu1 %1082  ;;  %v1098_v52 = vmul.f32 %v1097_v35, %v1087_v58  ;;  %v3658_v58 = vld [vmem:[#allocation18_spill] sm:$0xff] }
 0x262   :  { %v1077_v30 = vpop.permute.xlu0 %1076 }
 0x263   :  { %v1078_v32 = vadd.f32 %v1077_v30, %v1072_v49  ;;  %v1100_v24 = vmul.f32 %v1098_v52, %v1098_v52  ;;  %v2921_v29 = vperm.slane %v1098_v52, 0  ;;  %v3651_v30 = vld [vmem:[#allocation7_spill] sm:$0xff] }
 0x265   :  { %v1084_v27 = vadd.f32 %v1083_v4, %v1078_v32  ;;  %v3653_v4 = vld [vmem:[#allocation10_spill] sm:$0xff]  ;;  %v3676_v43 = vsub.f32 %v2353_v13, %v2921_v29  ;;  %v3681_v13 = vsub.f32 %v3680_v0, %v2921_v29  ;;  %v3685_v0 = vsub.f32 %v3656_v22, %v2921_v29 }
 0x266   :  { %v3661_v32 = vld [vmem:[#allocation6_spill] sm:$0xff] }
 0x267   :  { %v1090_v12 = vadd.f32 %v1089_v51, %v1084_v27  ;;  %v3648_v51 = vld [vmem:[#allocation3_spill] sm:$0xff] }
 0x268   :  { %v3674_v7 = vsub.f32 %v3648_v51, %v2921_v29  ;;  %v3678_v51 = vsub.f32 %v3650_v18, %v2921_v29 }
 0x269   :  { %v1099_v3 = vmul.f32 %v1097_v35, %v1090_v12  ;;  %v3654_v12 = vld [vmem:[#allocation12_spill] sm:$0xff]  ;;  %v3659_v35 = vld [vmem:[#allocation19_spill] sm:$0xff] }
 0x26a   :  { %v3683_v18 = vsub.f32 %v3654_v12, %v2921_v29  ;;  %v3687_v12 = vsub.f32 %v3658_v58, %v2921_v29 }
 0x26b   :  { %v1101_v36 = vsub.f32 %v1099_v3, %v1100_v24  ;;  %v3649_v24 = vld [vmem:[#allocation4_spill] sm:$0xff] }
 0x26d   :  { %v1102_v42 = vmax.f32 %v1101_v36, 0.0 }
 0x26f   :  { %v1168_v57 = vadd.f32 1e-05, %v1102_v42  ;;  %v3660_v42 = vld [vmem:[#allocation24_spill] sm:$0xff] }
 0x271   :  { %2043 = vrsqrt.f32 %v1168_v57  ;;  %vm1175_vm3 = vweird.f32 %v1168_v57 }
 0x277   :  { %v2917_v15 = vpop.eup %2043 }
 0x278   :  { %v1170_v38 = vmul.f32 %v2917_v15, %v1168_v57  ;;  %vm1176_vm2 = vweird.f32 %v2917_v15  ;;  %v3665_v57 = vld [vmem:[#allocation15_spill] sm:$0xff] }
 0x279   :  { %vm3001_vm4 = vmor %vm1175_vm3, %vm1176_vm2 }
 0x27a   :  { %v1171_v53 = vmul.f32 %v2917_v15, %v1170_v38  ;;  %v3655_v38 = vld [vmem:[#allocation14_spill] sm:$0xff] }
 0x27c   :  { %v1172_v49 = vmul.f32 0.5, %v1171_v53  ;;  %v3675_v53 = vsub.f32 %v2335_v2, %v2921_v29  ;;  %v3679_v2 = vsub.f32 %v3651_v30, %v2921_v29  ;;  %v3684_v30 = vsub.f32 %v3655_v38, %v2921_v29 }
 0x27e   :  { %v1173_v27 = vsub.f32 1.5, %v1172_v49  ;;  %v3667_v49 = vld [vmem:[#allocation21_spill] sm:$0xff] }
 0x280   :  { %v1174_v14 = vmul.f32 %v2917_v15, %v1173_v27  ;;  %v3673_v27 = vsub.f32 %v3647_v48, %v2921_v29  ;;  %v3677_v48 = vsub.f32 %v3649_v24, %v2921_v29  ;;  %v3682_v24 = vsub.f32 %v3653_v4, %v2921_v29 }
 0x281   :  { %v3686_v4 = vsub.f32 %v3657_v39, %v2921_v29 }
 0x282   :  { %v1178_v36 = vsel %vm3001_vm4, %v2917_v15, %v1174_v14 }
 0x283   :  { %v3036_v52 = vperm.slane %v1178_v36, 0 }
 0x285   :  { %v1180_v36 = vmul.f32 %v3036_v52, %v3673_v27  ;;  %v1181_v25 = vmul.f32 %v3036_v52, %v3674_v7  ;;  %v1182_v41 = vmul.f32 %v3036_v52, %v3675_v53  ;;  %v1183_v55 = vmul.f32 %v3036_v52, %v3676_v43 }
 0x286   :  { %v1184_v27 = vmul.f32 %v3036_v52, %v3677_v48  ;;  %v1185_v7 = vmul.f32 %v3036_v52, %v3678_v51  ;;  %v1186_v53 = vmul.f32 %v3036_v52, %v3679_v2  ;;  %v1187_v43 = vmul.f32 %v3036_v52, %v3681_v13 }
 0x287   :  { %v1188_v48 = vmul.f32 %v3036_v52, %v3682_v24  ;;  %v1189_v51 = vmul.f32 %v3036_v52, %v3683_v18  ;;  %v3106_v2 = vmul.f32 %v3036_v52, %v3684_v30  ;;  %v3112_v13 = vmul.f32 %v3036_v52, %v3685_v0 }
 0x288   :  { %v3118_v24 = vmul.f32 %v3036_v52, %v3686_v4  ;;  %v3124_v38 = vmul.f32 %v3036_v52, %v3687_v12  ;;  %v3688_v18 = vsub.f32 %v3659_v35, %v2921_v29  ;;  %v3689_v30 = vsub.f32 %v2548_v54, %v2921_v29 }
 0x289   :  { %v3690_v0 = vsub.f32 %v2552_v61, %v2921_v29  ;;  %v3691_v4 = vsub.f32 %v2569_v19, %v2921_v29  ;;  %v3692_v12 = vsub.f32 %v2575_v34, %v2921_v29  ;;  %v1245_v21 = vmax.f32 %v1181_v25, 0.0 }
 0x28a   :  { %v3130_v22 = vmul.f32 %v3036_v52, %v3688_v18  ;;  %v3136_v39 = vmul.f32 %v3036_v52, %v3689_v30  ;;  %v3693_v18 = vsub.f32 %v2581_v45, %v2921_v29  ;;  %v3694_v30 = vsub.f32 %v2587_v56, %v2921_v29 }
 0x28b   :  { %v3142_v58 = vmul.f32 %v3036_v52, %v3690_v0  ;;  %v3148_v35 = vmul.f32 %v3036_v52, %v3691_v4  ;;  %v3154_v54 = vmul.f32 %v3036_v52, %v3692_v12  ;;  %v3695_v0 = vsub.f32 %v2688_v59, %v2921_v29 }
 0x28c   :  { %v3160_v61 = vmul.f32 %v3036_v52, %v3693_v18  ;;  %v3166_v19 = vmul.f32 %v3036_v52, %v3694_v30  ;;  %v3696_v4 = vsub.f32 %v2695_v20, %v2921_v29  ;;  %v3697_v12 = vsub.f32 %v2706_v37, %v2921_v29 }
 0x28d   :  { %v3172_v34 = vmul.f32 %v3036_v52, %v3695_v0  ;;  %v3698_v18 = vsub.f32 %v2713_v11, %v2921_v29  ;;  %v3699_v30 = vsub.f32 %v2720_v47, %v2921_v29  ;;  %v3700_v0 = vsub.f32 %v2726_v1, %v2921_v29 }
 0x28e   :  { %v3178_v45 = vmul.f32 %v3036_v52, %v3696_v4  ;;  %v3184_v56 = vmul.f32 %v3036_v52, %v3697_v12  ;;  %v3701_v4 = vld [vmem:[#allocation23_spill] sm:$0xff]  ;;  %v1246_v26 = vmax.f32 %v1182_v41, 0.0  ;;  %v1249_v44 = vmax.f32 %v1185_v7, 0.0 }
 0x28f   :  { %v3190_v59 = vmul.f32 %v3036_v52, %v3698_v18  ;;  %v3196_v20 = vmul.f32 %v3036_v52, %v3699_v30  ;;  %v3202_v37 = vmul.f32 %v3036_v52, %v3700_v0  ;;  %v3702_v12 = vsub.f32 %v3701_v4, %v2921_v29 }
 0x290   :  { %v3703_v18 = vsub.f32 %v2742_v8, %v2921_v29  ;;  %v3704_v30 = vsub.f32 %v3660_v42, %v2921_v29  ;;  %v3705_v0 = vsub.f32 %v2753_v33, %v2921_v29  ;;  %v3722_v25 = vsub.f32 %v2495_v60, %v2921_v29 }
 0x291   :  { %v3208_v11 = vmul.f32 %v3036_v52, %v3702_v12  ;;  %v3706_v12 = vsub.f32 %v2769_v23, %v2921_v29  ;;  %v1253_v7 = vmax.f32 %v1189_v51, 0.0  ;;  %v1255_v60 = vmax.f32 %v3112_v13, 0.0 }
 0x292   :  { %v3214_v47 = vmul.f32 %v3036_v52, %v3703_v18  ;;  %v3220_v1 = vmul.f32 %v3036_v52, %v3704_v30  ;;  %v3226_v4 = vmul.f32 %v3036_v52, %v3705_v0  ;;  %v3707_v18 = vsub.f32 %v2766_v16, %v2921_v29  ;;  %v3708_v30 = vld [vmem:[#allocation25_spill] sm:$0xff] }
 0x293   :  { %v3232_v8 = vmul.f32 %v3036_v52, %v3706_v12  ;;  %v3709_v3 = vsub.f32 %v3708_v30, %v2921_v29  ;;  %v3710_v0 = vsub.f32 %v3661_v32, %v2921_v29  ;;  %v3712_v12 = vsub.f32 %v2403_v46, %v2921_v29 }
 0x294   :  { %v3238_v42 = vmul.f32 %v3036_v52, %v3707_v18  ;;  %v3714_v18 = vld [vmem:[#allocation9_spill] sm:$0xff]  ;;  %v1248_v46 = vmax.f32 %v1184_v27, 0.0  ;;  %v3286_v41 = vmul.f32 %v3036_v52, %v3722_v25  ;;  %v1252_v27 = vmax.f32 %v1188_v48, 0.0 }
 0x295   :  { %v3244_v33 = vmul.f32 %v3036_v52, %v3709_v3  ;;  %v3250_v23 = vmul.f32 %v3036_v52, %v3710_v0  ;;  %v3256_v16 = vmul.f32 %v3036_v52, %v3712_v12  ;;  %v3715_v14 = vsub.f32 %v3714_v18, %v2921_v29  ;;  %v3716_v3 = vld [vmem:[#allocation11_spill] sm:$0xff]  ;;  %v3719_v12 = vld [vmem:[#allocation13_spill] sm:$0xff] }
 0x296   :  { %v3717_v15 = vsub.f32 %v3716_v3, %v2921_v29  ;;  %v1244_v0 = vmax.f32 %v1180_v36, 0.0  ;;  %v1850_v25 = vpack.c.bf16 %v1249_v44, %v1248_v46  ;;  %v3725_v48 = vsub.f32 %v3666_v9, %v2921_v29 }
 0x297   :  { %3711 = vst [vmem:[#allocation2_spill] sm:$0xff] %v3250_v23  ;;  %v3262_v30 = vmul.f32 %v3036_v52, %v3715_v14  ;;  %v1247_v23 = vmax.f32 %v1183_v55, 0.0  ;;  %v3721_v14 = vsub.f32 %v3665_v57, %v2921_v29  ;;  %v3723_v55 = vsub.f32 %v2505_v6, %v2921_v29 }
 0x298   :  { %3713 = vst [vmem:[#allocation3_spill] sm:$0xff] %v3256_v16  ;;  %v3268_v32 = vmul.f32 %v3036_v52, %v3717_v15  ;;  %v3720_v16 = vsub.f32 %v3719_v12, %v2921_v29  ;;  %v1250_v15 = vmax.f32 %v1186_v53, 0.0  ;;  %v3724_v57 = vsub.f32 %v2529_v31, %v2921_v29 }
 0x299   :  { %v3280_v3 = vmul.f32 %v3036_v52, %v3721_v14  ;;  %v3292_v36 = vmul.f32 %v3036_v52, %v3723_v55  ;;  %v1257_v12 = vmax.f32 %v3124_v38, 0.0  ;;  %v1840_v6 = vpack.c.bf16 %v1245_v21, %v1244_v0  ;;  %1998 = vst [vmem:[%s3551_s2 + $0x10] sm:$0xff] %v1850_v25  }
 0x29a   :  { %3718 = vst [vmem:[#allocation4_spill] sm:$0xff] %v3268_v32  ;;  %v3274_v18 = vmul.f32 %v3036_v52, %v3720_v16  ;;  %v1251_v32 = vmax.f32 %v1187_v43, 0.0  ;;  %v3298_v53 = vmul.f32 %v3036_v52, %v3724_v57  ;;  %v1254_v43 = vmax.f32 %v3106_v2, 0.0 }
 0x29b   :  { %v1256_v16 = vmax.f32 %v3118_v24, 0.0  ;;  %v1845_v14 = vpack.c.bf16 %v1247_v23, %v1246_v26  ;;  %v3308_v51 = vmul.f32 %v3036_v52, %v3725_v48  ;;  %v1258_v31 = vmax.f32 %v3130_v22, 0.0  ;;  %1841 = vst [vmem:[%s3551_s2] sm:$0xff] %v1840_v6  }
 0x29c   :  { %v1259_v55 = vmax.f32 %v3136_v39, 0.0  ;;  %v1855_v2 = vpack.c.bf16 %v1251_v32, %v1250_v15  ;;  %v3726_v13 = vsub.f32 %v3667_v49, %v2921_v29  ;;  %v1260_v26 = vmax.f32 %v3142_v58, 0.0 }
 0x29d   :  { %v1261_v44 = vmax.f32 %v3148_v35, 0.0  ;;  %v1860_v9 = vpack.c.bf16 %v1253_v7, %v1252_v27  ;;  %v3727_v21 = vsub.f32 %v2554_v5, %v2921_v29  ;;  %v1262_v49 = vmax.f32 %v3154_v54, 0.0  ;;  %1997 = vst [vmem:[%s3551_s2 + $0x8] sm:$0xff] %v1845_v14  }
 0x29e   :  { %v3316_v24 = vmul.f32 %v3036_v52, %v3726_v13  ;;  %v1263_v22 = vmax.f32 %v3160_v61, 0.0  ;;  %v1865_v39 = vpack.c.bf16 %v1255_v60, %v1254_v43  ;;  %v3728_v58 = vsub.f32 %v2573_v28, %v2921_v29  ;;  %1999 = vst [vmem:[%s3551_s2 + $0x18] sm:$0xff] %v1855_v2   ;;  %v3737_v48 = vld [vmem:[#allocation2_spill] sm:$0xff] }
 0x29f   :  { %v3327_v38 = vmul.f32 %v3036_v52, %v3727_v21  ;;  %v1264_v5 = vmax.f32 %v3166_v19, 0.0  ;;  %v1265_v23 = vmax.f32 %v3172_v34, 0.0  ;;  %v1870_v54 = vpack.c.bf16 %v1257_v12, %v1256_v16  ;;  %2000 = vst [vmem:[%s3551_s2 + $0x20] sm:$0xff] %v1860_v9  }
 0x2a0   :  { %v3338_v35 = vmul.f32 %v3036_v52, %v3728_v58  ;;  %v3729_v61 = vsub.f32 %v2577_v40, %v2921_v29  ;;  %v1266_v28 = vmax.f32 %v3178_v45, 0.0  ;;  %v1267_v0 = vmax.f32 %v3184_v56, 0.0  ;;  %2001 = vst [vmem:[%s3551_s2 + $0x28] sm:$0xff] %v1865_v39  }
 0x2a1   :  { %v1875_v19 = vpack.c.bf16 %v1259_v55, %v1258_v31  ;;  %v3730_v34 = vsub.f32 %v2585_v50, %v2921_v29  ;;  %v1268_v40 = vmax.f32 %v3190_v59, 0.0  ;;  %v1269_v15 = vmax.f32 %v3196_v20, 0.0  ;;  %2002 = vst [vmem:[%s3551_s2 + $0x30] sm:$0xff] %v1870_v54   ;;  %v3738_v31 = vld [vmem:[#allocation3_spill] sm:$0xff] }
 0x2a2   :  { %v3349_v32 = vmul.f32 %v3036_v52, %v3729_v61  ;;  %v1880_v45 = vpack.c.bf16 %v1261_v44, %v1260_v26  ;;  %v3731_v56 = vsub.f32 %v2589_v63, %v2921_v29  ;;  %v1270_v50 = vmax.f32 %v3202_v37, 0.0  ;;  %v3741_v44 = vld [vmem:[#allocation4_spill] sm:$0xff] }
 0x2a3   :  { %v3360_v46 = vmul.f32 %v3036_v52, %v3730_v34  ;;  %v1271_v7 = vmax.f32 %v3208_v11, 0.0  ;;  %v1885_v59 = vpack.c.bf16 %v1263_v22, %v1262_v49  ;;  %v3732_v20 = vsub.f32 %v2597_v10, %v2921_v29  ;;  %2003 = vst [vmem:[%s3551_s2 + $0x38] sm:$0xff] %v1875_v19   ;;  %v3742_v49 = vld [vmem:[#allocation27_spill] sm:$0xff] }
 0x2a4   :  { %v3371_v27 = vmul.f32 %v3036_v52, %v3731_v56  ;;  %v1272_v63 = vmax.f32 %v3214_v47, 0.0  ;;  %v1273_v43 = vmax.f32 %v3220_v1, 0.0  ;;  %v1890_v37 = vpack.c.bf16 %v1265_v23, %v1264_v5  ;;  %2004 = vst [vmem:[%s3551_s2 + $0x40] sm:$0xff] %v1880_v45   ;;  %v3744_v23 = vld [vmem:[#allocation28_spill] sm:$0xff] }
 0x2a5   :  { %v3382_v57 = vmul.f32 %v3036_v52, %v3732_v20  ;;  %v3733_v11 = vsub.f32 %v2601_v17, %v2921_v29  ;;  %v1274_v10 = vmax.f32 %v3226_v4, 0.0  ;;  %v1275_v16 = vmax.f32 %v3232_v8, 0.0  ;;  %v3735_v8 = vld [vmem:[#allocation26_spill] sm:$0xff]  ;;  %2005 = vst [vmem:[%s3551_s2 + $0x48] sm:$0xff] %v1885_v59  }
 0x2a6   :  { %v1895_v47 = vpack.c.bf16 %v1267_v0, %v1266_v28  ;;  %v3734_v1 = vsub.f32 %v3636_v62, %v2921_v29  ;;  %v1276_v17 = vmax.f32 %v3238_v42, 0.0  ;;  %v1277_v6 = vmax.f32 %v3244_v33, 0.0  ;;  %v3739_v33 = vld [vmem:[#allocation22_spill] sm:$0xff]  ;;  %2006 = vst [vmem:[%s3551_s2 + $0x50] sm:$0xff] %v1890_v37  }
 0x2a7   :  { %v3393_v60 = vmul.f32 %v3036_v52, %v3733_v11  ;;  %v1900_v4 = vpack.c.bf16 %v1269_v15, %v1268_v40  ;;  %v3736_v14 = vsub.f32 %v3735_v8, %v2921_v29  ;;  %v1278_v62 = vmax.f32 %v3737_v48, 0.0 }
 0x2a8   :  { %v3404_v12 = vmul.f32 %v3036_v52, %v3734_v1  ;;  %v1279_v55 = vmax.f32 %v3738_v31, 0.0  ;;  %v1905_v42 = vpack.c.bf16 %v1271_v7, %v1270_v50  ;;  %v3740_v2 = vsub.f32 %v3739_v33, %v2921_v29  ;;  %2007 = vst [vmem:[%s3551_s2 + $0x58] sm:$0xff] %v1895_v47  }
 0x2a9   :  { %v3415_v25 = vmul.f32 %v3036_v52, %v3736_v14  ;;  %v1280_v26 = vmax.f32 %v3262_v30, 0.0  ;;  %v1281_v9 = vmax.f32 %v3741_v44, 0.0  ;;  %v1910_v21 = vpack.c.bf16 %v1273_v43, %v1272_v63  ;;  %2008 = vst [vmem:[%s3551_s2 + $0x60] sm:$0xff] %v1900_v4  }
 0x2aa   :  { %v3426_v13 = vmul.f32 %v3036_v52, %v3740_v2  ;;  %v3743_v22 = vsub.f32 %v3742_v49, %v2921_v29  ;;  %v1282_v58 = vmax.f32 %v3274_v18, 0.0  ;;  %v1283_v5 = vmax.f32 %v3280_v3, 0.0  ;;  %v3746_v3 = vld [vmem:[#allocation29_spill] sm:$0xff]  ;;  %2009 = vst [vmem:[%s3551_s2 + $0x68] sm:$0xff] %v1905_v42  }
 0x2ab   :  { %v1915_v30 = vpack.c.bf16 %v1275_v16, %v1274_v10  ;;  %v3745_v54 = vsub.f32 %v3744_v23, %v2921_v29  ;;  %v1284_v28 = vmax.f32 %v3286_v41, 0.0  ;;  %v1285_v0 = vmax.f32 %v3292_v36, 0.0  ;;  %v3748_v36 = vld [vmem:[#allocation30_spill] sm:$0xff]  ;;  %2010 = vst [vmem:[%s3551_s2 + $0x70] sm:$0xff] %v1910_v21  }
 0x2ac   :  { %v1235_v39 = vmul.f32 %v3036_v52, %v3743_v22  ;;  %v1920_v18 = vpack.c.bf16 %v1277_v6, %v1276_v17  ;;  %v3747_v19 = vsub.f32 %v3746_v3, %v2921_v29  ;;  %v1286_v40 = vmax.f32 %v3298_v53, 0.0 }
 0x2ad   :  { %v1236_v61 = vmul.f32 %v3036_v52, %v3745_v54  ;;  %v1287_v15 = vmax.f32 %v3308_v51, 0.0  ;;  %v1925_v41 = vpack.c.bf16 %v1279_v55, %v1278_v62  ;;  %v3749_v45 = vsub.f32 %v3748_v36, %v2921_v29  ;;  %v3750_v51 = vld [vmem:[#allocation31_spill] sm:$0xff]  ;;  %2011 = vst [vmem:[%s3551_s2 + $0x78] sm:$0xff] %v1915_v30  }
 0x2ae   :  { %v1237_v34 = vmul.f32 %v3036_v52, %v3747_v19  ;;  %v1288_v50 = vmax.f32 %v3316_v24, 0.0  ;;  %v1289_v7 = vmax.f32 %v3327_v38, 0.0  ;;  %v1930_v53 = vpack.c.bf16 %v1281_v9, %v1280_v26  ;;  %v3752_v38 = vld [vmem:[#allocation32_spill] sm:$0xff]  ;;  %2012 = vst [vmem:[%s3551_s2 + $0x80] sm:$0xff] %v1920_v18  }
 0x2af   :  { %v1238_v56 = vmul.f32 %v3036_v52, %v3749_v45  ;;  %v3751_v59 = vsub.f32 %v3750_v51, %v2921_v29  ;;  %v1290_v63 = vmax.f32 %v3338_v35, 0.0  ;;  %v1291_v43 = vmax.f32 %v3349_v32, 0.0  ;;  %v3754_v32 = vld [vmem:[#allocation33_spill] sm:$0xff]  ;;  %2013 = vst [vmem:[%s3551_s2 + $0x88] sm:$0xff] %v1925_v41  }
 0x2b0   :  { %v1935_v24 = vpack.c.bf16 %v1283_v5, %v1282_v58  ;;  %v3753_v37 = vsub.f32 %v3752_v38, %v2921_v29  ;;  %v1292_v10 = vmax.f32 %v3360_v46, 0.0  ;;  %v1293_v16 = vmax.f32 %v3371_v27, 0.0  ;;  %v3756_v27 = vld [vmem:[#allocation34_spill] sm:$0xff]  ;;  %2014 = vst [vmem:[%s3551_s2 + $0x90] sm:$0xff] %v1930_v53  }
 0x2b1   :  { %v1239_v20 = vmul.f32 %v3036_v52, %v3751_v59  ;;  %v1940_v35 = vpack.c.bf16 %v1285_v0, %v1284_v28  ;;  %v3755_v47 = vsub.f32 %v3754_v32, %v2921_v29  ;;  %v1294_v17 = vmax.f32 %v3382_v57, 0.0 }
 0x2b2   :  { %v1240_v11 = vmul.f32 %v3036_v52, %v3753_v37  ;;  %v1295_v6 = vmax.f32 %v3393_v60, 0.0  ;;  %v1945_v46 = vpack.c.bf16 %v1287_v15, %v1286_v40  ;;  %v3757_v4 = vsub.f32 %v3756_v27, %v2921_v29  ;;  %v3758_v60 = vld [vmem:[#allocation35_spill] sm:$0xff]  ;;  %2015 = vst [vmem:[%s3551_s2 + $0x98] sm:$0xff] %v1935_v24  }
 0x2b3   :  { %v1241_v1 = vmul.f32 %v3036_v52, %v3755_v47  ;;  %v1296_v14 = vmax.f32 %v3404_v12, 0.0  ;;  %v1297_v48 = vmax.f32 %v3415_v25, 0.0  ;;  %v1950_v57 = vpack.c.bf16 %v1289_v7, %v1288_v50  ;;  %2016 = vst [vmem:[%s3551_s2 + $0xa0] sm:$0xff] %v1940_v35  }
 0x2b4   :  { %v1242_v8 = vmul.f32 %v3036_v52, %v3757_v4  ;;  %v3759_v62 = vsub.f32 %v3758_v60, %v2921_v29  ;;  %v1298_v55 = vmax.f32 %v3426_v13, 0.0  ;;  %v1299_v42 = vmax.f32 %v1235_v39, 0.0  ;;  %2017 = vst [vmem:[%s3551_s2 + $0xa8] sm:$0xff] %v1945_v46  }
 0x2b5   :  { %v1955_v12 = vpack.c.bf16 %v1291_v43, %v1290_v63  ;;  %v1300_v33 = vmax.f32 %v1236_v61, 0.0  ;;  %v1301_v25 = vmax.f32 %v1237_v34, 0.0  ;;  %v1960_v2 = vpack.c.bf16 %v1293_v16, %v1292_v10  ;;  %2018 = vst [vmem:[%s3551_s2 + $0xb0] sm:$0xff] %v1950_v57  }
 0x2b6   :  { %v1243_v31 = vmul.f32 %v3036_v52, %v3759_v62  ;;  %v1302_v26 = vmax.f32 %v1238_v56, 0.0  ;;  %v1303_v44 = vmax.f32 %v1239_v20, 0.0  ;;  %v1965_v29 = vpack.c.bf16 %v1295_v6, %v1294_v17 }
 0x2b7   :  { %v1304_v52 = vmax.f32 %v1240_v11, 0.0  ;;  %v1305_v13 = vmax.f32 %v1241_v1, 0.0  ;;  %v1970_v9 = vpack.c.bf16 %v1297_v48, %v1296_v14  ;;  %v1306_v21 = vmax.f32 %v1242_v8, 0.0  ;;  %2019 = vst [vmem:[%s3551_s2 + $0xb8] sm:$0xff] %v1955_v12  }
 0x2b8   :  { %v1307_v49 = vmax.f32 %v1243_v31, 0.0  ;;  %v1975_v22 = vpack.c.bf16 %v1299_v42, %v1298_v55  ;;  %2020 = vst [vmem:[%s3551_s2 + $0xc0] sm:$0xff] %v1960_v2   ;;  %v1980_v39 = vpack.c.bf16 %v1301_v25, %v1300_v33  ;;  %v1985_v58 = vpack.c.bf16 %v1303_v44, %v1302_v26 }
 0x2b9   :  { %2021 = vst [vmem:[%s3551_s2 + $0xc8] sm:$0xff] %v1965_v29   ;;  %v1990_v5 = vpack.c.bf16 %v1305_v13, %v1304_v52 }
 0x2ba   :  { %2022 = vst [vmem:[%s3551_s2 + $0xd0] sm:$0xff] %v1970_v9   ;;  %v1995_v30 = vpack.c.bf16 %v1307_v49, %v1306_v21 }
 0x2bb   :  { %2023 = vst [vmem:[%s3551_s2 + $0xd8] sm:$0xff] %v1975_v22  }
 0x2bc   :  { %2024 = vst [vmem:[%s3551_s2 + $0xe0] sm:$0xff] %v1980_v39  }
 0x2bd   :  { %2025 = vst [vmem:[%s3551_s2 + $0xe8] sm:$0xff] %v1985_v58  }
 0x2be   :  { %2026 = vst [vmem:[%s3551_s2 + $0xf0] sm:$0xff] %v1990_v5  }
 0x2bf   :  { %2027 = vst [vmem:[%s3551_s2 + $0xf8] sm:$0xff] %v1995_v30  }

// kernel: generator_forward.9
= control target key start
LH: loop header
LB: loop body
LE: loop exit
PB: predicated region body
PF: predicated region fallthrough
CT: control target
= control target key end

     0   :  { %vm1329_vm0 = vcmask 1043456   ;;  %vm944_vm1 = vcmask 588800   ;;  %s5123_s1 = inlined_call_operand.vmem [shape: bf16[72,128], index: 1, kind: input, shape index: {}]   ;;  %s5124_s0 = inlined_call_operand.vmem [shape: bf16[2048,72], index: 0, kind: input, shape index: {}]   ;;  %s5125_s2 = inlined_call_operand.vmem [shape: f32[2048,128], index: 2, kind: output, shape index: {}]  }
   0x1   :  { %v276_v0 = vld [vmem:[%s5123_s1 + $0x20] sm:$0xf]  ;;  %v3285_v4 = vld [vmem:[%s5123_s1 + $0x18] sm:$0xff]  ;;  %v3284_v5 = vld [vmem:[%s5123_s1 + $0x10] sm:$0xff] }
   0x2   :  { %v934_v1 = vunpack.c.l.b16 %v276_v0  ;;  %v3283_v6 = vld [vmem:[%s5123_s1 + $0x8] sm:$0xff]  ;;  %v3282_v7 = vld [vmem:[%s5123_s1] sm:$0xff]  ;;  %v3156_v16 = vld [vmem:[%s5124_s0 + $0x10] sm:$0xff] }
   0x3   :  { %v3154_v8 = vld [vmem:[%s5124_s0] sm:$0xff]  ;;  %v3155_v12 = vld [vmem:[%s5124_s0 + $0x8] sm:$0xff]  ;;  %v3188_v17 = vld [vmem:[%s5124_s0 + $0x110] sm:$0xff] }
   0x4   :  { %v939_v2 = vpack.c.b16 %v934_v1, %v934_v1  ;;  %v3186_v9 = vld [vmem:[%s5124_s0 + $0x100] sm:$0xff]  ;;  %v3187_v13 = vld [vmem:[%s5124_s0 + $0x108] sm:$0xff]  ;;  %v3220_v18 = vld [vmem:[%s5124_s0 + $0x210] sm:$0xff] }
   0x5   :  { %v3218_v10 = vld [vmem:[%s5124_s0 + $0x200] sm:$0xff]  ;;  %v3219_v14 = vld [vmem:[%s5124_s0 + $0x208] sm:$0xff]  ;;  %v3252_v19 = vld [vmem:[%s5124_s0 + $0x310] sm:$0xff] }
   0x6   :  { %v1331_v3 = vsel %vm1329_vm0, %v939_v2, 0  ;;  %v3250_v11 = vld [vmem:[%s5124_s0 + $0x300] sm:$0xff]  ;;  %v3251_v15 = vld [vmem:[%s5124_s0 + $0x308] sm:$0xff]  ;;  %v3157_v20 = vld [vmem:[%s5124_s0 + $0x18] sm:$0xff] }
   0x7   :  { %1336 = vmatpush.bf16.msra.mxu0 %v1331_v3  ;;  %3286 = vmatpush.bf16.msra.mxu1 %v1331_v3  ;;  %v3189_v21 = vld [vmem:[%s5124_s0 + $0x118] sm:$0xff]  ;;  %v3158_v24 = vld [vmem:[%s5124_s0 + $0x20] sm:$0xff]  ;;  %v3159_v28 = vld [vmem:[%s5124_s0 + $0x28] sm:$0xff] }
   0x8   :  { %3287 = vmatpush.bf16.msra.mxu2 %v1331_v3  ;;  %3288 = vmatpush.bf16.msra.mxu3 %v1331_v3  ;;  %v3221_v22 = vld [vmem:[%s5124_s0 + $0x218] sm:$0xff]  ;;  %v3190_v25 = vld [vmem:[%s5124_s0 + $0x120] sm:$0xff]  ;;  %v3191_v29 = vld [vmem:[%s5124_s0 + $0x128] sm:$0xff] }
   0x9   :  { %v3253_v23 = vld [vmem:[%s5124_s0 + $0x318] sm:$0xff]  ;;  %v3222_v26 = vld [vmem:[%s5124_s0 + $0x220] sm:$0xff]  ;;  %v3223_v30 = vld [vmem:[%s5124_s0 + $0x228] sm:$0xff] }
   0xa   :  { %v3254_v27 = vld [vmem:[%s5124_s0 + $0x320] sm:$0xff]  ;;  %v3255_v31 = vld [vmem:[%s5124_s0 + $0x328] sm:$0xff]  ;;  %v3160_v32 = vld [vmem:[%s5124_s0 + $0x30] sm:$0xff] }
   0xb   :  { %1337 = vmatpush.bf16.msra.mxu0 %v3285_v4  ;;  %3289 = vmatpush.bf16.msra.mxu1 %v3285_v4  ;;  %v3192_v33 = vld [vmem:[%s5124_s0 + $0x130] sm:$0xff]  ;;  %v3161_v36 = vld [vmem:[%s5124_s0 + $0x38] sm:$0xff]  ;;  %v3162_v40 = vld [vmem:[%s5124_s0 + $0x40] sm:$0xff] }
   0xc   :  { %3290 = vmatpush.bf16.msra.mxu2 %v3285_v4  ;;  %3291 = vmatpush.bf16.msra.mxu3 %v3285_v4  ;;  %v3224_v34 = vld [vmem:[%s5124_s0 + $0x230] sm:$0xff]  ;;  %v3193_v37 = vld [vmem:[%s5124_s0 + $0x138] sm:$0xff]  ;;  %v3194_v41 = vld [vmem:[%s5124_s0 + $0x140] sm:$0xff] }
   0xd   :  { %v3256_v35 = vld [vmem:[%s5124_s0 + $0x330] sm:$0xff]  ;;  %v3225_v38 = vld [vmem:[%s5124_s0 + $0x238] sm:$0xff]  ;;  %v3226_v44 = vld [vmem:[%s5124_s0 + $0x240] sm:$0xff] }
   0xe   :  { %v3257_v39 = vld [vmem:[%s5124_s0 + $0x338] sm:$0xff]  ;;  %v3258_v45 = vld [vmem:[%s5124_s0 + $0x340] sm:$0xff]  ;;  %v3163_v56 = vld [vmem:[%s5124_s0 + $0x48] sm:$0xff] }
   0xf   :  { %1338 = vmatpush.bf16.msra.mxu0 %v3284_v5  ;;  %3292 = vmatpush.bf16.msra.mxu1 %v3284_v5  ;;  %v3195_v57 = vld [vmem:[%s5124_s0 + $0x148] sm:$0xff] }
  0x10   :  { %3293 = vmatpush.bf16.msra.mxu2 %v3284_v5  ;;  %3294 = vmatpush.bf16.msra.mxu3 %v3284_v5  ;;  %v3227_v61 = vld [vmem:[%s5124_s0 + $0x248] sm:$0xff] }
  0x11   :  { %v3259_v62 = vld [vmem:[%s5124_s0 + $0x348] sm:$0xff] }
  0x13   :  { %1339 = vmatpush.bf16.msra.mxu0 %v3283_v6  ;;  %3295 = vmatpush.bf16.msra.mxu1 %v3283_v6 }
  0x14   :  { %3296 = vmatpush.bf16.msra.mxu2 %v3283_v6  ;;  %3297 = vmatpush.bf16.msra.mxu3 %v3283_v6 }
  0x17   :  { %1340 = vmatpush.bf16.msra.mxu0 %v3282_v7  ;;  %3298 = vmatpush.bf16.msra.mxu1 %v3282_v7 }
  0x18   :  { %3299 = vmatpush.bf16.msra.mxu2 %v3282_v7  ;;  %3300 = vmatpush.bf16.msra.mxu3 %v3282_v7 }
  0x1a   :  { %3026 = vmatmul.msk.bf16.vlgmr.msra.gmra.mxu0 %vm944_vm1, %v3154_v8  ;;  %3058 = vmatmul.msk.bf16.vlgmr.msra.gmra.mxu1 %vm944_vm1, %v3186_v9 }
  0x1b   :  { %3090 = vmatmul.msk.bf16.vlgmr.msra.gmra.mxu2 %vm944_vm1, %v3218_v10  ;;  %3122 = vmatmul.msk.bf16.vlgmr.msra.gmra.mxu3 %vm944_vm1, %v3250_v11 }
  0x2a   :  { %3027 = vmatmul.msk.bf16.gmra.mxu0 %vm944_vm1, %v3155_v12  ;;  %3059 = vmatmul.msk.bf16.gmra.mxu1 %vm944_vm1, %v3187_v13  ;;  %v3164_v12 = vld [vmem:[%s5124_s0 + $0x50] sm:$0xff] }
  0x2b   :  { %3091 = vmatmul.msk.bf16.gmra.mxu2 %vm944_vm1, %v3219_v14  ;;  %3123 = vmatmul.msk.bf16.gmra.mxu3 %vm944_vm1, %v3251_v15  ;;  %v3196_v13 = vld [vmem:[%s5124_s0 + $0x150] sm:$0xff] }
  0x3a   :  { %3028 = vmatmul.msk.bf16.gmra.mxu0 %vm944_vm1, %v3156_v16  ;;  %3060 = vmatmul.msk.bf16.gmra.mxu1 %vm944_vm1, %v3188_v17  ;;  %v3228_v17 = vld [vmem:[%s5124_s0 + $0x250] sm:$0xff] }
  0x3b   :  { %3092 = vmatmul.msk.bf16.gmra.mxu2 %vm944_vm1, %v3220_v18  ;;  %3124 = vmatmul.msk.bf16.gmra.mxu3 %vm944_vm1, %v3252_v19  ;;  %v3260_v18 = vld [vmem:[%s5124_s0 + $0x350] sm:$0xff] }
  0x4a   :  { %3029 = vmatmul.msk.bf16.gmra.mxu0 %vm944_vm1, %v3157_v20  ;;  %3061 = vmatmul.msk.bf16.gmra.mxu1 %vm944_vm1, %v3189_v21 }
  0x4b   :  { %3093 = vmatmul.msk.bf16.gmra.mxu2 %vm944_vm1, %v3221_v22  ;;  %3125 = vmatmul.msk.bf16.gmra.mxu3 %vm944_vm1, %v3253_v23 }
  0x5a   :  { %3030 = vmatmul.msk.bf16.gmra.mxu0 %vm944_vm1, %v3158_v24  ;;  %3062 = vmatmul.msk.bf16.gmra.mxu1 %vm944_vm1, %v3190_v25 }
  0x5b   :  { %3094 = vmatmul.msk.bf16.gmra.mxu2 %vm944_vm1, %v3222_v26  ;;  %3126 = vmatmul.msk.bf16.gmra.mxu3 %vm944_vm1, %v3254_v27 }
  0x6a   :  { %3031 = vmatmul.msk.bf16.gmra.mxu0 %vm944_vm1, %v3159_v28  ;;  %3063 = vmatmul.msk.bf16.gmra.mxu1 %vm944_vm1, %v3191_v29 }
  0x6b   :  { %3095 = vmatmul.msk.bf16.gmra.mxu2 %vm944_vm1, %v3223_v30  ;;  %3127 = vmatmul.msk.bf16.gmra.mxu3 %vm944_vm1, %v3255_v31 }
  0x7a   :  { %3032 = vmatmul.msk.bf16.gmra.mxu0 %vm944_vm1, %v3160_v32  ;;  %3064 = vmatmul.msk.bf16.gmra.mxu1 %vm944_vm1, %v3192_v33  ;;  %v3165_v32 = vld [vmem:[%s5124_s0 + $0x58] sm:$0xff] }
  0x7b   :  { %3096 = vmatmul.msk.bf16.gmra.mxu2 %vm944_vm1, %v3224_v34  ;;  %3128 = vmatmul.msk.bf16.gmra.mxu3 %vm944_vm1, %v3256_v35  ;;  %v3197_v33 = vld [vmem:[%s5124_s0 + $0x158] sm:$0xff] }
  0x8a   :  { %3033 = vmatmul.msk.bf16.gmra.mxu0 %vm944_vm1, %v3161_v36  ;;  %3065 = vmatmul.msk.bf16.gmra.mxu1 %vm944_vm1, %v3193_v37  ;;  %v3229_v37 = vld [vmem:[%s5124_s0 + $0x258] sm:$0xff] }
  0x8b   :  { %3097 = vmatmul.msk.bf16.gmra.mxu2 %vm944_vm1, %v3225_v38  ;;  %3129 = vmatmul.msk.bf16.gmra.mxu3 %vm944_vm1, %v3257_v39  ;;  %v3261_v38 = vld [vmem:[%s5124_s0 + $0x358] sm:$0xff] }
  0x97   :  { %v1342_v42 = vpop.f32.mrf.mxu0  ;;  %v1502_v43 = vpop.f32.mrf.mxu1 }
  0x98   :  { %3301 = vtanh.f32 %v1342_v42 }
  0x99   :  { %3303 = vtanh.f32 %v1502_v43 }
  0x9a   :  { %3034 = vmatmul.msk.bf16.gmra.mxu0 %vm944_vm1, %v3162_v40  ;;  %3066 = vmatmul.msk.bf16.gmra.mxu1 %vm944_vm1, %v3194_v41 }
  0x9b   :  { %3098 = vmatmul.msk.bf16.gmra.mxu2 %vm944_vm1, %v3226_v44  ;;  %3130 = vmatmul.msk.bf16.gmra.mxu3 %vm944_vm1, %v3258_v45 }
  0x9e   :  { %v3302_v46 = vpop.eup %3301  ;;  %v1662_v47 = vpop.f32.mrf.mxu2 }
  0x9f   :  { %v1822_v48 = vpop.f32.mrf.mxu3  ;;  %v3304_v49 = vpop.eup %3303  ;;  %2238 = vst [vmem:[%s5125_s2] sm:$0xff] %v3302_v46  ;;  %3305 = vtanh.f32 %v1662_v47 }
  0xa0   :  { %v1344_v50 = vpop.f32.mrf.mxu0  ;;  %v1504_v51 = vpop.f32.mrf.mxu1  ;;  %2302 = vst [vmem:[%s5125_s2 + $0x200] sm:$0xff] %v3304_v49  ;;  %3307 = vtanh.f32 %v1822_v48 }
  0xa1   :  { %3309 = vtanh.f32 %v1344_v50 }
  0xa2   :  { %3311 = vtanh.f32 %v1504_v51 }
  0xa5   :  { %v3306_v52 = vpop.eup %3305 }
  0xa6   :  { %v3308_v53 = vpop.eup %3307  ;;  %2366 = vst [vmem:[%s5125_s2 + $0x400] sm:$0xff] %v3306_v52  ;;  %v1664_v54 = vpop.f32.mrf.mxu2  ;;  %v3166_v52 = vld [vmem:[%s5124_s0 + $0x60] sm:$0xff] }
  0xa7   :  { %v1824_v55 = vpop.f32.mrf.mxu3  ;;  %v3310_v58 = vpop.eup %3309  ;;  %2430 = vst [vmem:[%s5125_s2 + $0x600] sm:$0xff] %v3308_v53  ;;  %3313 = vtanh.f32 %v1664_v54  ;;  %v3198_v53 = vld [vmem:[%s5124_s0 + $0x160] sm:$0xff] }
  0xa8   :  { %v1347_v59 = vpop.f32.mrf.mxu0  ;;  %v1507_v60 = vpop.f32.mrf.mxu1  ;;  %2239 = vst [vmem:[%s5125_s2 + $0x8] sm:$0xff] %v3310_v58  ;;  %3315 = vtanh.f32 %v1824_v55  ;;  %v3262_v58 = vld [vmem:[%s5124_s0 + $0x360] sm:$0xff] }
  0xa9   :  { %v3312_v63 = vpop.eup %3311  ;;  %3317 = vtanh.f32 %v1347_v59 }
  0xaa   :  { %2303 = vst [vmem:[%s5125_s2 + $0x208] sm:$0xff] %v3312_v63  ;;  %3319 = vtanh.f32 %v1507_v60  ;;  %3035 = vmatmul.msk.bf16.gmra.mxu0 %vm944_vm1, %v3163_v56  ;;  %3067 = vmatmul.msk.bf16.gmra.mxu1 %vm944_vm1, %v3195_v57  ;;  %v3230_v57 = vld [vmem:[%s5124_s0 + $0x260] sm:$0xff] }
  0xab   :  { %3099 = vmatmul.msk.bf16.gmra.mxu2 %vm944_vm1, %v3227_v61  ;;  %3131 = vmatmul.msk.bf16.gmra.mxu3 %vm944_vm1, %v3259_v62 }
  0xad   :  { %v3314_v0 = vpop.eup %3313 }
  0xae   :  { %v3316_v1 = vpop.eup %3315  ;;  %2367 = vst [vmem:[%s5125_s2 + $0x408] sm:$0xff] %v3314_v0  ;;  %v1667_v2 = vpop.f32.mrf.mxu2 }
  0xaf   :  { %v1827_v3 = vpop.f32.mrf.mxu3  ;;  %v3318_v4 = vpop.eup %3317  ;;  %2431 = vst [vmem:[%s5125_s2 + $0x608] sm:$0xff] %v3316_v1  ;;  %3321 = vtanh.f32 %v1667_v2 }
  0xb0   :  { %v1349_v5 = vpop.f32.mrf.mxu0  ;;  %v1509_v6 = vpop.f32.mrf.mxu1  ;;  %2240 = vst [vmem:[%s5125_s2 + $0x10] sm:$0xff] %v3318_v4  ;;  %3323 = vtanh.f32 %v1827_v3 }
  0xb1   :  { %v3320_v7 = vpop.eup %3319  ;;  %3325 = vtanh.f32 %v1349_v5 }
  0xb2   :  { %2304 = vst [vmem:[%s5125_s2 + $0x210] sm:$0xff] %v3320_v7  ;;  %3327 = vtanh.f32 %v1509_v6 }
  0xb5   :  { %v3322_v8 = vpop.eup %3321 }
  0xb6   :  { %v3324_v9 = vpop.eup %3323  ;;  %2368 = vst [vmem:[%s5125_s2 + $0x410] sm:$0xff] %v3322_v8  ;;  %v1669_v10 = vpop.f32.mrf.mxu2  ;;  %v3167_v8 = vld [vmem:[%s5124_s0 + $0x68] sm:$0xff] }
  0xb7   :  { %v1829_v11 = vpop.f32.mrf.mxu3  ;;  %v3326_v14 = vpop.eup %3325  ;;  %2432 = vst [vmem:[%s5125_s2 + $0x610] sm:$0xff] %v3324_v9  ;;  %3329 = vtanh.f32 %v1669_v10  ;;  %v3199_v9 = vld [vmem:[%s5124_s0 + $0x168] sm:$0xff] }
  0xb8   :  { %v1352_v15 = vpop.f32.mrf.mxu0  ;;  %v1512_v16 = vpop.f32.mrf.mxu1  ;;  %2241 = vst [vmem:[%s5125_s2 + $0x18] sm:$0xff] %v3326_v14  ;;  %3331 = vtanh.f32 %v1829_v11  ;;  %v3263_v14 = vld [vmem:[%s5124_s0 + $0x368] sm:$0xff] }
  0xb9   :  { %v3328_v19 = vpop.eup %3327  ;;  %3333 = vtanh.f32 %v1352_v15 }
  0xba   :  { %2305 = vst [vmem:[%s5125_s2 + $0x218] sm:$0xff] %v3328_v19  ;;  %3335 = vtanh.f32 %v1512_v16  ;;  %3036 = vmatmul.msk.bf16.gmra.mxu0 %vm944_vm1, %v3164_v12  ;;  %3068 = vmatmul.msk.bf16.gmra.mxu1 %vm944_vm1, %v3196_v13  ;;  %v3231_v13 = vld [vmem:[%s5124_s0 + $0x268] sm:$0xff] }
  0xbb   :  { %3100 = vmatmul.msk.bf16.gmra.mxu2 %vm944_vm1, %v3228_v17  ;;  %3132 = vmatmul.msk.bf16.gmra.mxu3 %vm944_vm1, %v3260_v18 }
  0xbd   :  { %v3330_v20 = vpop.eup %3329 }
  0xbe   :  { %v3332_v21 = vpop.eup %3331  ;;  %2369 = vst [vmem:[%s5125_s2 + $0x418] sm:$0xff] %v3330_v20  ;;  %v1672_v22 = vpop.f32.mrf.mxu2 }
  0xbf   :  { %v1832_v23 = vpop.f32.mrf.mxu3  ;;  %v3334_v24 = vpop.eup %3333  ;;  %2433 = vst [vmem:[%s5125_s2 + $0x618] sm:$0xff] %v3332_v21  ;;  %3337 = vtanh.f32 %v1672_v22 }
  0xc0   :  { %v1354_v25 = vpop.f32.mrf.mxu0  ;;  %v1514_v26 = vpop.f32.mrf.mxu1  ;;  %2242 = vst [vmem:[%s5125_s2 + $0x20] sm:$0xff] %v3334_v24  ;;  %3339 = vtanh.f32 %v1832_v23 }
  0xc1   :  { %v3336_v27 = vpop.eup %3335  ;;  %3341 = vtanh.f32 %v1354_v25 }
  0xc2   :  { %2306 = vst [vmem:[%s5125_s2 + $0x220] sm:$0xff] %v3336_v27  ;;  %3343 = vtanh.f32 %v1514_v26 }
  0xc5   :  { %v3338_v28 = vpop.eup %3337 }
  0xc6   :  { %v3340_v29 = vpop.eup %3339  ;;  %2370 = vst [vmem:[%s5125_s2 + $0x420] sm:$0xff] %v3338_v28  ;;  %v1674_v30 = vpop.f32.mrf.mxu2  ;;  %v3168_v28 = vld [vmem:[%s5124_s0 + $0x70] sm:$0xff] }
  0xc7   :  { %v1834_v31 = vpop.f32.mrf.mxu3  ;;  %v3342_v34 = vpop.eup %3341  ;;  %2434 = vst [vmem:[%s5125_s2 + $0x620] sm:$0xff] %v3340_v29  ;;  %3345 = vtanh.f32 %v1674_v30  ;;  %v3200_v29 = vld [vmem:[%s5124_s0 + $0x170] sm:$0xff] }
  0xc8   :  { %v1357_v35 = vpop.f32.mrf.mxu0  ;;  %v1517_v36 = vpop.f32.mrf.mxu1  ;;  %2243 = vst [vmem:[%s5125_s2 + $0x28] sm:$0xff] %v3342_v34  ;;  %3347 = vtanh.f32 %v1834_v31  ;;  %v3264_v34 = vld [vmem:[%s5124_s0 + $0x370] sm:$0xff] }
  0xc9   :  { %v3344_v39 = vpop.eup %3343  ;;  %3349 = vtanh.f32 %v1357_v35 }
  0xca   :  { %2307 = vst [vmem:[%s5125_s2 + $0x228] sm:$0xff] %v3344_v39  ;;  %3351 = vtanh.f32 %v1517_v36  ;;  %3037 = vmatmul.msk.bf16.gmra.mxu0 %vm944_vm1, %v3165_v32  ;;  %3069 = vmatmul.msk.bf16.gmra.mxu1 %vm944_vm1, %v3197_v33  ;;  %v3232_v33 = vld [vmem:[%s5124_s0 + $0x270] sm:$0xff] }
  0xcb   :  { %3101 = vmatmul.msk.bf16.gmra.mxu2 %vm944_vm1, %v3229_v37  ;;  %3133 = vmatmul.msk.bf16.gmra.mxu3 %vm944_vm1, %v3261_v38 }
  0xcd   :  { %v3346_v40 = vpop.eup %3345 }
  0xce   :  { %v3348_v41 = vpop.eup %3347  ;;  %2371 = vst [vmem:[%s5125_s2 + $0x428] sm:$0xff] %v3346_v40  ;;  %v1677_v42 = vpop.f32.mrf.mxu2 }
  0xcf   :  { %v1837_v43 = vpop.f32.mrf.mxu3  ;;  %v3350_v44 = vpop.eup %3349  ;;  %2435 = vst [vmem:[%s5125_s2 + $0x628] sm:$0xff] %v3348_v41  ;;  %3353 = vtanh.f32 %v1677_v42 }
  0xd0   :  { %v1359_v45 = vpop.f32.mrf.mxu0  ;;  %v1519_v46 = vpop.f32.mrf.mxu1  ;;  %2244 = vst [vmem:[%s5125_s2 + $0x30] sm:$0xff] %v3350_v44  ;;  %3355 = vtanh.f32 %v1837_v43 }
  0xd1   :  { %v3352_v47 = vpop.eup %3351  ;;  %3357 = vtanh.f32 %v1359_v45 }
  0xd2   :  { %2308 = vst [vmem:[%s5125_s2 + $0x230] sm:$0xff] %v3352_v47  ;;  %3359 = vtanh.f32 %v1519_v46 }
  0xd5   :  { %v3354_v48 = vpop.eup %3353 }
  0xd6   :  { %v3356_v49 = vpop.eup %3355  ;;  %2372 = vst [vmem:[%s5125_s2 + $0x430] sm:$0xff] %v3354_v48  ;;  %v1679_v50 = vpop.f32.mrf.mxu2  ;;  %v3169_v48 = vld [vmem:[%s5124_s0 + $0x78] sm:$0xff] }
  0xd7   :  { %v1839_v51 = vpop.f32.mrf.mxu3  ;;  %v3358_v54 = vpop.eup %3357  ;;  %2436 = vst [vmem:[%s5125_s2 + $0x630] sm:$0xff] %v3356_v49  ;;  %3361 = vtanh.f32 %v1679_v50  ;;  %v3201_v49 = vld [vmem:[%s5124_s0 + $0x178] sm:$0xff] }
  0xd8   :  { %v1362_v55 = vpop.f32.mrf.mxu0  ;;  %v1522_v56 = vpop.f32.mrf.mxu1  ;;  %2245 = vst [vmem:[%s5125_s2 + $0x38] sm:$0xff] %v3358_v54  ;;  %3363 = vtanh.f32 %v1839_v51  ;;  %v3265_v54 = vld [vmem:[%s5124_s0 + $0x378] sm:$0xff] }
  0xd9   :  { %v3360_v59 = vpop.eup %3359  ;;  %3365 = vtanh.f32 %v1362_v55 }
  0xda   :  { %2309 = vst [vmem:[%s5125_s2 + $0x238] sm:$0xff] %v3360_v59  ;;  %3367 = vtanh.f32 %v1522_v56  ;;  %3038 = vmatmul.msk.bf16.gmra.mxu0 %vm944_vm1, %v3166_v52  ;;  %3070 = vmatmul.msk.bf16.gmra.mxu1 %vm944_vm1, %v3198_v53  ;;  %v3233_v53 = vld [vmem:[%s5124_s0 + $0x278] sm:$0xff] }
  0xdb   :  { %3102 = vmatmul.msk.bf16.gmra.mxu2 %vm944_vm1, %v3230_v57  ;;  %3134 = vmatmul.msk.bf16.gmra.mxu3 %vm944_vm1, %v3262_v58 }
  0xdd   :  { %v3362_v60 = vpop.eup %3361 }
  0xde   :  { %v3364_v61 = vpop.eup %3363  ;;  %2373 = vst [vmem:[%s5125_s2 + $0x438] sm:$0xff] %v3362_v60  ;;  %v1682_v62 = vpop.f32.mrf.mxu2 }
  0xdf   :  { %v1842_v63 = vpop.f32.mrf.mxu3  ;;  %v3366_v0 = vpop.eup %3365  ;;  %2437 = vst [vmem:[%s5125_s2 + $0x638] sm:$0xff] %v3364_v61  ;;  %3369 = vtanh.f32 %v1682_v62 }
  0xe0   :  { %v1364_v1 = vpop.f32.mrf.mxu0  ;;  %v1524_v2 = vpop.f32.mrf.mxu1  ;;  %2246 = vst [vmem:[%s5125_s2 + $0x40] sm:$0xff] %v3366_v0  ;;  %3371 = vtanh.f32 %v1842_v63 }
  0xe1   :  { %v3368_v3 = vpop.eup %3367  ;;  %3373 = vtanh.f32 %v1364_v1 }
  0xe2   :  { %2310 = vst [vmem:[%s5125_s2 + $0x240] sm:$0xff] %v3368_v3  ;;  %3375 = vtanh.f32 %v1524_v2 }
  0xe5   :  { %v3370_v4 = vpop.eup %3369 }
  0xe6   :  { %v3372_v5 = vpop.eup %3371  ;;  %2374 = vst [vmem:[%s5125_s2 + $0x440] sm:$0xff] %v3370_v4  ;;  %v1684_v6 = vpop.f32.mrf.mxu2  ;;  %v3170_v4 = vld [vmem:[%s5124_s0 + $0x80] sm:$0xff] }
  0xe7   :  { %v1844_v7 = vpop.f32.mrf.mxu3  ;;  %v3374_v10 = vpop.eup %3373  ;;  %2438 = vst [vmem:[%s5125_s2 + $0x640] sm:$0xff] %v3372_v5  ;;  %3377 = vtanh.f32 %v1684_v6  ;;  %v3202_v5 = vld [vmem:[%s5124_s0 + $0x180] sm:$0xff] }
  0xe8   :  { %v1367_v11 = vpop.f32.mrf.mxu0  ;;  %v1527_v12 = vpop.f32.mrf.mxu1  ;;  %2247 = vst [vmem:[%s5125_s2 + $0x48] sm:$0xff] %v3374_v10  ;;  %3379 = vtanh.f32 %v1844_v7  ;;  %v3266_v10 = vld [vmem:[%s5124_s0 + $0x380] sm:$0xff] }
  0xe9   :  { %v3376_v15 = vpop.eup %3375  ;;  %3381 = vtanh.f32 %v1367_v11 }
  0xea   :  { %2311 = vst [vmem:[%s5125_s2 + $0x248] sm:$0xff] %v3376_v15  ;;  %3383 = vtanh.f32 %v1527_v12  ;;  %3039 = vmatmul.msk.bf16.gmra.mxu0 %vm944_vm1, %v3167_v8  ;;  %3071 = vmatmul.msk.bf16.gmra.mxu1 %vm944_vm1, %v3199_v9  ;;  %v3234_v9 = vld [vmem:[%s5124_s0 + $0x280] sm:$0xff] }
  0xeb   :  { %3103 = vmatmul.msk.bf16.gmra.mxu2 %vm944_vm1, %v3231_v13  ;;  %3135 = vmatmul.msk.bf16.gmra.mxu3 %vm944_vm1, %v3263_v14 }
  0xed   :  { %v3378_v16 = vpop.eup %3377 }
  0xee   :  { %v3380_v17 = vpop.eup %3379  ;;  %2375 = vst [vmem:[%s5125_s2 + $0x448] sm:$0xff] %v3378_v16  ;;  %v1687_v18 = vpop.f32.mrf.mxu2 }
  0xef   :  { %v1847_v19 = vpop.f32.mrf.mxu3  ;;  %v3382_v20 = vpop.eup %3381  ;;  %2439 = vst [vmem:[%s5125_s2 + $0x648] sm:$0xff] %v3380_v17  ;;  %3385 = vtanh.f32 %v1687_v18 }
  0xf0   :  { %v1369_v21 = vpop.f32.mrf.mxu0  ;;  %v1529_v22 = vpop.f32.mrf.mxu1  ;;  %2248 = vst [vmem:[%s5125_s2 + $0x50] sm:$0xff] %v3382_v20  ;;  %3387 = vtanh.f32 %v1847_v19 }
  0xf1   :  { %v3384_v23 = vpop.eup %3383  ;;  %3389 = vtanh.f32 %v1369_v21 }
  0xf2   :  { %2312 = vst [vmem:[%s5125_s2 + $0x250] sm:$0xff] %v3384_v23  ;;  %3391 = vtanh.f32 %v1529_v22 }
  0xf5   :  { %v3386_v24 = vpop.eup %3385 }
  0xf6   :  { %v3388_v25 = vpop.eup %3387  ;;  %2376 = vst [vmem:[%s5125_s2 + $0x450] sm:$0xff] %v3386_v24  ;;  %v1689_v26 = vpop.f32.mrf.mxu2  ;;  %v3171_v24 = vld [vmem:[%s5124_s0 + $0x88] sm:$0xff] }
  0xf7   :  { %v1849_v27 = vpop.f32.mrf.mxu3  ;;  %v3390_v30 = vpop.eup %3389  ;;  %2440 = vst [vmem:[%s5125_s2 + $0x650] sm:$0xff] %v3388_v25  ;;  %3393 = vtanh.f32 %v1689_v26  ;;  %v3203_v25 = vld [vmem:[%s5124_s0 + $0x188] sm:$0xff] }
  0xf8   :  { %v1372_v31 = vpop.f32.mrf.mxu0  ;;  %v1532_v32 = vpop.f32.mrf.mxu1  ;;  %2249 = vst [vmem:[%s5125_s2 + $0x58] sm:$0xff] %v3390_v30  ;;  %3395 = vtanh.f32 %v1849_v27  ;;  %v3267_v30 = vld [vmem:[%s5124_s0 + $0x388] sm:$0xff] }
  0xf9   :  { %v3392_v35 = vpop.eup %3391  ;;  %3397 = vtanh.f32 %v1372_v31 }
  0xfa   :  { %2313 = vst [vmem:[%s5125_s2 + $0x258] sm:$0xff] %v3392_v35  ;;  %3399 = vtanh.f32 %v1532_v32  ;;  %3040 = vmatmul.msk.bf16.gmra.mxu0 %vm944_vm1, %v3168_v28  ;;  %3072 = vmatmul.msk.bf16.gmra.mxu1 %vm944_vm1, %v3200_v29  ;;  %v3235_v29 = vld [vmem:[%s5124_s0 + $0x288] sm:$0xff] }
  0xfb   :  { %3104 = vmatmul.msk.bf16.gmra.mxu2 %vm944_vm1, %v3232_v33  ;;  %3136 = vmatmul.msk.bf16.gmra.mxu3 %vm944_vm1, %v3264_v34 }
  0xfd   :  { %v3394_v36 = vpop.eup %3393 }
  0xfe   :  { %v3396_v37 = vpop.eup %3395  ;;  %2377 = vst [vmem:[%s5125_s2 + $0x458] sm:$0xff] %v3394_v36  ;;  %v1692_v38 = vpop.f32.mrf.mxu2 }
  0xff   :  { %v1852_v39 = vpop.f32.mrf.mxu3  ;;  %v3398_v40 = vpop.eup %3397  ;;  %2441 = vst [vmem:[%s5125_s2 + $0x658] sm:$0xff] %v3396_v37  ;;  %3401 = vtanh.f32 %v1692_v38 }
 0x100   :  { %v1374_v41 = vpop.f32.mrf.mxu0  ;;  %v1534_v42 = vpop.f32.mrf.mxu1  ;;  %2250 = vst [vmem:[%s5125_s2 + $0x60] sm:$0xff] %v3398_v40  ;;  %3403 = vtanh.f32 %v1852_v39 }
 0x101   :  { %v3400_v43 = vpop.eup %3399  ;;  %3405 = vtanh.f32 %v1374_v41 }
 0x102   :  { %2314 = vst [vmem:[%s5125_s2 + $0x260] sm:$0xff] %v3400_v43  ;;  %3407 = vtanh.f32 %v1534_v42 }
 0x105   :  { %v3402_v44 = vpop.eup %3401 }
 0x106   :  { %v3404_v45 = vpop.eup %3403  ;;  %2378 = vst [vmem:[%s5125_s2 + $0x460] sm:$0xff] %v3402_v44  ;;  %v1694_v46 = vpop.f32.mrf.mxu2  ;;  %v3172_v44 = vld [vmem:[%s5124_s0 + $0x90] sm:$0xff] }
 0x107   :  { %v1854_v47 = vpop.f32.mrf.mxu3  ;;  %v3406_v50 = vpop.eup %3405  ;;  %2442 = vst [vmem:[%s5125_s2 + $0x660] sm:$0xff] %v3404_v45  ;;  %3409 = vtanh.f32 %v1694_v46  ;;  %v3204_v45 = vld [vmem:[%s5124_s0 + $0x190] sm:$0xff] }
 0x108   :  { %v1377_v51 = vpop.f32.mrf.mxu0  ;;  %v1537_v52 = vpop.f32.mrf.mxu1  ;;  %2251 = vst [vmem:[%s5125_s2 + $0x68] sm:$0xff] %v3406_v50  ;;  %3411 = vtanh.f32 %v1854_v47  ;;  %v3268_v50 = vld [vmem:[%s5124_s0 + $0x390] sm:$0xff] }
 0x109   :  { %v3408_v55 = vpop.eup %3407  ;;  %3413 = vtanh.f32 %v1377_v51 }
 0x10a   :  { %2315 = vst [vmem:[%s5125_s2 + $0x268] sm:$0xff] %v3408_v55  ;;  %3415 = vtanh.f32 %v1537_v52  ;;  %3041 = vmatmul.msk.bf16.gmra.mxu0 %vm944_vm1, %v3169_v48  ;;  %3073 = vmatmul.msk.bf16.gmra.mxu1 %vm944_vm1, %v3201_v49  ;;  %v3236_v49 = vld [vmem:[%s5124_s0 + $0x290] sm:$0xff] }
 0x10b   :  { %3105 = vmatmul.msk.bf16.gmra.mxu2 %vm944_vm1, %v3233_v53  ;;  %3137 = vmatmul.msk.bf16.gmra.mxu3 %vm944_vm1, %v3265_v54 }
 0x10d   :  { %v3410_v56 = vpop.eup %3409 }
 0x10e   :  { %v3412_v57 = vpop.eup %3411  ;;  %2379 = vst [vmem:[%s5125_s2 + $0x468] sm:$0xff] %v3410_v56  ;;  %v1697_v58 = vpop.f32.mrf.mxu2 }
 0x10f   :  { %v1857_v59 = vpop.f32.mrf.mxu3  ;;  %v3414_v60 = vpop.eup %3413  ;;  %2443 = vst [vmem:[%s5125_s2 + $0x668] sm:$0xff] %v3412_v57  ;;  %3417 = vtanh.f32 %v1697_v58 }
 0x110   :  { %v1379_v61 = vpop.f32.mrf.mxu0  ;;  %v1539_v62 = vpop.f32.mrf.mxu1  ;;  %2252 = vst [vmem:[%s5125_s2 + $0x70] sm:$0xff] %v3414_v60  ;;  %3419 = vtanh.f32 %v1857_v59 }
 0x111   :  { %v3416_v63 = vpop.eup %3415  ;;  %3421 = vtanh.f32 %v1379_v61 }
 0x112   :  { %2316 = vst [vmem:[%s5125_s2 + $0x270] sm:$0xff] %v3416_v63  ;;  %3423 = vtanh.f32 %v1539_v62 }
 0x115   :  { %v3418_v0 = vpop.eup %3417 }
 0x116   :  { %v3420_v1 = vpop.eup %3419  ;;  %2380 = vst [vmem:[%s5125_s2 + $0x470] sm:$0xff] %v3418_v0  ;;  %v1699_v2 = vpop.f32.mrf.mxu2  ;;  %v3173_v0 = vld [vmem:[%s5124_s0 + $0x98] sm:$0xff] }
 0x117   :  { %v1859_v3 = vpop.f32.mrf.mxu3  ;;  %v3422_v6 = vpop.eup %3421  ;;  %2444 = vst [vmem:[%s5125_s2 + $0x670] sm:$0xff] %v3420_v1  ;;  %3425 = vtanh.f32 %v1699_v2  ;;  %v3205_v1 = vld [vmem:[%s5124_s0 + $0x198] sm:$0xff] }
 0x118   :  { %v1382_v7 = vpop.f32.mrf.mxu0  ;;  %v1542_v8 = vpop.f32.mrf.mxu1  ;;  %2253 = vst [vmem:[%s5125_s2 + $0x78] sm:$0xff] %v3422_v6  ;;  %3427 = vtanh.f32 %v1859_v3  ;;  %v3269_v6 = vld [vmem:[%s5124_s0 + $0x398] sm:$0xff] }
 0x119   :  { %v3424_v11 = vpop.eup %3423  ;;  %3429 = vtanh.f32 %v1382_v7 }
 0x11a   :  { %2317 = vst [vmem:[%s5125_s2 + $0x278] sm:$0xff] %v3424_v11  ;;  %3431 = vtanh.f32 %v1542_v8  ;;  %3042 = vmatmul.msk.bf16.gmra.mxu0 %vm944_vm1, %v3170_v4  ;;  %3074 = vmatmul.msk.bf16.gmra.mxu1 %vm944_vm1, %v3202_v5  ;;  %v3237_v5 = vld [vmem:[%s5124_s0 + $0x298] sm:$0xff] }
 0x11b   :  { %3106 = vmatmul.msk.bf16.gmra.mxu2 %vm944_vm1, %v3234_v9  ;;  %3138 = vmatmul.msk.bf16.gmra.mxu3 %vm944_vm1, %v3266_v10 }
 0x11d   :  { %v3426_v12 = vpop.eup %3425 }
 0x11e   :  { %v3428_v13 = vpop.eup %3427  ;;  %2381 = vst [vmem:[%s5125_s2 + $0x478] sm:$0xff] %v3426_v12  ;;  %v1702_v14 = vpop.f32.mrf.mxu2 }
 0x11f   :  { %v1862_v15 = vpop.f32.mrf.mxu3  ;;  %v3430_v16 = vpop.eup %3429  ;;  %2445 = vst [vmem:[%s5125_s2 + $0x678] sm:$0xff] %v3428_v13  ;;  %3433 = vtanh.f32 %v1702_v14 }
 0x120   :  { %v1384_v17 = vpop.f32.mrf.mxu0  ;;  %v1544_v18 = vpop.f32.mrf.mxu1  ;;  %2254 = vst [vmem:[%s5125_s2 + $0x80] sm:$0xff] %v3430_v16  ;;  %3435 = vtanh.f32 %v1862_v15 }
 0x121   :  { %v3432_v19 = vpop.eup %3431  ;;  %3437 = vtanh.f32 %v1384_v17 }
 0x122   :  { %2318 = vst [vmem:[%s5125_s2 + $0x280] sm:$0xff] %v3432_v19  ;;  %3439 = vtanh.f32 %v1544_v18 }
 0x125   :  { %v3434_v20 = vpop.eup %3433 }
 0x126   :  { %v3436_v21 = vpop.eup %3435  ;;  %2382 = vst [vmem:[%s5125_s2 + $0x480] sm:$0xff] %v3434_v20  ;;  %v1704_v22 = vpop.f32.mrf.mxu2  ;;  %v3174_v20 = vld [vmem:[%s5124_s0 + $0xa0] sm:$0xff] }
 0x127   :  { %v1864_v23 = vpop.f32.mrf.mxu3  ;;  %v3438_v26 = vpop.eup %3437  ;;  %2446 = vst [vmem:[%s5125_s2 + $0x680] sm:$0xff] %v3436_v21  ;;  %3441 = vtanh.f32 %v1704_v22  ;;  %v3206_v21 = vld [vmem:[%s5124_s0 + $0x1a0] sm:$0xff] }
 0x128   :  { %v1387_v27 = vpop.f32.mrf.mxu0  ;;  %v1547_v28 = vpop.f32.mrf.mxu1  ;;  %2255 = vst [vmem:[%s5125_s2 + $0x88] sm:$0xff] %v3438_v26  ;;  %3443 = vtanh.f32 %v1864_v23  ;;  %v3270_v26 = vld [vmem:[%s5124_s0 + $0x3a0] sm:$0xff] }
 0x129   :  { %v3440_v31 = vpop.eup %3439  ;;  %3445 = vtanh.f32 %v1387_v27 }
 0x12a   :  { %2319 = vst [vmem:[%s5125_s2 + $0x288] sm:$0xff] %v3440_v31  ;;  %3447 = vtanh.f32 %v1547_v28  ;;  %3043 = vmatmul.msk.bf16.gmra.mxu0 %vm944_vm1, %v3171_v24  ;;  %3075 = vmatmul.msk.bf16.gmra.mxu1 %vm944_vm1, %v3203_v25  ;;  %v3238_v25 = vld [vmem:[%s5124_s0 + $0x2a0] sm:$0xff] }
 0x12b   :  { %3107 = vmatmul.msk.bf16.gmra.mxu2 %vm944_vm1, %v3235_v29  ;;  %3139 = vmatmul.msk.bf16.gmra.mxu3 %vm944_vm1, %v3267_v30 }
 0x12d   :  { %v3442_v32 = vpop.eup %3441 }
 0x12e   :  { %v3444_v33 = vpop.eup %3443  ;;  %2383 = vst [vmem:[%s5125_s2 + $0x488] sm:$0xff] %v3442_v32  ;;  %v1707_v34 = vpop.f32.mrf.mxu2 }
 0x12f   :  { %v1867_v35 = vpop.f32.mrf.mxu3  ;;  %v3446_v36 = vpop.eup %3445  ;;  %2447 = vst [vmem:[%s5125_s2 + $0x688] sm:$0xff] %v3444_v33  ;;  %3449 = vtanh.f32 %v1707_v34 }
 0x130   :  { %v1389_v37 = vpop.f32.mrf.mxu0  ;;  %v1549_v38 = vpop.f32.mrf.mxu1  ;;  %2256 = vst [vmem:[%s5125_s2 + $0x90] sm:$0xff] %v3446_v36  ;;  %3451 = vtanh.f32 %v1867_v35 }
 0x131   :  { %v3448_v39 = vpop.eup %3447  ;;  %3453 = vtanh.f32 %v1389_v37 }
 0x132   :  { %2320 = vst [vmem:[%s5125_s2 + $0x290] sm:$0xff] %v3448_v39  ;;  %3455 = vtanh.f32 %v1549_v38 }
 0x135   :  { %v3450_v40 = vpop.eup %3449 }
 0x136   :  { %v3452_v41 = vpop.eup %3451  ;;  %2384 = vst [vmem:[%s5125_s2 + $0x490] sm:$0xff] %v3450_v40  ;;  %v1709_v42 = vpop.f32.mrf.mxu2  ;;  %v3175_v40 = vld [vmem:[%s5124_s0 + $0xa8] sm:$0xff] }
 0x137   :  { %v1869_v43 = vpop.f32.mrf.mxu3  ;;  %v3454_v46 = vpop.eup %3453  ;;  %2448 = vst [vmem:[%s5125_s2 + $0x690] sm:$0xff] %v3452_v41  ;;  %3457 = vtanh.f32 %v1709_v42  ;;  %v3207_v41 = vld [vmem:[%s5124_s0 + $0x1a8] sm:$0xff] }
 0x138   :  { %v1392_v47 = vpop.f32.mrf.mxu0  ;;  %v1552_v48 = vpop.f32.mrf.mxu1  ;;  %2257 = vst [vmem:[%s5125_s2 + $0x98] sm:$0xff] %v3454_v46  ;;  %3459 = vtanh.f32 %v1869_v43  ;;  %v3271_v46 = vld [vmem:[%s5124_s0 + $0x3a8] sm:$0xff] }
 0x139   :  { %v3456_v51 = vpop.eup %3455  ;;  %3461 = vtanh.f32 %v1392_v47 }
 0x13a   :  { %2321 = vst [vmem:[%s5125_s2 + $0x298] sm:$0xff] %v3456_v51  ;;  %3463 = vtanh.f32 %v1552_v48  ;;  %3044 = vmatmul.msk.bf16.gmra.mxu0 %vm944_vm1, %v3172_v44  ;;  %3076 = vmatmul.msk.bf16.gmra.mxu1 %vm944_vm1, %v3204_v45  ;;  %v3239_v45 = vld [vmem:[%s5124_s0 + $0x2a8] sm:$0xff] }
 0x13b   :  { %3108 = vmatmul.msk.bf16.gmra.mxu2 %vm944_vm1, %v3236_v49  ;;  %3140 = vmatmul.msk.bf16.gmra.mxu3 %vm944_vm1, %v3268_v50 }
 0x13d   :  { %v3458_v52 = vpop.eup %3457 }
 0x13e   :  { %v3460_v53 = vpop.eup %3459  ;;  %2385 = vst [vmem:[%s5125_s2 + $0x498] sm:$0xff] %v3458_v52  ;;  %v1712_v54 = vpop.f32.mrf.mxu2 }
 0x13f   :  { %v1872_v55 = vpop.f32.mrf.mxu3  ;;  %v3462_v56 = vpop.eup %3461  ;;  %2449 = vst [vmem:[%s5125_s2 + $0x698] sm:$0xff] %v3460_v53  ;;  %3465 = vtanh.f32 %v1712_v54 }
 0x140   :  { %v1394_v57 = vpop.f32.mrf.mxu0  ;;  %v1554_v58 = vpop.f32.mrf.mxu1  ;;  %2258 = vst [vmem:[%s5125_s2 + $0xa0] sm:$0xff] %v3462_v56  ;;  %3467 = vtanh.f32 %v1872_v55 }
 0x141   :  { %v3464_v59 = vpop.eup %3463  ;;  %3469 = vtanh.f32 %v1394_v57 }
 0x142   :  { %2322 = vst [vmem:[%s5125_s2 + $0x2a0] sm:$0xff] %v3464_v59  ;;  %3471 = vtanh.f32 %v1554_v58 }
 0x145   :  { %v3466_v60 = vpop.eup %3465 }
 0x146   :  { %v3468_v61 = vpop.eup %3467  ;;  %2386 = vst [vmem:[%s5125_s2 + $0x4a0] sm:$0xff] %v3466_v60  ;;  %v1714_v62 = vpop.f32.mrf.mxu2  ;;  %v3176_v60 = vld [vmem:[%s5124_s0 + $0xb0] sm:$0xff] }
 0x147   :  { %v1874_v63 = vpop.f32.mrf.mxu3  ;;  %v3470_v2 = vpop.eup %3469  ;;  %2450 = vst [vmem:[%s5125_s2 + $0x6a0] sm:$0xff] %v3468_v61  ;;  %3473 = vtanh.f32 %v1714_v62  ;;  %v3208_v61 = vld [vmem:[%s5124_s0 + $0x1b0] sm:$0xff] }
 0x148   :  { %v1397_v3 = vpop.f32.mrf.mxu0  ;;  %v1557_v4 = vpop.f32.mrf.mxu1  ;;  %2259 = vst [vmem:[%s5125_s2 + $0xa8] sm:$0xff] %v3470_v2  ;;  %3475 = vtanh.f32 %v1874_v63  ;;  %v3272_v2 = vld [vmem:[%s5124_s0 + $0x3b0] sm:$0xff] }
 0x149   :  { %v3472_v7 = vpop.eup %3471  ;;  %3477 = vtanh.f32 %v1397_v3 }
 0x14a   :  { %2323 = vst [vmem:[%s5125_s2 + $0x2a8] sm:$0xff] %v3472_v7  ;;  %3479 = vtanh.f32 %v1557_v4  ;;  %3045 = vmatmul.msk.bf16.gmra.mxu0 %vm944_vm1, %v3173_v0  ;;  %3077 = vmatmul.msk.bf16.gmra.mxu1 %vm944_vm1, %v3205_v1  ;;  %v3240_v1 = vld [vmem:[%s5124_s0 + $0x2b0] sm:$0xff] }
 0x14b   :  { %3109 = vmatmul.msk.bf16.gmra.mxu2 %vm944_vm1, %v3237_v5  ;;  %3141 = vmatmul.msk.bf16.gmra.mxu3 %vm944_vm1, %v3269_v6 }
 0x14d   :  { %v3474_v8 = vpop.eup %3473 }
 0x14e   :  { %v3476_v9 = vpop.eup %3475  ;;  %2387 = vst [vmem:[%s5125_s2 + $0x4a8] sm:$0xff] %v3474_v8  ;;  %v1717_v10 = vpop.f32.mrf.mxu2 }
 0x14f   :  { %v1877_v11 = vpop.f32.mrf.mxu3  ;;  %v3478_v12 = vpop.eup %3477  ;;  %2451 = vst [vmem:[%s5125_s2 + $0x6a8] sm:$0xff] %v3476_v9  ;;  %3481 = vtanh.f32 %v1717_v10 }
 0x150   :  { %v1399_v13 = vpop.f32.mrf.mxu0  ;;  %v1559_v14 = vpop.f32.mrf.mxu1  ;;  %2260 = vst [vmem:[%s5125_s2 + $0xb0] sm:$0xff] %v3478_v12  ;;  %3483 = vtanh.f32 %v1877_v11 }
 0x151   :  { %v3480_v15 = vpop.eup %3479  ;;  %3485 = vtanh.f32 %v1399_v13 }
 0x152   :  { %2324 = vst [vmem:[%s5125_s2 + $0x2b0] sm:$0xff] %v3480_v15  ;;  %3487 = vtanh.f32 %v1559_v14 }
 0x155   :  { %v3482_v16 = vpop.eup %3481 }
 0x156   :  { %v3484_v17 = vpop.eup %3483  ;;  %2388 = vst [vmem:[%s5125_s2 + $0x4b0] sm:$0xff] %v3482_v16  ;;  %v1719_v18 = vpop.f32.mrf.mxu2  ;;  %v3177_v16 = vld [vmem:[%s5124_s0 + $0xb8] sm:$0xff] }
 0x157   :  { %v1879_v19 = vpop.f32.mrf.mxu3  ;;  %v3486_v22 = vpop.eup %3485  ;;  %2452 = vst [vmem:[%s5125_s2 + $0x6b0] sm:$0xff] %v3484_v17  ;;  %3489 = vtanh.f32 %v1719_v18  ;;  %v3209_v17 = vld [vmem:[%s5124_s0 + $0x1b8] sm:$0xff] }
 0x158   :  { %v1402_v23 = vpop.f32.mrf.mxu0  ;;  %v1562_v24 = vpop.f32.mrf.mxu1  ;;  %2261 = vst [vmem:[%s5125_s2 + $0xb8] sm:$0xff] %v3486_v22  ;;  %3491 = vtanh.f32 %v1879_v19  ;;  %v3273_v22 = vld [vmem:[%s5124_s0 + $0x3b8] sm:$0xff] }
 0x159   :  { %v3488_v27 = vpop.eup %3487  ;;  %3493 = vtanh.f32 %v1402_v23 }
 0x15a   :  { %2325 = vst [vmem:[%s5125_s2 + $0x2b8] sm:$0xff] %v3488_v27  ;;  %3495 = vtanh.f32 %v1562_v24  ;;  %3046 = vmatmul.msk.bf16.gmra.mxu0 %vm944_vm1, %v3174_v20  ;;  %3078 = vmatmul.msk.bf16.gmra.mxu1 %vm944_vm1, %v3206_v21  ;;  %v3241_v21 = vld [vmem:[%s5124_s0 + $0x2b8] sm:$0xff] }
 0x15b   :  { %3110 = vmatmul.msk.bf16.gmra.mxu2 %vm944_vm1, %v3238_v25  ;;  %3142 = vmatmul.msk.bf16.gmra.mxu3 %vm944_vm1, %v3270_v26 }
 0x15d   :  { %v3490_v28 = vpop.eup %3489 }
 0x15e   :  { %v3492_v29 = vpop.eup %3491  ;;  %2389 = vst [vmem:[%s5125_s2 + $0x4b8] sm:$0xff] %v3490_v28  ;;  %v1722_v30 = vpop.f32.mrf.mxu2 }
 0x15f   :  { %v1882_v31 = vpop.f32.mrf.mxu3  ;;  %v3494_v32 = vpop.eup %3493  ;;  %2453 = vst [vmem:[%s5125_s2 + $0x6b8] sm:$0xff] %v3492_v29  ;;  %3497 = vtanh.f32 %v1722_v30 }
 0x160   :  { %v1404_v33 = vpop.f32.mrf.mxu0  ;;  %v1564_v34 = vpop.f32.mrf.mxu1  ;;  %2262 = vst [vmem:[%s5125_s2 + $0xc0] sm:$0xff] %v3494_v32  ;;  %3499 = vtanh.f32 %v1882_v31 }
 0x161   :  { %v3496_v35 = vpop.eup %3495  ;;  %3501 = vtanh.f32 %v1404_v33 }
 0x162   :  { %2326 = vst [vmem:[%s5125_s2 + $0x2c0] sm:$0xff] %v3496_v35  ;;  %3503 = vtanh.f32 %v1564_v34 }
 0x165   :  { %v3498_v36 = vpop.eup %3497 }
 0x166   :  { %v3500_v37 = vpop.eup %3499  ;;  %2390 = vst [vmem:[%s5125_s2 + $0x4c0] sm:$0xff] %v3498_v36  ;;  %v1724_v38 = vpop.f32.mrf.mxu2  ;;  %v3178_v36 = vld [vmem:[%s5124_s0 + $0xc0] sm:$0xff] }
 0x167   :  { %v1884_v39 = vpop.f32.mrf.mxu3  ;;  %v3502_v42 = vpop.eup %3501  ;;  %2454 = vst [vmem:[%s5125_s2 + $0x6c0] sm:$0xff] %v3500_v37  ;;  %3505 = vtanh.f32 %v1724_v38  ;;  %v3210_v37 = vld [vmem:[%s5124_s0 + $0x1c0] sm:$0xff] }
 0x168   :  { %v1407_v43 = vpop.f32.mrf.mxu0  ;;  %v1567_v44 = vpop.f32.mrf.mxu1  ;;  %2263 = vst [vmem:[%s5125_s2 + $0xc8] sm:$0xff] %v3502_v42  ;;  %3507 = vtanh.f32 %v1884_v39  ;;  %v3274_v42 = vld [vmem:[%s5124_s0 + $0x3c0] sm:$0xff] }
 0x169   :  { %v3504_v47 = vpop.eup %3503  ;;  %3509 = vtanh.f32 %v1407_v43 }
 0x16a   :  { %2327 = vst [vmem:[%s5125_s2 + $0x2c8] sm:$0xff] %v3504_v47  ;;  %3511 = vtanh.f32 %v1567_v44  ;;  %3047 = vmatmul.msk.bf16.gmra.mxu0 %vm944_vm1, %v3175_v40  ;;  %3079 = vmatmul.msk.bf16.gmra.mxu1 %vm944_vm1, %v3207_v41  ;;  %v3242_v41 = vld [vmem:[%s5124_s0 + $0x2c0] sm:$0xff] }
 0x16b   :  { %3111 = vmatmul.msk.bf16.gmra.mxu2 %vm944_vm1, %v3239_v45  ;;  %3143 = vmatmul.msk.bf16.gmra.mxu3 %vm944_vm1, %v3271_v46 }
 0x16d   :  { %v3506_v48 = vpop.eup %3505 }
 0x16e   :  { %v3508_v49 = vpop.eup %3507  ;;  %2391 = vst [vmem:[%s5125_s2 + $0x4c8] sm:$0xff] %v3506_v48  ;;  %v1727_v50 = vpop.f32.mrf.mxu2 }
 0x16f   :  { %v1887_v51 = vpop.f32.mrf.mxu3  ;;  %v3510_v52 = vpop.eup %3509  ;;  %2455 = vst [vmem:[%s5125_s2 + $0x6c8] sm:$0xff] %v3508_v49  ;;  %3513 = vtanh.f32 %v1727_v50 }
 0x170   :  { %v1409_v53 = vpop.f32.mrf.mxu0  ;;  %v1569_v54 = vpop.f32.mrf.mxu1  ;;  %2264 = vst [vmem:[%s5125_s2 + $0xd0] sm:$0xff] %v3510_v52  ;;  %3515 = vtanh.f32 %v1887_v51 }
 0x171   :  { %v3512_v55 = vpop.eup %3511  ;;  %3517 = vtanh.f32 %v1409_v53 }
 0x172   :  { %2328 = vst [vmem:[%s5125_s2 + $0x2d0] sm:$0xff] %v3512_v55  ;;  %3519 = vtanh.f32 %v1569_v54 }
 0x175   :  { %v3514_v56 = vpop.eup %3513 }
 0x176   :  { %v3516_v57 = vpop.eup %3515  ;;  %2392 = vst [vmem:[%s5125_s2 + $0x4d0] sm:$0xff] %v3514_v56  ;;  %v1729_v58 = vpop.f32.mrf.mxu2  ;;  %v3179_v56 = vld [vmem:[%s5124_s0 + $0xc8] sm:$0xff] }
 0x177   :  { %v1889_v59 = vpop.f32.mrf.mxu3  ;;  %v3518_v62 = vpop.eup %3517  ;;  %2456 = vst [vmem:[%s5125_s2 + $0x6d0] sm:$0xff] %v3516_v57  ;;  %3521 = vtanh.f32 %v1729_v58  ;;  %v3211_v57 = vld [vmem:[%s5124_s0 + $0x1c8] sm:$0xff] }
 0x178   :  { %v1412_v63 = vpop.f32.mrf.mxu0  ;;  %v1572_v0 = vpop.f32.mrf.mxu1  ;;  %2265 = vst [vmem:[%s5125_s2 + $0xd8] sm:$0xff] %v3518_v62  ;;  %3523 = vtanh.f32 %v1889_v59  ;;  %v3275_v62 = vld [vmem:[%s5124_s0 + $0x3c8] sm:$0xff] }
 0x179   :  { %v3520_v3 = vpop.eup %3519  ;;  %3525 = vtanh.f32 %v1412_v63 }
 0x17a   :  { %2329 = vst [vmem:[%s5125_s2 + $0x2d8] sm:$0xff] %v3520_v3  ;;  %3527 = vtanh.f32 %v1572_v0  ;;  %3048 = vmatmul.msk.bf16.gmra.mxu0 %vm944_vm1, %v3176_v60  ;;  %3080 = vmatmul.msk.bf16.gmra.mxu1 %vm944_vm1, %v3208_v61  ;;  %v3243_v61 = vld [vmem:[%s5124_s0 + $0x2c8] sm:$0xff] }
 0x17b   :  { %3112 = vmatmul.msk.bf16.gmra.mxu2 %vm944_vm1, %v3240_v1  ;;  %3144 = vmatmul.msk.bf16.gmra.mxu3 %vm944_vm1, %v3272_v2 }
 0x17d   :  { %v3522_v4 = vpop.eup %3521 }
 0x17e   :  { %v3524_v5 = vpop.eup %3523  ;;  %2393 = vst [vmem:[%s5125_s2 + $0x4d8] sm:$0xff] %v3522_v4  ;;  %v1732_v6 = vpop.f32.mrf.mxu2 }
 0x17f   :  { %v1892_v7 = vpop.f32.mrf.mxu3  ;;  %v3526_v8 = vpop.eup %3525  ;;  %2457 = vst [vmem:[%s5125_s2 + $0x6d8] sm:$0xff] %v3524_v5  ;;  %3529 = vtanh.f32 %v1732_v6 }
 0x180   :  { %v1414_v9 = vpop.f32.mrf.mxu0  ;;  %v1574_v10 = vpop.f32.mrf.mxu1  ;;  %2266 = vst [vmem:[%s5125_s2 + $0xe0] sm:$0xff] %v3526_v8  ;;  %3531 = vtanh.f32 %v1892_v7 }
 0x181   :  { %v3528_v11 = vpop.eup %3527  ;;  %3533 = vtanh.f32 %v1414_v9 }
 0x182   :  { %2330 = vst [vmem:[%s5125_s2 + $0x2e0] sm:$0xff] %v3528_v11  ;;  %3535 = vtanh.f32 %v1574_v10 }
 0x185   :  { %v3530_v12 = vpop.eup %3529 }
 0x186   :  { %v3532_v13 = vpop.eup %3531  ;;  %2394 = vst [vmem:[%s5125_s2 + $0x4e0] sm:$0xff] %v3530_v12  ;;  %v1734_v14 = vpop.f32.mrf.mxu2  ;;  %v3180_v12 = vld [vmem:[%s5124_s0 + $0xd0] sm:$0xff] }
 0x187   :  { %v1894_v15 = vpop.f32.mrf.mxu3  ;;  %v3534_v18 = vpop.eup %3533  ;;  %2458 = vst [vmem:[%s5125_s2 + $0x6e0] sm:$0xff] %v3532_v13  ;;  %3537 = vtanh.f32 %v1734_v14  ;;  %v3212_v13 = vld [vmem:[%s5124_s0 + $0x1d0] sm:$0xff] }
 0x188   :  { %v1417_v19 = vpop.f32.mrf.mxu0  ;;  %v1577_v20 = vpop.f32.mrf.mxu1  ;;  %2267 = vst [vmem:[%s5125_s2 + $0xe8] sm:$0xff] %v3534_v18  ;;  %3539 = vtanh.f32 %v1894_v15  ;;  %v3276_v18 = vld [vmem:[%s5124_s0 + $0x3d0] sm:$0xff] }
 0x189   :  { %v3536_v23 = vpop.eup %3535  ;;  %3541 = vtanh.f32 %v1417_v19 }
 0x18a   :  { %2331 = vst [vmem:[%s5125_s2 + $0x2e8] sm:$0xff] %v3536_v23  ;;  %3543 = vtanh.f32 %v1577_v20  ;;  %3049 = vmatmul.msk.bf16.gmra.mxu0 %vm944_vm1, %v3177_v16  ;;  %3081 = vmatmul.msk.bf16.gmra.mxu1 %vm944_vm1, %v3209_v17  ;;  %v3244_v17 = vld [vmem:[%s5124_s0 + $0x2d0] sm:$0xff] }
 0x18b   :  { %3113 = vmatmul.msk.bf16.gmra.mxu2 %vm944_vm1, %v3241_v21  ;;  %3145 = vmatmul.msk.bf16.gmra.mxu3 %vm944_vm1, %v3273_v22 }
 0x18d   :  { %v3538_v24 = vpop.eup %3537 }
 0x18e   :  { %v3540_v25 = vpop.eup %3539  ;;  %2395 = vst [vmem:[%s5125_s2 + $0x4e8] sm:$0xff] %v3538_v24  ;;  %v1737_v26 = vpop.f32.mrf.mxu2 }
 0x18f   :  { %v1897_v27 = vpop.f32.mrf.mxu3  ;;  %v3542_v28 = vpop.eup %3541  ;;  %2459 = vst [vmem:[%s5125_s2 + $0x6e8] sm:$0xff] %v3540_v25  ;;  %3545 = vtanh.f32 %v1737_v26 }
 0x190   :  { %v1419_v29 = vpop.f32.mrf.mxu0  ;;  %v1579_v30 = vpop.f32.mrf.mxu1  ;;  %2268 = vst [vmem:[%s5125_s2 + $0xf0] sm:$0xff] %v3542_v28  ;;  %3547 = vtanh.f32 %v1897_v27 }
 0x191   :  { %v3544_v31 = vpop.eup %3543  ;;  %3549 = vtanh.f32 %v1419_v29 }
 0x192   :  { %2332 = vst [vmem:[%s5125_s2 + $0x2f0] sm:$0xff] %v3544_v31  ;;  %3551 = vtanh.f32 %v1579_v30 }
 0x195   :  { %v3546_v32 = vpop.eup %3545 }
 0x196   :  { %v3548_v33 = vpop.eup %3547  ;;  %2396 = vst [vmem:[%s5125_s2 + $0x4f0] sm:$0xff] %v3546_v32  ;;  %v1739_v34 = vpop.f32.mrf.mxu2  ;;  %v3181_v32 = vld [vmem:[%s5124_s0 + $0xd8] sm:$0xff] }
 0x197   :  { %v1899_v35 = vpop.f32.mrf.mxu3  ;;  %v3550_v38 = vpop.eup %3549  ;;  %2460 = vst [vmem:[%s5125_s2 + $0x6f0] sm:$0xff] %v3548_v33  ;;  %3553 = vtanh.f32 %v1739_v34  ;;  %v3213_v33 = vld [vmem:[%s5124_s0 + $0x1d8] sm:$0xff] }
 0x198   :  { %v1422_v39 = vpop.f32.mrf.mxu0  ;;  %v1582_v40 = vpop.f32.mrf.mxu1  ;;  %2269 = vst [vmem:[%s5125_s2 + $0xf8] sm:$0xff] %v3550_v38  ;;  %3555 = vtanh.f32 %v1899_v35  ;;  %v3277_v38 = vld [vmem:[%s5124_s0 + $0x3d8] sm:$0xff] }
 0x199   :  { %v3552_v43 = vpop.eup %3551  ;;  %3557 = vtanh.f32 %v1422_v39 }
 0x19a   :  { %2333 = vst [vmem:[%s5125_s2 + $0x2f8] sm:$0xff] %v3552_v43  ;;  %3559 = vtanh.f32 %v1582_v40  ;;  %3050 = vmatmul.msk.bf16.gmra.mxu0 %vm944_vm1, %v3178_v36  ;;  %3082 = vmatmul.msk.bf16.gmra.mxu1 %vm944_vm1, %v3210_v37  ;;  %v3245_v37 = vld [vmem:[%s5124_s0 + $0x2d8] sm:$0xff] }
 0x19b   :  { %3114 = vmatmul.msk.bf16.gmra.mxu2 %vm944_vm1, %v3242_v41  ;;  %3146 = vmatmul.msk.bf16.gmra.mxu3 %vm944_vm1, %v3274_v42 }
 0x19d   :  { %v3554_v44 = vpop.eup %3553 }
 0x19e   :  { %v3556_v45 = vpop.eup %3555  ;;  %2397 = vst [vmem:[%s5125_s2 + $0x4f8] sm:$0xff] %v3554_v44  ;;  %v1742_v46 = vpop.f32.mrf.mxu2 }
 0x19f   :  { %v1902_v47 = vpop.f32.mrf.mxu3  ;;  %v3558_v48 = vpop.eup %3557  ;;  %2461 = vst [vmem:[%s5125_s2 + $0x6f8] sm:$0xff] %v3556_v45  ;;  %3561 = vtanh.f32 %v1742_v46 }
 0x1a0   :  { %v1424_v49 = vpop.f32.mrf.mxu0  ;;  %v1584_v50 = vpop.f32.mrf.mxu1  ;;  %2270 = vst [vmem:[%s5125_s2 + $0x100] sm:$0xff] %v3558_v48  ;;  %3563 = vtanh.f32 %v1902_v47 }
 0x1a1   :  { %v3560_v51 = vpop.eup %3559  ;;  %3565 = vtanh.f32 %v1424_v49 }
 0x1a2   :  { %2334 = vst [vmem:[%s5125_s2 + $0x300] sm:$0xff] %v3560_v51  ;;  %3567 = vtanh.f32 %v1584_v50 }
 0x1a5   :  { %v3562_v52 = vpop.eup %3561 }
 0x1a6   :  { %v3564_v53 = vpop.eup %3563  ;;  %2398 = vst [vmem:[%s5125_s2 + $0x500] sm:$0xff] %v3562_v52  ;;  %v1744_v54 = vpop.f32.mrf.mxu2  ;;  %v3182_v52 = vld [vmem:[%s5124_s0 + $0xe0] sm:$0xff] }
 0x1a7   :  { %v1904_v55 = vpop.f32.mrf.mxu3  ;;  %v3566_v58 = vpop.eup %3565  ;;  %2462 = vst [vmem:[%s5125_s2 + $0x700] sm:$0xff] %v3564_v53  ;;  %3569 = vtanh.f32 %v1744_v54  ;;  %v3214_v53 = vld [vmem:[%s5124_s0 + $0x1e0] sm:$0xff] }
 0x1a8   :  { %v1427_v59 = vpop.f32.mrf.mxu0  ;;  %v1587_v60 = vpop.f32.mrf.mxu1  ;;  %2271 = vst [vmem:[%s5125_s2 + $0x108] sm:$0xff] %v3566_v58  ;;  %3571 = vtanh.f32 %v1904_v55  ;;  %v3278_v58 = vld [vmem:[%s5124_s0 + $0x3e0] sm:$0xff] }
 0x1a9   :  { %v3568_v63 = vpop.eup %3567  ;;  %3573 = vtanh.f32 %v1427_v59 }
 0x1aa   :  { %2335 = vst [vmem:[%s5125_s2 + $0x308] sm:$0xff] %v3568_v63  ;;  %3575 = vtanh.f32 %v1587_v60  ;;  %3051 = vmatmul.msk.bf16.gmra.mxu0 %vm944_vm1, %v3179_v56  ;;  %3083 = vmatmul.msk.bf16.gmra.mxu1 %vm944_vm1, %v3211_v57  ;;  %v3246_v57 = vld [vmem:[%s5124_s0 + $0x2e0] sm:$0xff] }
 0x1ab   :  { %3115 = vmatmul.msk.bf16.gmra.mxu2 %vm944_vm1, %v3243_v61  ;;  %3147 = vmatmul.msk.bf16.gmra.mxu3 %vm944_vm1, %v3275_v62 }
 0x1ad   :  { %v3570_v0 = vpop.eup %3569 }
 0x1ae   :  { %v3572_v1 = vpop.eup %3571  ;;  %2399 = vst [vmem:[%s5125_s2 + $0x508] sm:$0xff] %v3570_v0  ;;  %v1747_v2 = vpop.f32.mrf.mxu2 }
 0x1af   :  { %v1907_v3 = vpop.f32.mrf.mxu3  ;;  %v3574_v4 = vpop.eup %3573  ;;  %2463 = vst [vmem:[%s5125_s2 + $0x708] sm:$0xff] %v3572_v1  ;;  %3577 = vtanh.f32 %v1747_v2 }
 0x1b0   :  { %v1429_v5 = vpop.f32.mrf.mxu0  ;;  %v1589_v6 = vpop.f32.mrf.mxu1  ;;  %2272 = vst [vmem:[%s5125_s2 + $0x110] sm:$0xff] %v3574_v4  ;;  %3579 = vtanh.f32 %v1907_v3 }
 0x1b1   :  { %v3576_v7 = vpop.eup %3575  ;;  %3581 = vtanh.f32 %v1429_v5 }
 0x1b2   :  { %2336 = vst [vmem:[%s5125_s2 + $0x310] sm:$0xff] %v3576_v7  ;;  %3583 = vtanh.f32 %v1589_v6 }
 0x1b5   :  { %v3578_v8 = vpop.eup %3577 }
 0x1b6   :  { %v3580_v9 = vpop.eup %3579  ;;  %2400 = vst [vmem:[%s5125_s2 + $0x510] sm:$0xff] %v3578_v8  ;;  %v1749_v10 = vpop.f32.mrf.mxu2  ;;  %v3183_v8 = vld [vmem:[%s5124_s0 + $0xe8] sm:$0xff] }
 0x1b7   :  { %v1909_v11 = vpop.f32.mrf.mxu3  ;;  %v3582_v14 = vpop.eup %3581  ;;  %2464 = vst [vmem:[%s5125_s2 + $0x710] sm:$0xff] %v3580_v9  ;;  %3585 = vtanh.f32 %v1749_v10  ;;  %v3215_v9 = vld [vmem:[%s5124_s0 + $0x1e8] sm:$0xff] }
 0x1b8   :  { %v1432_v15 = vpop.f32.mrf.mxu0  ;;  %v1592_v16 = vpop.f32.mrf.mxu1  ;;  %2273 = vst [vmem:[%s5125_s2 + $0x118] sm:$0xff] %v3582_v14  ;;  %3587 = vtanh.f32 %v1909_v11  ;;  %v3279_v14 = vld [vmem:[%s5124_s0 + $0x3e8] sm:$0xff] }
 0x1b9   :  { %v3584_v19 = vpop.eup %3583  ;;  %3589 = vtanh.f32 %v1432_v15 }
 0x1ba   :  { %2337 = vst [vmem:[%s5125_s2 + $0x318] sm:$0xff] %v3584_v19  ;;  %3591 = vtanh.f32 %v1592_v16  ;;  %3052 = vmatmul.msk.bf16.gmra.mxu0 %vm944_vm1, %v3180_v12  ;;  %3084 = vmatmul.msk.bf16.gmra.mxu1 %vm944_vm1, %v3212_v13  ;;  %v3247_v13 = vld [vmem:[%s5124_s0 + $0x2e8] sm:$0xff] }
 0x1bb   :  { %3116 = vmatmul.msk.bf16.gmra.mxu2 %vm944_vm1, %v3244_v17  ;;  %3148 = vmatmul.msk.bf16.gmra.mxu3 %vm944_vm1, %v3276_v18 }
 0x1bd   :  { %v3586_v20 = vpop.eup %3585 }
 0x1be   :  { %v3588_v21 = vpop.eup %3587  ;;  %2401 = vst [vmem:[%s5125_s2 + $0x518] sm:$0xff] %v3586_v20  ;;  %v1752_v22 = vpop.f32.mrf.mxu2 }
 0x1bf   :  { %v1912_v23 = vpop.f32.mrf.mxu3  ;;  %v3590_v24 = vpop.eup %3589  ;;  %2465 = vst [vmem:[%s5125_s2 + $0x718] sm:$0xff] %v3588_v21  ;;  %3593 = vtanh.f32 %v1752_v22 }
 0x1c0   :  { %v1434_v25 = vpop.f32.mrf.mxu0  ;;  %v1594_v26 = vpop.f32.mrf.mxu1  ;;  %2274 = vst [vmem:[%s5125_s2 + $0x120] sm:$0xff] %v3590_v24  ;;  %3595 = vtanh.f32 %v1912_v23 }
 0x1c1   :  { %v3592_v27 = vpop.eup %3591  ;;  %3597 = vtanh.f32 %v1434_v25 }
 0x1c2   :  { %2338 = vst [vmem:[%s5125_s2 + $0x320] sm:$0xff] %v3592_v27  ;;  %3599 = vtanh.f32 %v1594_v26 }
 0x1c5   :  { %v3594_v28 = vpop.eup %3593 }
 0x1c6   :  { %v3596_v29 = vpop.eup %3595  ;;  %2402 = vst [vmem:[%s5125_s2 + $0x520] sm:$0xff] %v3594_v28  ;;  %v1754_v30 = vpop.f32.mrf.mxu2  ;;  %v3184_v28 = vld [vmem:[%s5124_s0 + $0xf0] sm:$0xff] }
 0x1c7   :  { %v1914_v31 = vpop.f32.mrf.mxu3  ;;  %v3598_v34 = vpop.eup %3597  ;;  %2466 = vst [vmem:[%s5125_s2 + $0x720] sm:$0xff] %v3596_v29  ;;  %3601 = vtanh.f32 %v1754_v30  ;;  %v3216_v29 = vld [vmem:[%s5124_s0 + $0x1f0] sm:$0xff] }
 0x1c8   :  { %v1437_v35 = vpop.f32.mrf.mxu0  ;;  %v1597_v36 = vpop.f32.mrf.mxu1  ;;  %2275 = vst [vmem:[%s5125_s2 + $0x128] sm:$0xff] %v3598_v34  ;;  %3603 = vtanh.f32 %v1914_v31  ;;  %v3280_v34 = vld [vmem:[%s5124_s0 + $0x3f0] sm:$0xff] }
 0x1c9   :  { %v3600_v39 = vpop.eup %3599  ;;  %3605 = vtanh.f32 %v1437_v35 }
 0x1ca   :  { %2339 = vst [vmem:[%s5125_s2 + $0x328] sm:$0xff] %v3600_v39  ;;  %3607 = vtanh.f32 %v1597_v36  ;;  %3053 = vmatmul.msk.bf16.gmra.mxu0 %vm944_vm1, %v3181_v32  ;;  %3085 = vmatmul.msk.bf16.gmra.mxu1 %vm944_vm1, %v3213_v33  ;;  %v3248_v33 = vld [vmem:[%s5124_s0 + $0x2f0] sm:$0xff] }
 0x1cb   :  { %3117 = vmatmul.msk.bf16.gmra.mxu2 %vm944_vm1, %v3245_v37  ;;  %3149 = vmatmul.msk.bf16.gmra.mxu3 %vm944_vm1, %v3277_v38 }
 0x1cd   :  { %v3602_v40 = vpop.eup %3601 }
 0x1ce   :  { %v3604_v41 = vpop.eup %3603  ;;  %2403 = vst [vmem:[%s5125_s2 + $0x528] sm:$0xff] %v3602_v40  ;;  %v1757_v42 = vpop.f32.mrf.mxu2 }
 0x1cf   :  { %v1917_v43 = vpop.f32.mrf.mxu3  ;;  %v3606_v44 = vpop.eup %3605  ;;  %2467 = vst [vmem:[%s5125_s2 + $0x728] sm:$0xff] %v3604_v41  ;;  %3609 = vtanh.f32 %v1757_v42 }
 0x1d0   :  { %v1439_v45 = vpop.f32.mrf.mxu0  ;;  %v1599_v46 = vpop.f32.mrf.mxu1  ;;  %2276 = vst [vmem:[%s5125_s2 + $0x130] sm:$0xff] %v3606_v44  ;;  %3611 = vtanh.f32 %v1917_v43 }
 0x1d1   :  { %v3608_v47 = vpop.eup %3607  ;;  %3613 = vtanh.f32 %v1439_v45 }
 0x1d2   :  { %2340 = vst [vmem:[%s5125_s2 + $0x330] sm:$0xff] %v3608_v47  ;;  %3615 = vtanh.f32 %v1599_v46 }
 0x1d5   :  { %v3610_v48 = vpop.eup %3609 }
 0x1d6   :  { %v3612_v49 = vpop.eup %3611  ;;  %2404 = vst [vmem:[%s5125_s2 + $0x530] sm:$0xff] %v3610_v48  ;;  %v1759_v50 = vpop.f32.mrf.mxu2  ;;  %v3185_v48 = vld [vmem:[%s5124_s0 + $0xf8] sm:$0xff] }
 0x1d7   :  { %v1919_v51 = vpop.f32.mrf.mxu3  ;;  %v3614_v54 = vpop.eup %3613  ;;  %2468 = vst [vmem:[%s5125_s2 + $0x730] sm:$0xff] %v3612_v49  ;;  %3617 = vtanh.f32 %v1759_v50  ;;  %v3217_v49 = vld [vmem:[%s5124_s0 + $0x1f8] sm:$0xff] }
 0x1d8   :  { %v1442_v55 = vpop.f32.mrf.mxu0  ;;  %v1602_v56 = vpop.f32.mrf.mxu1  ;;  %2277 = vst [vmem:[%s5125_s2 + $0x138] sm:$0xff] %v3614_v54  ;;  %3619 = vtanh.f32 %v1919_v51  ;;  %v3281_v54 = vld [vmem:[%s5124_s0 + $0x3f8] sm:$0xff] }
 0x1d9   :  { %v3616_v59 = vpop.eup %3615  ;;  %3621 = vtanh.f32 %v1442_v55 }
 0x1da   :  { %2341 = vst [vmem:[%s5125_s2 + $0x338] sm:$0xff] %v3616_v59  ;;  %3623 = vtanh.f32 %v1602_v56  ;;  %3054 = vmatmul.msk.bf16.gmra.mxu0 %vm944_vm1, %v3182_v52  ;;  %3086 = vmatmul.msk.bf16.gmra.mxu1 %vm944_vm1, %v3214_v53  ;;  %v3249_v53 = vld [vmem:[%s5124_s0 + $0x2f8] sm:$0xff] }
 0x1db   :  { %3118 = vmatmul.msk.bf16.gmra.mxu2 %vm944_vm1, %v3246_v57  ;;  %3150 = vmatmul.msk.bf16.gmra.mxu3 %vm944_vm1, %v3278_v58 }
 0x1dd   :  { %v3618_v60 = vpop.eup %3617 }
 0x1de   :  { %v3620_v61 = vpop.eup %3619  ;;  %2405 = vst [vmem:[%s5125_s2 + $0x538] sm:$0xff] %v3618_v60  ;;  %v1762_v62 = vpop.f32.mrf.mxu2 }
 0x1df   :  { %v1922_v63 = vpop.f32.mrf.mxu3  ;;  %v3622_v0 = vpop.eup %3621  ;;  %2469 = vst [vmem:[%s5125_s2 + $0x738] sm:$0xff] %v3620_v61  ;;  %3625 = vtanh.f32 %v1762_v62 }
 0x1e0   :  { %v1444_v1 = vpop.f32.mrf.mxu0  ;;  %v1604_v2 = vpop.f32.mrf.mxu1  ;;  %2278 = vst [vmem:[%s5125_s2 + $0x140] sm:$0xff] %v3622_v0  ;;  %3627 = vtanh.f32 %v1922_v63 }
 0x1e1   :  { %v3624_v3 = vpop.eup %3623  ;;  %3629 = vtanh.f32 %v1444_v1 }
 0x1e2   :  { %2342 = vst [vmem:[%s5125_s2 + $0x340] sm:$0xff] %v3624_v3  ;;  %3631 = vtanh.f32 %v1604_v2 }
 0x1e5   :  { %v3626_v4 = vpop.eup %3625 }
 0x1e6   :  { %v3628_v5 = vpop.eup %3627  ;;  %2406 = vst [vmem:[%s5125_s2 + $0x540] sm:$0xff] %v3626_v4  ;;  %v1764_v6 = vpop.f32.mrf.mxu2 }
 0x1e7   :  { %v1924_v7 = vpop.f32.mrf.mxu3  ;;  %v3630_v10 = vpop.eup %3629  ;;  %2470 = vst [vmem:[%s5125_s2 + $0x740] sm:$0xff] %v3628_v5  ;;  %3633 = vtanh.f32 %v1764_v6 }
 0x1e8   :  { %v1447_v11 = vpop.f32.mrf.mxu0  ;;  %v1607_v12 = vpop.f32.mrf.mxu1  ;;  %2279 = vst [vmem:[%s5125_s2 + $0x148] sm:$0xff] %v3630_v10  ;;  %3635 = vtanh.f32 %v1924_v7 }
 0x1e9   :  { %v3632_v15 = vpop.eup %3631  ;;  %3637 = vtanh.f32 %v1447_v11 }
 0x1ea   :  { %2343 = vst [vmem:[%s5125_s2 + $0x348] sm:$0xff] %v3632_v15  ;;  %3639 = vtanh.f32 %v1607_v12  ;;  %3055 = vmatmul.msk.bf16.gmra.mxu0 %vm944_vm1, %v3183_v8  ;;  %3087 = vmatmul.msk.bf16.gmra.mxu1 %vm944_vm1, %v3215_v9 }
 0x1eb   :  { %3119 = vmatmul.msk.bf16.gmra.mxu2 %vm944_vm1, %v3247_v13  ;;  %3151 = vmatmul.msk.bf16.gmra.mxu3 %vm944_vm1, %v3279_v14 }
 0x1ed   :  { %v3634_v16 = vpop.eup %3633 }
 0x1ee   :  { %v3636_v17 = vpop.eup %3635  ;;  %2407 = vst [vmem:[%s5125_s2 + $0x548] sm:$0xff] %v3634_v16  ;;  %v1767_v18 = vpop.f32.mrf.mxu2 }
 0x1ef   :  { %v1927_v19 = vpop.f32.mrf.mxu3  ;;  %v3638_v20 = vpop.eup %3637  ;;  %2471 = vst [vmem:[%s5125_s2 + $0x748] sm:$0xff] %v3636_v17  ;;  %3641 = vtanh.f32 %v1767_v18 }
 0x1f0   :  { %v1449_v21 = vpop.f32.mrf.mxu0  ;;  %v1609_v22 = vpop.f32.mrf.mxu1  ;;  %2280 = vst [vmem:[%s5125_s2 + $0x150] sm:$0xff] %v3638_v20  ;;  %3643 = vtanh.f32 %v1927_v19 }
 0x1f1   :  { %v3640_v23 = vpop.eup %3639  ;;  %3645 = vtanh.f32 %v1449_v21 }
 0x1f2   :  { %2344 = vst [vmem:[%s5125_s2 + $0x350] sm:$0xff] %v3640_v23  ;;  %3647 = vtanh.f32 %v1609_v22 }
 0x1f5   :  { %v3642_v24 = vpop.eup %3641 }
 0x1f6   :  { %v3644_v25 = vpop.eup %3643  ;;  %2408 = vst [vmem:[%s5125_s2 + $0x550] sm:$0xff] %v3642_v24  ;;  %v1769_v26 = vpop.f32.mrf.mxu2 }
 0x1f7   :  { %v1929_v27 = vpop.f32.mrf.mxu3  ;;  %v3646_v30 = vpop.eup %3645  ;;  %2472 = vst [vmem:[%s5125_s2 + $0x750] sm:$0xff] %v3644_v25  ;;  %3649 = vtanh.f32 %v1769_v26 }
 0x1f8   :  { %v1452_v31 = vpop.f32.mrf.mxu0  ;;  %v1612_v32 = vpop.f32.mrf.mxu1  ;;  %2281 = vst [vmem:[%s5125_s2 + $0x158] sm:$0xff] %v3646_v30  ;;  %3651 = vtanh.f32 %v1929_v27 }
 0x1f9   :  { %v3648_v35 = vpop.eup %3647  ;;  %3653 = vtanh.f32 %v1452_v31 }
 0x1fa   :  { %2345 = vst [vmem:[%s5125_s2 + $0x358] sm:$0xff] %v3648_v35  ;;  %3655 = vtanh.f32 %v1612_v32  ;;  %3056 = vmatmul.msk.bf16.gmra.mxu0 %vm944_vm1, %v3184_v28  ;;  %3088 = vmatmul.msk.bf16.gmra.mxu1 %vm944_vm1, %v3216_v29 }
 0x1fb   :  { %3120 = vmatmul.msk.bf16.gmra.mxu2 %vm944_vm1, %v3248_v33  ;;  %3152 = vmatmul.msk.bf16.gmra.mxu3 %vm944_vm1, %v3280_v34 }
 0x1fd   :  { %v3650_v36 = vpop.eup %3649 }
 0x1fe   :  { %v3652_v37 = vpop.eup %3651  ;;  %2409 = vst [vmem:[%s5125_s2 + $0x558] sm:$0xff] %v3650_v36  ;;  %v1772_v38 = vpop.f32.mrf.mxu2 }
 0x1ff   :  { %v1932_v39 = vpop.f32.mrf.mxu3  ;;  %v3654_v40 = vpop.eup %3653  ;;  %2473 = vst [vmem:[%s5125_s2 + $0x758] sm:$0xff] %v3652_v37  ;;  %3657 = vtanh.f32 %v1772_v38 }
 0x200   :  { %v1454_v41 = vpop.f32.mrf.mxu0  ;;  %v1614_v42 = vpop.f32.mrf.mxu1  ;;  %2282 = vst [vmem:[%s5125_s2 + $0x160] sm:$0xff] %v3654_v40  ;;  %3659 = vtanh.f32 %v1932_v39 }
 0x201   :  { %v3656_v43 = vpop.eup %3655  ;;  %3661 = vtanh.f32 %v1454_v41 }
 0x202   :  { %2346 = vst [vmem:[%s5125_s2 + $0x360] sm:$0xff] %v3656_v43  ;;  %3663 = vtanh.f32 %v1614_v42 }
 0x205   :  { %v3658_v44 = vpop.eup %3657 }
 0x206   :  { %v3660_v45 = vpop.eup %3659  ;;  %2410 = vst [vmem:[%s5125_s2 + $0x560] sm:$0xff] %v3658_v44  ;;  %v1774_v46 = vpop.f32.mrf.mxu2 }
 0x207   :  { %v1934_v47 = vpop.f32.mrf.mxu3  ;;  %v3662_v50 = vpop.eup %3661  ;;  %2474 = vst [vmem:[%s5125_s2 + $0x760] sm:$0xff] %v3660_v45  ;;  %3665 = vtanh.f32 %v1774_v46 }
 0x208   :  { %v1457_v51 = vpop.f32.mrf.mxu0  ;;  %v1617_v52 = vpop.f32.mrf.mxu1  ;;  %2283 = vst [vmem:[%s5125_s2 + $0x168] sm:$0xff] %v3662_v50  ;;  %3667 = vtanh.f32 %v1934_v47 }
 0x209   :  { %v3664_v55 = vpop.eup %3663  ;;  %3669 = vtanh.f32 %v1457_v51 }
 0x20a   :  { %2347 = vst [vmem:[%s5125_s2 + $0x368] sm:$0xff] %v3664_v55  ;;  %3671 = vtanh.f32 %v1617_v52  ;;  %3057 = vmatmul.msk.bf16.gmra.mxu0 %vm944_vm1, %v3185_v48  ;;  %3089 = vmatmul.msk.bf16.gmra.mxu1 %vm944_vm1, %v3217_v49 }
 0x20b   :  { %3121 = vmatmul.msk.bf16.gmra.mxu2 %vm944_vm1, %v3249_v53  ;;  %3153 = vmatmul.msk.bf16.gmra.mxu3 %vm944_vm1, %v3281_v54 }
 0x20d   :  { %v3666_v56 = vpop.eup %3665 }
 0x20e   :  { %v3668_v57 = vpop.eup %3667  ;;  %2411 = vst [vmem:[%s5125_s2 + $0x568] sm:$0xff] %v3666_v56  ;;  %v1777_v58 = vpop.f32.mrf.mxu2 }
 0x20f   :  { %v1937_v59 = vpop.f32.mrf.mxu3  ;;  %v3670_v60 = vpop.eup %3669  ;;  %2475 = vst [vmem:[%s5125_s2 + $0x768] sm:$0xff] %v3668_v57  ;;  %3673 = vtanh.f32 %v1777_v58 }
 0x210   :  { %v1459_v61 = vpop.f32.mrf.mxu0  ;;  %v1619_v62 = vpop.f32.mrf.mxu1  ;;  %2284 = vst [vmem:[%s5125_s2 + $0x170] sm:$0xff] %v3670_v60  ;;  %3675 = vtanh.f32 %v1937_v59 }
 0x211   :  { %v3672_v63 = vpop.eup %3671  ;;  %3677 = vtanh.f32 %v1459_v61 }
 0x212   :  { %2348 = vst [vmem:[%s5125_s2 + $0x370] sm:$0xff] %v3672_v63  ;;  %3679 = vtanh.f32 %v1619_v62 }
 0x215   :  { %v3674_v0 = vpop.eup %3673 }
 0x216   :  { %v3676_v1 = vpop.eup %3675  ;;  %2412 = vst [vmem:[%s5125_s2 + $0x570] sm:$0xff] %v3674_v0  ;;  %v1779_v2 = vpop.f32.mrf.mxu2 }
 0x217   :  { %v1939_v3 = vpop.f32.mrf.mxu3  ;;  %v3678_v4 = vpop.eup %3677  ;;  %2476 = vst [vmem:[%s5125_s2 + $0x770] sm:$0xff] %v3676_v1  ;;  %3681 = vtanh.f32 %v1779_v2 }
 0x218   :  { %v1462_v5 = vpop.f32.mrf.mxu0  ;;  %v1622_v6 = vpop.f32.mrf.mxu1  ;;  %2285 = vst [vmem:[%s5125_s2 + $0x178] sm:$0xff] %v3678_v4  ;;  %3683 = vtanh.f32 %v1939_v3 }
 0x219   :  { %v3680_v7 = vpop.eup %3679  ;;  %3685 = vtanh.f32 %v1462_v5 }
 0x21a   :  { %2349 = vst [vmem:[%s5125_s2 + $0x378] sm:$0xff] %v3680_v7  ;;  %3687 = vtanh.f32 %v1622_v6 }
 0x21d   :  { %v3682_v8 = vpop.eup %3681 }
 0x21e   :  { %v3684_v9 = vpop.eup %3683  ;;  %2413 = vst [vmem:[%s5125_s2 + $0x578] sm:$0xff] %v3682_v8  ;;  %v1782_v10 = vpop.f32.mrf.mxu2 }
 0x21f   :  { %v1942_v11 = vpop.f32.mrf.mxu3  ;;  %v3686_v12 = vpop.eup %3685  ;;  %2477 = vst [vmem:[%s5125_s2 + $0x778] sm:$0xff] %v3684_v9  ;;  %3689 = vtanh.f32 %v1782_v10 }
 0x220   :  { %v1464_v13 = vpop.f32.mrf.mxu0  ;;  %v1624_v14 = vpop.f32.mrf.mxu1  ;;  %2286 = vst [vmem:[%s5125_s2 + $0x180] sm:$0xff] %v3686_v12  ;;  %3691 = vtanh.f32 %v1942_v11 }
 0x221   :  { %v3688_v15 = vpop.eup %3687  ;;  %3693 = vtanh.f32 %v1464_v13 }
 0x222   :  { %2350 = vst [vmem:[%s5125_s2 + $0x380] sm:$0xff] %v3688_v15  ;;  %3695 = vtanh.f32 %v1624_v14 }
 0x225   :  { %v3690_v16 = vpop.eup %3689 }
 0x226   :  { %v3692_v17 = vpop.eup %3691  ;;  %2414 = vst [vmem:[%s5125_s2 + $0x580] sm:$0xff] %v3690_v16  ;;  %v1784_v18 = vpop.f32.mrf.mxu2 }
 0x227   :  { %v1944_v19 = vpop.f32.mrf.mxu3  ;;  %v3694_v20 = vpop.eup %3693  ;;  %2478 = vst [vmem:[%s5125_s2 + $0x780] sm:$0xff] %v3692_v17  ;;  %3697 = vtanh.f32 %v1784_v18 }
 0x228   :  { %v1467_v21 = vpop.f32.mrf.mxu0  ;;  %v1627_v22 = vpop.f32.mrf.mxu1  ;;  %2287 = vst [vmem:[%s5125_s2 + $0x188] sm:$0xff] %v3694_v20  ;;  %3699 = vtanh.f32 %v1944_v19 }
 0x229   :  { %v3696_v23 = vpop.eup %3695  ;;  %3701 = vtanh.f32 %v1467_v21 }
 0x22a   :  { %2351 = vst [vmem:[%s5125_s2 + $0x388] sm:$0xff] %v3696_v23  ;;  %3703 = vtanh.f32 %v1627_v22 }
 0x22d   :  { %v3698_v24 = vpop.eup %3697 }
 0x22e   :  { %v3700_v25 = vpop.eup %3699  ;;  %2415 = vst [vmem:[%s5125_s2 + $0x588] sm:$0xff] %v3698_v24  ;;  %v1787_v26 = vpop.f32.mrf.mxu2 }
 0x22f   :  { %v1947_v27 = vpop.f32.mrf.mxu3  ;;  %v3702_v28 = vpop.eup %3701  ;;  %2479 = vst [vmem:[%s5125_s2 + $0x788] sm:$0xff] %v3700_v25  ;;  %3705 = vtanh.f32 %v1787_v26 }
 0x230   :  { %v1469_v29 = vpop.f32.mrf.mxu0  ;;  %v1629_v30 = vpop.f32.mrf.mxu1  ;;  %2288 = vst [vmem:[%s5125_s2 + $0x190] sm:$0xff] %v3702_v28  ;;  %3707 = vtanh.f32 %v1947_v27 }
 0x231   :  { %v3704_v31 = vpop.eup %3703  ;;  %3709 = vtanh.f32 %v1469_v29 }
 0x232   :  { %2352 = vst [vmem:[%s5125_s2 + $0x390] sm:$0xff] %v3704_v31  ;;  %3711 = vtanh.f32 %v1629_v30 }
 0x235   :  { %v3706_v32 = vpop.eup %3705 }
 0x236   :  { %v3708_v33 = vpop.eup %3707  ;;  %2416 = vst [vmem:[%s5125_s2 + $0x590] sm:$0xff] %v3706_v32  ;;  %v1789_v34 = vpop.f32.mrf.mxu2 }
 0x237   :  { %v1949_v35 = vpop.f32.mrf.mxu3  ;;  %v3710_v36 = vpop.eup %3709  ;;  %2480 = vst [vmem:[%s5125_s2 + $0x790] sm:$0xff] %v3708_v33  ;;  %3713 = vtanh.f32 %v1789_v34 }
 0x238   :  { %v1472_v37 = vpop.f32.mrf.mxu0  ;;  %v1632_v38 = vpop.f32.mrf.mxu1  ;;  %2289 = vst [vmem:[%s5125_s2 + $0x198] sm:$0xff] %v3710_v36  ;;  %3715 = vtanh.f32 %v1949_v35 }
 0x239   :  { %v3712_v39 = vpop.eup %3711  ;;  %3717 = vtanh.f32 %v1472_v37 }
 0x23a   :  { %2353 = vst [vmem:[%s5125_s2 + $0x398] sm:$0xff] %v3712_v39  ;;  %3719 = vtanh.f32 %v1632_v38 }
 0x23d   :  { %v3714_v40 = vpop.eup %3713 }
 0x23e   :  { %v3716_v41 = vpop.eup %3715  ;;  %2417 = vst [vmem:[%s5125_s2 + $0x598] sm:$0xff] %v3714_v40  ;;  %v1792_v42 = vpop.f32.mrf.mxu2 }
 0x23f   :  { %v1952_v43 = vpop.f32.mrf.mxu3  ;;  %v3718_v44 = vpop.eup %3717  ;;  %2481 = vst [vmem:[%s5125_s2 + $0x798] sm:$0xff] %v3716_v41  ;;  %3721 = vtanh.f32 %v1792_v42 }
 0x240   :  { %v1474_v45 = vpop.f32.mrf.mxu0  ;;  %v1634_v46 = vpop.f32.mrf.mxu1  ;;  %2290 = vst [vmem:[%s5125_s2 + $0x1a0] sm:$0xff] %v3718_v44  ;;  %3723 = vtanh.f32 %v1952_v43 }
 0x241   :  { %v3720_v47 = vpop.eup %3719  ;;  %3725 = vtanh.f32 %v1474_v45 }
 0x242   :  { %2354 = vst [vmem:[%s5125_s2 + $0x3a0] sm:$0xff] %v3720_v47  ;;  %3727 = vtanh.f32 %v1634_v46 }
 0x245   :  { %v3722_v48 = vpop.eup %3721 }
 0x246   :  { %v3724_v49 = vpop.eup %3723  ;;  %2418 = vst [vmem:[%s5125_s2 + $0x5a0] sm:$0xff] %v3722_v48  ;;  %v1794_v50 = vpop.f32.mrf.mxu2 }
 0x247   :  { %v1954_v51 = vpop.f32.mrf.mxu3  ;;  %v3726_v52 = vpop.eup %3725  ;;  %2482 = vst [vmem:[%s5125_s2 + $0x7a0] sm:$0xff] %v3724_v49  ;;  %3729 = vtanh.f32 %v1794_v50 }
 0x248   :  { %v1477_v53 = vpop.f32.mrf.mxu0  ;;  %v1637_v54 = vpop.f32.mrf.mxu1  ;;  %2291 = vst [vmem:[%s5125_s2 + $0x1a8] sm:$0xff] %v3726_v52  ;;  %3731 = vtanh.f32 %v1954_v51 }
 0x249   :  { %v3728_v55 = vpop.eup %3727  ;;  %3733 = vtanh.f32 %v1477_v53 }
 0x24a   :  { %2355 = vst [vmem:[%s5125_s2 + $0x3a8] sm:$0xff] %v3728_v55  ;;  %3735 = vtanh.f32 %v1637_v54 }
 0x24d   :  { %v3730_v56 = vpop.eup %3729 }
 0x24e   :  { %v3732_v57 = vpop.eup %3731  ;;  %2419 = vst [vmem:[%s5125_s2 + $0x5a8] sm:$0xff] %v3730_v56  ;;  %v1797_v58 = vpop.f32.mrf.mxu2 }
 0x24f   :  { %v1957_v59 = vpop.f32.mrf.mxu3  ;;  %v3734_v60 = vpop.eup %3733  ;;  %2483 = vst [vmem:[%s5125_s2 + $0x7a8] sm:$0xff] %v3732_v57  ;;  %3737 = vtanh.f32 %v1797_v58 }
 0x250   :  { %v1479_v61 = vpop.f32.mrf.mxu0  ;;  %v1639_v62 = vpop.f32.mrf.mxu1  ;;  %2292 = vst [vmem:[%s5125_s2 + $0x1b0] sm:$0xff] %v3734_v60  ;;  %3739 = vtanh.f32 %v1957_v59 }
 0x251   :  { %v3736_v63 = vpop.eup %3735  ;;  %3741 = vtanh.f32 %v1479_v61 }
 0x252   :  { %2356 = vst [vmem:[%s5125_s2 + $0x3b0] sm:$0xff] %v3736_v63  ;;  %3743 = vtanh.f32 %v1639_v62 }
 0x255   :  { %v3738_v0 = vpop.eup %3737 }
 0x256   :  { %v3740_v1 = vpop.eup %3739  ;;  %2420 = vst [vmem:[%s5125_s2 + $0x5b0] sm:$0xff] %v3738_v0  ;;  %v1799_v2 = vpop.f32.mrf.mxu2 }
 0x257   :  { %v1959_v3 = vpop.f32.mrf.mxu3  ;;  %v3742_v4 = vpop.eup %3741  ;;  %2484 = vst [vmem:[%s5125_s2 + $0x7b0] sm:$0xff] %v3740_v1  ;;  %3745 = vtanh.f32 %v1799_v2 }
 0x258   :  { %v1482_v5 = vpop.f32.mrf.mxu0  ;;  %v1642_v6 = vpop.f32.mrf.mxu1  ;;  %2293 = vst [vmem:[%s5125_s2 + $0x1b8] sm:$0xff] %v3742_v4  ;;  %3747 = vtanh.f32 %v1959_v3 }
 0x259   :  { %v3744_v7 = vpop.eup %3743  ;;  %3749 = vtanh.f32 %v1482_v5 }
 0x25a   :  { %2357 = vst [vmem:[%s5125_s2 + $0x3b8] sm:$0xff] %v3744_v7  ;;  %3751 = vtanh.f32 %v1642_v6 }
 0x25d   :  { %v3746_v8 = vpop.eup %3745 }
 0x25e   :  { %v3748_v9 = vpop.eup %3747  ;;  %2421 = vst [vmem:[%s5125_s2 + $0x5b8] sm:$0xff] %v3746_v8  ;;  %v1802_v10 = vpop.f32.mrf.mxu2 }
 0x25f   :  { %v1962_v11 = vpop.f32.mrf.mxu3  ;;  %v3750_v12 = vpop.eup %3749  ;;  %2485 = vst [vmem:[%s5125_s2 + $0x7b8] sm:$0xff] %v3748_v9  ;;  %3753 = vtanh.f32 %v1802_v10 }
 0x260   :  { %v1484_v13 = vpop.f32.mrf.mxu0  ;;  %v1644_v14 = vpop.f32.mrf.mxu1  ;;  %2294 = vst [vmem:[%s5125_s2 + $0x1c0] sm:$0xff] %v3750_v12  ;;  %3755 = vtanh.f32 %v1962_v11 }
 0x261   :  { %v3752_v15 = vpop.eup %3751  ;;  %3757 = vtanh.f32 %v1484_v13 }
 0x262   :  { %2358 = vst [vmem:[%s5125_s2 + $0x3c0] sm:$0xff] %v3752_v15  ;;  %3759 = vtanh.f32 %v1644_v14 }
 0x265   :  { %v3754_v16 = vpop.eup %3753 }
 0x266   :  { %v3756_v17 = vpop.eup %3755  ;;  %2422 = vst [vmem:[%s5125_s2 + $0x5c0] sm:$0xff] %v3754_v16  ;;  %v1804_v18 = vpop.f32.mrf.mxu2 }
 0x267   :  { %v1964_v19 = vpop.f32.mrf.mxu3  ;;  %v3758_v20 = vpop.eup %3757  ;;  %2486 = vst [vmem:[%s5125_s2 + $0x7c0] sm:$0xff] %v3756_v17  ;;  %3761 = vtanh.f32 %v1804_v18 }
 0x268   :  { %v1487_v21 = vpop.f32.mrf.mxu0  ;;  %v1647_v22 = vpop.f32.mrf.mxu1  ;;  %2295 = vst [vmem:[%s5125_s2 + $0x1c8] sm:$0xff] %v3758_v20  ;;  %3763 = vtanh.f32 %v1964_v19 }
 0x269   :  { %v3760_v23 = vpop.eup %3759  ;;  %3765 = vtanh.f32 %v1487_v21 }
 0x26a   :  { %2359 = vst [vmem:[%s5125_s2 + $0x3c8] sm:$0xff] %v3760_v23  ;;  %3767 = vtanh.f32 %v1647_v22 }
 0x26d   :  { %v3762_v24 = vpop.eup %3761 }
 0x26e   :  { %v3764_v25 = vpop.eup %3763  ;;  %2423 = vst [vmem:[%s5125_s2 + $0x5c8] sm:$0xff] %v3762_v24  ;;  %v1807_v26 = vpop.f32.mrf.mxu2 }
 0x26f   :  { %v1967_v27 = vpop.f32.mrf.mxu3  ;;  %v3766_v28 = vpop.eup %3765  ;;  %2487 = vst [vmem:[%s5125_s2 + $0x7c8] sm:$0xff] %v3764_v25  ;;  %3769 = vtanh.f32 %v1807_v26 }
 0x270   :  { %v1489_v29 = vpop.f32.mrf.mxu0  ;;  %v1649_v30 = vpop.f32.mrf.mxu1  ;;  %2296 = vst [vmem:[%s5125_s2 + $0x1d0] sm:$0xff] %v3766_v28  ;;  %3771 = vtanh.f32 %v1967_v27 }
 0x271   :  { %v3768_v31 = vpop.eup %3767  ;;  %3773 = vtanh.f32 %v1489_v29 }
 0x272   :  { %2360 = vst [vmem:[%s5125_s2 + $0x3d0] sm:$0xff] %v3768_v31  ;;  %3775 = vtanh.f32 %v1649_v30 }
 0x275   :  { %v3770_v32 = vpop.eup %3769 }
 0x276   :  { %v3772_v33 = vpop.eup %3771  ;;  %2424 = vst [vmem:[%s5125_s2 + $0x5d0] sm:$0xff] %v3770_v32  ;;  %v1809_v34 = vpop.f32.mrf.mxu2 }
 0x277   :  { %v1969_v35 = vpop.f32.mrf.mxu3  ;;  %v3774_v36 = vpop.eup %3773  ;;  %2488 = vst [vmem:[%s5125_s2 + $0x7d0] sm:$0xff] %v3772_v33  ;;  %3777 = vtanh.f32 %v1809_v34 }
 0x278   :  { %v1492_v37 = vpop.f32.mrf.mxu0  ;;  %v1652_v38 = vpop.f32.mrf.mxu1  ;;  %2297 = vst [vmem:[%s5125_s2 + $0x1d8] sm:$0xff] %v3774_v36  ;;  %3779 = vtanh.f32 %v1969_v35 }
 0x279   :  { %v3776_v39 = vpop.eup %3775  ;;  %3781 = vtanh.f32 %v1492_v37 }
 0x27a   :  { %2361 = vst [vmem:[%s5125_s2 + $0x3d8] sm:$0xff] %v3776_v39  ;;  %3783 = vtanh.f32 %v1652_v38 }
 0x27d   :  { %v3778_v40 = vpop.eup %3777 }
 0x27e   :  { %v3780_v41 = vpop.eup %3779  ;;  %2425 = vst [vmem:[%s5125_s2 + $0x5d8] sm:$0xff] %v3778_v40  ;;  %v1812_v42 = vpop.f32.mrf.mxu2 }
 0x27f   :  { %v1972_v43 = vpop.f32.mrf.mxu3  ;;  %v3782_v44 = vpop.eup %3781  ;;  %2489 = vst [vmem:[%s5125_s2 + $0x7d8] sm:$0xff] %v3780_v41  ;;  %3785 = vtanh.f32 %v1812_v42 }
 0x280   :  { %v1494_v45 = vpop.f32.mrf.mxu0  ;;  %v1654_v46 = vpop.f32.mrf.mxu1  ;;  %2298 = vst [vmem:[%s5125_s2 + $0x1e0] sm:$0xff] %v3782_v44  ;;  %3787 = vtanh.f32 %v1972_v43 }
 0x281   :  { %v3784_v47 = vpop.eup %3783  ;;  %3789 = vtanh.f32 %v1494_v45 }
 0x282   :  { %2362 = vst [vmem:[%s5125_s2 + $0x3e0] sm:$0xff] %v3784_v47  ;;  %3791 = vtanh.f32 %v1654_v46 }
 0x285   :  { %v3786_v48 = vpop.eup %3785 }
 0x286   :  { %v3788_v49 = vpop.eup %3787  ;;  %2426 = vst [vmem:[%s5125_s2 + $0x5e0] sm:$0xff] %v3786_v48  ;;  %v1814_v50 = vpop.f32.mrf.mxu2 }
 0x287   :  { %v1974_v51 = vpop.f32.mrf.mxu3  ;;  %v3790_v52 = vpop.eup %3789  ;;  %2490 = vst [vmem:[%s5125_s2 + $0x7e0] sm:$0xff] %v3788_v49  ;;  %3793 = vtanh.f32 %v1814_v50 }
 0x288   :  { %v1497_v53 = vpop.f32.mrf.mxu0  ;;  %v1657_v54 = vpop.f32.mrf.mxu1  ;;  %2299 = vst [vmem:[%s5125_s2 + $0x1e8] sm:$0xff] %v3790_v52  ;;  %3795 = vtanh.f32 %v1974_v51 }
 0x289   :  { %v3792_v55 = vpop.eup %3791  ;;  %3797 = vtanh.f32 %v1497_v53 }
 0x28a   :  { %2363 = vst [vmem:[%s5125_s2 + $0x3e8] sm:$0xff] %v3792_v55  ;;  %3799 = vtanh.f32 %v1657_v54 }
 0x28d   :  { %v3794_v56 = vpop.eup %3793 }
 0x28e   :  { %v3796_v57 = vpop.eup %3795  ;;  %2427 = vst [vmem:[%s5125_s2 + $0x5e8] sm:$0xff] %v3794_v56  ;;  %v1817_v58 = vpop.f32.mrf.mxu2 }
 0x28f   :  { %v1977_v59 = vpop.f32.mrf.mxu3  ;;  %v3798_v60 = vpop.eup %3797  ;;  %2491 = vst [vmem:[%s5125_s2 + $0x7e8] sm:$0xff] %v3796_v57  ;;  %3801 = vtanh.f32 %v1817_v58 }
 0x290   :  { %v1499_v61 = vpop.f32.mrf.mxu0  ;;  %v1659_v62 = vpop.f32.mrf.mxu1  ;;  %2300 = vst [vmem:[%s5125_s2 + $0x1f0] sm:$0xff] %v3798_v60  ;;  %3803 = vtanh.f32 %v1977_v59 }
 0x291   :  { %v3800_v63 = vpop.eup %3799  ;;  %3805 = vtanh.f32 %v1499_v61 }
 0x292   :  { %2364 = vst [vmem:[%s5125_s2 + $0x3f0] sm:$0xff] %v3800_v63  ;;  %3807 = vtanh.f32 %v1659_v62 }
 0x295   :  { %v3802_v0 = vpop.eup %3801 }
 0x296   :  { %v3804_v1 = vpop.eup %3803  ;;  %2428 = vst [vmem:[%s5125_s2 + $0x5f0] sm:$0xff] %v3802_v0  ;;  %v1819_v2 = vpop.f32.mrf.mxu2 }
 0x297   :  { %v1979_v3 = vpop.f32.mrf.mxu3  ;;  %v3806_v4 = vpop.eup %3805  ;;  %2492 = vst [vmem:[%s5125_s2 + $0x7f0] sm:$0xff] %v3804_v1  ;;  %3809 = vtanh.f32 %v1819_v2 }
 0x298   :  { %v3808_v5 = vpop.eup %3807  ;;  %2301 = vst [vmem:[%s5125_s2 + $0x1f8] sm:$0xff] %v3806_v4  ;;  %3811 = vtanh.f32 %v1979_v3 }
 0x299   :  { %2365 = vst [vmem:[%s5125_s2 + $0x3f8] sm:$0xff] %v3808_v5 }
 0x29d   :  { %v3810_v6 = vpop.eup %3809 }
 0x29e   :  { %v3812_v7 = vpop.eup %3811  ;;  %2429 = vst [vmem:[%s5125_s2 + $0x5f8] sm:$0xff] %v3810_v6 }
 0x29f   :  { %2493 = vst [vmem:[%s5125_s2 + $0x7f8] sm:$0xff] %v3812_v7 }

</bundles_post_ra>
